<compile_context>
chip_gen: v7x
topology: tpu7x:2x2x1
jax: 0.10.0
libtpu: 0.0.40
codegen_flags: <defaults>
</compile_context>

<pallas_src>
import functools
import math

import jax
import jax.numpy as jnp
import numpy as np
from jax.experimental import pallas as pl
from jax.experimental.pallas import tpu as pltpu


N_ATOMS_PAD = 64          # atoms padded to half a lane tile for dense heads
CONV3_BATCH_PAD = 8       # one f32 sublane tile per conv3 position block


# ------------------------------ fused kernel --------------------------------

def _rainbow_kernel(p1_ref, s2_ref, s3_ref, w1_ref, b1_ref, w2_ref, b2_ref,
                    w3_ref, b3_ref, wh1_ref, bh1_ref, wv2_ref, bv2_ref,
                    wa2_ref, ba2_ref, out_ref, *, M2p, Bp, KH2, KW2, KH3, KW3,
                    num_actions, hidden):
    f32 = jnp.float32
    bf16 = jnp.bfloat16

    # ---- conv1: one matmul on pre-extracted patches (1/255 folded into w1).
    h1 = jnp.dot(p1_ref[...], w1_ref[...], preferred_element_type=f32)
    h1 = jnp.maximum(h1 + b1_ref[...], 0.0).astype(bf16)       # (B*OH1*OW1, 32)

    # ---- conv2 (k=4, s=2): gather-as-matmul (one-hot S2 on the idle MXU);
    #      per-kernel-offset blocks become ALIGNED M2p-row slices.
    g2 = jnp.dot(s2_ref[...], h1, preferred_element_type=f32)  # (16*M2p, 32)
    acc2 = jnp.dot(g2[0:M2p, :].astype(bf16), w2_ref[0],
                   preferred_element_type=f32)
    for o in range(1, KH2 * KW2):
        acc2 = acc2 + jnp.dot(g2[o * M2p:(o + 1) * M2p, :].astype(bf16),
                              w2_ref[o], preferred_element_type=f32)
    h2 = jnp.maximum(acc2 + b2_ref[...], 0.0).astype(bf16)     # (M2p, 64)

    # ---- conv3 (k=3, s=1, 1x1 out): reorder rows into (position, batch)
    #      blocks with one-hot S3, then 9 aligned (Bp,64)@(64,64) dots.
    g3 = jnp.dot(s3_ref[...], h2, preferred_element_type=f32)  # (9*Bp, 64)
    acc3 = jnp.dot(g3[0:Bp, :].astype(bf16), w3_ref[0],
                   preferred_element_type=f32)
    for p in range(1, KH3 * KW3):
        acc3 = acc3 + jnp.dot(g3[p * Bp:(p + 1) * Bp, :].astype(bf16),
                              w3_ref[p], preferred_element_type=f32)
    feat = jnp.maximum(acc3 + b3_ref[...], 0.0).astype(bf16)   # (Bp, 64)

    # ---- fused noisy value1 / advantage1 hidden layer (concatenated weights).
    h = jnp.dot(feat, wh1_ref[...], preferred_element_type=f32) + bh1_ref[...]
    h = jnp.maximum(h, 0.0)                                    # (Bp, 2*hidden)
    hv = h[:, :hidden].astype(bf16)                            # 128-aligned slices
    ha = h[:, hidden:].astype(bf16)

    # ---- second heads (atoms padded to 64 lanes; padded value-bias = -1e9
    #      so the softmax ignores pad lanes exactly).
    value = jnp.dot(hv, wv2_ref[...], preferred_element_type=f32) + bv2_ref[...]
    advs = [jnp.dot(ha, wa2_ref[a], preferred_element_type=f32) + ba2_ref[a]
            for a in range(num_actions)]                       # A x (Bp, 64)
    adv_mean = advs[0]
    for a in range(1, num_actions):
        adv_mean = adv_mean + advs[a]
    adv_mean = adv_mean * (1.0 / num_actions)

    # ---- dueling combine + softmax: all actions stacked along sublanes so a
    #      single max / exp / sum / reciprocal pass covers every action, and
    #      the result is written with ONE store.
    q = jnp.concatenate([value + advs[a] - adv_mean
                         for a in range(num_actions)], axis=0)  # (A*Bp, 64)
    q = q - jnp.max(q, axis=-1, keepdims=True)
    e = jnp.exp(q)
    inv = pl.reciprocal(jnp.sum(e, axis=-1, keepdims=True), approx=False)
    out_ref[...] = e * inv


# ------------------------- wrapper-side preparation --------------------------

def _im2col(x, kh, kw, stride):
    """(B,C,H,W) -> (B*OH*OW, C*KH*KW); column order (c, i, j) matches
    PyTorch's conv weight .reshape(OC, C*KH*KW)."""
    B, C, H, W = x.shape
    oh = (H - kh) // stride + 1
    ow = (W - kw) // stride + 1
    cols = []
    for i in range(kh):
        for j in range(kw):
            cols.append(x[:, :, i:i + stride * oh:stride, j:j + stride * ow:stride])
    p = jnp.stack(cols, axis=2)                        # (B, C, KH*KW, OH, OW)
    p = p.reshape(B, C * kh * kw, oh * ow)
    p = p.transpose(0, 2, 1).reshape(B * oh * ow, C * kh * kw)
    return p, oh, ow


def _build_gather_mats(B, oh1, ow1, oh2, ow2, kh2, kw2, s2, kh3, kw3):
    """One-hot gather matrices, built once on the host (baked as constants).

    S2 (kh2*kw2*M2p, B*oh1*ow1): row o*M2p + m is one-hot at the h1 row feeding
    conv2 output position m=(b,oy2,ox2) for kernel offset o=(i,j).
    S3 (kh3*kw3*Bp, M2p): row p*Bp + b is one-hot at h2 row (b, position p),
    reordering the full 3x3 map into (position, batch)-major aligned blocks.
    """
    m2 = B * oh2 * ow2
    m2p = ((m2 + 7) // 8) * 8
    S2 = np.zeros((kh2 * kw2 * m2p, B * oh1 * ow1), np.float32)
    for i in range(kh2):
        for j in range(kw2):
            o = i * kw2 + j
            for b in range(B):
                for oy in range(oh2):
                    for ox in range(ow2):
                        m = b * oh2 * ow2 + oy * ow2 + ox
                        r = b * oh1 * ow1 + (s2 * oy + i) * ow1 + (s2 * ox + j)
                        S2[o * m2p + m, r] = 1.0
    bp = CONV3_BATCH_PAD
    npos = kh3 * kw3
    S3 = np.zeros((npos * bp, m2p), np.float32)
    for p in range(npos):
        for b in range(B):
            S3[p * bp + b, b * oh2 * ow2 + p] = 1.0
    return jnp.asarray(S2, jnp.bfloat16), jnp.asarray(S3, jnp.bfloat16), m2p, bp


def prepare_kernel_params(params, num_actions, num_atoms):
    """Permute / concatenate / pad / cast the PyTorch-layout parameters once
    into the layouts the fused kernel consumes (bf16 matmul weights, fp32
    biases, atoms padded to N_ATOMS_PAD lanes)."""
    bf16 = jnp.bfloat16
    f32 = jnp.float32
    pad = N_ATOMS_PAD - num_atoms
    assert pad >= 0
    # conv1 as a flat (C*KH*KW, 32) matrix, K order (c, i, j); 1/255 folded in.
    w1 = (params["c1w"].reshape(params["c1w"].shape[0], -1).T
          * (1.0 / 255.0)).astype(bf16)
    b1 = params["c1b"].reshape(1, -1).astype(f32)
    # conv2 / conv3 as per-kernel-offset (KH*KW, IC, OC) stacks.
    w2 = params["c2w"].transpose(2, 3, 1, 0)
    w2 = w2.reshape(-1, w2.shape[2], w2.shape[3]).astype(bf16)      # (16, 32, 64)
    b2 = params["c2b"].reshape(1, -1).astype(f32)
    w3 = params["c3w"].transpose(2, 3, 1, 0)
    w3 = w3.reshape(-1, w3.shape[2], w3.shape[3]).astype(bf16)      # (9, 64, 64)
    b3 = params["c3b"].reshape(1, -1).astype(f32)
    # value1 / advantage1 concatenated (shared LHS -> one matmul).
    wh1 = jnp.concatenate([params["v1w"], params["a1w"]], axis=1).astype(bf16)
    bh1 = jnp.concatenate([params["v1b"], params["a1b"]]).reshape(1, -1).astype(f32)
    # value2 head, atoms padded; padded bias lanes = -1e9 -> softmax ignores.
    wv2 = jnp.pad(params["v2w"], ((0, 0), (0, pad))).astype(bf16)    # (512, 64)
    bv2 = jnp.pad(params["v2b"].reshape(1, -1), ((0, 0), (0, pad)),
                  constant_values=-1e9).astype(f32)
    # advantage2 head split per action: (A, 512, 64), bias (A, 1, 64).
    wa2 = params["a2w"].reshape(params["a2w"].shape[0], num_actions, num_atoms)
    wa2 = jnp.pad(wa2.transpose(1, 0, 2), ((0, 0), (0, 0), (0, pad))).astype(bf16)
    ba2 = jnp.pad(params["a2b"].reshape(num_actions, 1, num_atoms),
                  ((0, 0), (0, 0), (0, pad))).astype(f32)
    return (w1, b1, w2, b2, w3, b3, wh1, bh1, wv2, bv2, wa2, ba2)


def rainbow_forward(x, kparams, num_actions, num_atoms):
    B = x.shape[0]
    p1, oh1, ow1 = _im2col(x, 8, 8, 4)
    oh2, ow2 = (oh1 - 4) // 2 + 1, (ow1 - 4) // 2 + 1
    oh3, ow3 = oh2 - 3 + 1, ow2 - 3 + 1
    # TODO(synk): configs where the last conv output is larger than 1x1 need a
    # flatten-order permutation of the head weights (PyTorch flattens C,H,W).
    assert oh3 == 1 and ow3 == 1 and B <= CONV3_BATCH_PAD

    S2, S3, m2p, bp = _build_gather_mats(B, oh1, ow1, oh2, ow2, 4, 4, 2, 3, 3)

    hidden = kparams[6].shape[1] // 2          # wh1 is (feat, 2*hidden)
    vmem = pl.BlockSpec(memory_space=pltpu.MemorySpace.VMEM)
    kern = functools.partial(
        _rainbow_kernel, M2p=m2p, Bp=bp, KH2=4, KW2=4, KH3=3, KW3=3,
        num_actions=num_actions, hidden=hidden)

    out = pl.pallas_call(
        kern,
        out_shape=jax.ShapeDtypeStruct((num_actions * bp, N_ATOMS_PAD),
                                       jnp.float32),
        in_specs=[vmem] * 15,
        out_specs=vmem,
    )(p1.astype(jnp.bfloat16), S2, S3, *kparams)
    # rows are (action, padded batch); strip padding / reorder on the XLA side.
    out = out.reshape(num_actions, bp, N_ATOMS_PAD)[:, :B, :num_atoms]
    return out.transpose(1, 0, 2)


# ------------------------- deterministic parameters --------------------------

def _conv_params(key, oc, ic, k):
    k1, k2 = jax.random.split(key)
    fan_in = ic * k * k
    bound = 1.0 / math.sqrt(fan_in)
    w = jax.random.uniform(k1, (oc, ic, k, k), minval=-bound, maxval=bound)
    b = jax.random.uniform(k2, (oc,), minval=-bound, maxval=bound)
    return w.astype(jnp.float32), b.astype(jnp.float32)


def _noisy_linear_params(key, in_f, out_f, std_init=0.5):
    """Effective (W, b) = (mu + sigma*eps) with factorized gaussian noise.
    W is returned as (in_f, out_f) for x @ W."""
    k1, k2, k3, k4 = jax.random.split(key, 4)
    mu_range = 1.0 / math.sqrt(in_f)
    w_mu = jax.random.uniform(k1, (out_f, in_f), minval=-mu_range, maxval=mu_range)
    w_sigma = jnp.full((out_f, in_f), std_init / math.sqrt(in_f))
    b_mu = jax.random.uniform(k2, (out_f,), minval=-mu_range, maxval=mu_range)
    b_sigma = jnp.full((out_f,), std_init / math.sqrt(out_f))

    def scale_noise(v):
        return jnp.sign(v) * jnp.sqrt(jnp.abs(v))

    eps_in = scale_noise(jax.random.normal(k3, (in_f,)))
    eps_out = scale_noise(jax.random.normal(k4, (out_f,)))
    w = (w_mu + w_sigma * jnp.outer(eps_out, eps_in)).astype(jnp.float32)
    b = (b_mu + b_sigma * eps_out).astype(jnp.float32)
    return w.T, b


def init_rainbow_params(key, in_channels, feat_size, num_actions, num_atoms):
    ks = jax.random.split(key, 7)
    c1w, c1b = _conv_params(ks[0], 32, in_channels, 8)
    c2w, c2b = _conv_params(ks[1], 64, 32, 4)
    c3w, c3b = _conv_params(ks[2], 64, 64, 3)
    v1w, v1b = _noisy_linear_params(ks[3], feat_size, 512)
    v2w, v2b = _noisy_linear_params(ks[4], 512, num_atoms)
    a1w, a1b = _noisy_linear_params(ks[5], feat_size, 512)
    a2w, a2b = _noisy_linear_params(ks[6], 512, num_atoms * num_actions)
    return dict(c1w=c1w, c1b=c1b, c2w=c2w, c2b=c2b, c3w=c3w, c3b=c3b,
                v1w=v1w, v1b=v1b, v2w=v2w, v2b=v2b,
                a1w=a1w, a1b=a1b, a2w=a2w, a2b=a2b)


# ----------------------------- pure-JAX reference ----------------------------

def reference_forward(x, params, num_actions, num_atoms):
    B = x.shape[0]

    def conv(h, w, b, stride):
        out = jax.lax.conv_general_dilated(
            h, w, window_strides=(stride, stride), padding="VALID",
            dimension_numbers=("NCHW", "OIHW", "NCHW"))
        return jax.nn.relu(out + b.reshape(1, -1, 1, 1))

    h = conv(x / 255.0, params["c1w"], params["c1b"], 4)
    h = conv(h, params["c2w"], params["c2b"], 2)
    h = conv(h, params["c3w"], params["c3b"], 1)
    feat = h.reshape(B, -1)
    value = jax.nn.relu(feat @ params["v1w"] + params["v1b"])
    value = value @ params["v2w"] + params["v2b"]
    adv = jax.nn.relu(feat @ params["a1w"] + params["a1b"])
    adv = adv @ params["a2w"] + params["a2b"]
    value = value.reshape(B, 1, num_atoms)
    adv = adv.reshape(B, num_actions, num_atoms)
    q = value + adv - adv.mean(axis=1, keepdims=True)
    return jax.nn.softmax(q, axis=-1)


# ------------------------------------ main -----------------------------------

if __name__ == "__main__":
    # input_shape = (4, 36, 36):
    #   conv1(k8,s4): 36 -> 8 ; conv2(k4,s2): 8 -> 3 ; conv3(k3,s1): 3 -> 1
    #   feature_size = 64 * 1 * 1 = 64
    batch = 2
    in_channels, H, W = 4, 36, 36
    num_actions = 6
    num_atoms = 51
    feat_size = 64

    key = jax.random.PRNGKey(0)
    k_x, k_p = jax.random.split(key)
    x = jax.random.uniform(k_x, (batch, in_channels, H, W),
                           minval=0.0, maxval=255.0, dtype=jnp.float32)
    params = init_rainbow_params(k_p, in_channels, feat_size, num_actions, num_atoms)
    kparams = prepare_kernel_params(params, num_actions, num_atoms)

    fwd = jax.jit(functools.partial(rainbow_forward,
                                    num_actions=num_actions, num_atoms=num_atoms))
    out = jax.block_until_ready(fwd(x, kparams))

    assert out.shape == (batch, num_actions, num_atoms)
    # distribution sanity: softmax over atoms sums to 1 (exact reciprocal).
    assert bool(jnp.all(jnp.abs(jnp.sum(out, axis=-1) - 1.0) < 1e-3))
    # parity vs. pure-JAX fp32 reference (bf16 matmul inputs -> loose tol).
    ref = reference_forward(x, params, num_actions, num_atoms)
    assert float(jnp.max(jnp.abs(out - ref))) < 2e-2
    print("KERNEL_OK")
</pallas_src>

<mosaic_0001>
module attributes {stable_mosaic.version = 11 : i64} {
  func.func @_rainbow_kernel(%arg0: memref<128x256xbf16, #tpu.memory_space<vmem>>, %arg1: memref<384x128xbf16, #tpu.memory_space<vmem>>, %arg2: memref<72x24xbf16, #tpu.memory_space<vmem>>, %arg3: memref<256x32xbf16, #tpu.memory_space<vmem>>, %arg4: memref<1x32xf32, #tpu.memory_space<vmem>>, %arg5: memref<16x32x64xbf16, #tpu.memory_space<vmem>>, %arg6: memref<1x64xf32, #tpu.memory_space<vmem>>, %arg7: memref<9x64x64xbf16, #tpu.memory_space<vmem>>, %arg8: memref<1x64xf32, #tpu.memory_space<vmem>>, %arg9: memref<64x1024xbf16, #tpu.memory_space<vmem>>, %arg10: memref<1x1024xf32, #tpu.memory_space<vmem>>, %arg11: memref<512x64xbf16, #tpu.memory_space<vmem>>, %arg12: memref<1x64xf32, #tpu.memory_space<vmem>>, %arg13: memref<6x512x64xbf16, #tpu.memory_space<vmem>>, %arg14: memref<6x1x64xf32, #tpu.memory_space<vmem>>, %arg15: memref<48x64xf32, #tpu.memory_space<vmem>>) attributes {dimension_semantics = [], scalar_prefetch = 0 : i64, scratch_operands = 0 : i64, tpu.core_type = #tpu.core_type<tc>} {
    %c0 = arith.constant 0 : index
    %c0_0 = arith.constant 0 : index
    %0 = vector.load %arg0[%c0, %c0_0] : memref<128x256xbf16, #tpu.memory_space<vmem>>, vector<128x256xbf16>
    %c0_1 = arith.constant 0 : index
    %c0_2 = arith.constant 0 : index
    %1 = vector.load %arg3[%c0_1, %c0_2] : memref<256x32xbf16, #tpu.memory_space<vmem>>, vector<256x32xbf16>
    %cst = arith.constant dense<0.000000e+00> : vector<128x32xf32>
    %2 = tpu.matmul %0, %1, %cst {dimension_numbers = #tpu.dot_dimension_numbers<[1], [0], [0], [1], [0, 0, 1, 1], [], []>} : vector<128x256xbf16>, vector<256x32xbf16>, vector<128x32xf32> -> vector<128x32xf32>
    %c0_3 = arith.constant 0 : index
    %c0_4 = arith.constant 0 : index
    %3 = vector.load %arg4[%c0_3, %c0_4] : memref<1x32xf32, #tpu.memory_space<vmem>>, vector<1x32xf32>
    %4 = vector.broadcast %3 : vector<1x32xf32> to vector<128x32xf32>
    %5 = arith.addf %2, %4 : vector<128x32xf32>
    %cst_5 = arith.constant 0.000000e+00 : f32
    %6 = vector.broadcast %cst_5 : f32 to vector<128x32xf32>
    %7 = arith.maximumf %5, %6 : vector<128x32xf32>
    %8 = arith.truncf %7 : vector<128x32xf32> to vector<128x32xbf16>
    %c0_6 = arith.constant 0 : index
    %c0_7 = arith.constant 0 : index
    %9 = vector.load %arg1[%c0_6, %c0_7] : memref<384x128xbf16, #tpu.memory_space<vmem>>, vector<384x128xbf16>
    %cst_8 = arith.constant dense<0.000000e+00> : vector<384x32xf32>
    %10 = tpu.matmul %9, %8, %cst_8 {dimension_numbers = #tpu.dot_dimension_numbers<[1], [0], [0], [1], [0, 0, 1, 1], [], []>} : vector<384x128xbf16>, vector<128x32xbf16>, vector<384x32xf32> -> vector<384x32xf32>
    %11 = vector.extract_strided_slice %10 {offsets = [0, 0], sizes = [24, 32], strides = [1, 1]} : vector<384x32xf32> to vector<24x32xf32>
    %12 = arith.truncf %11 : vector<24x32xf32> to vector<24x32xbf16>
    %c0_9 = arith.constant 0 : index
    %c0_10 = arith.constant 0 : index
    %c0_11 = arith.constant 0 : index
    %13 = vector.load %arg5[%c0_9, %c0_10, %c0_11] : memref<16x32x64xbf16, #tpu.memory_space<vmem>>, vector<1x32x64xbf16>
    %14 = vector.shape_cast %13 : vector<1x32x64xbf16> to vector<32x64xbf16>
    %cst_12 = arith.constant dense<0.000000e+00> : vector<24x64xf32>
    %15 = tpu.matmul %12, %14, %cst_12 {dimension_numbers = #tpu.dot_dimension_numbers<[1], [0], [0], [1], [0, 0, 1, 1], [], []>} : vector<24x32xbf16>, vector<32x64xbf16>, vector<24x64xf32> -> vector<24x64xf32>
    %16 = vector.extract_strided_slice %10 {offsets = [24, 0], sizes = [24, 32], strides = [1, 1]} : vector<384x32xf32> to vector<24x32xf32>
    %17 = arith.truncf %16 : vector<24x32xf32> to vector<24x32xbf16>
    %c1 = arith.constant 1 : index
    %c0_13 = arith.constant 0 : index
    %c0_14 = arith.constant 0 : index
    %18 = vector.load %arg5[%c1, %c0_13, %c0_14] : memref<16x32x64xbf16, #tpu.memory_space<vmem>>, vector<1x32x64xbf16>
    %19 = vector.shape_cast %18 : vector<1x32x64xbf16> to vector<32x64xbf16>
    %cst_15 = arith.constant dense<0.000000e+00> : vector<24x64xf32>
    %20 = tpu.matmul %17, %19, %cst_15 {dimension_numbers = #tpu.dot_dimension_numbers<[1], [0], [0], [1], [0, 0, 1, 1], [], []>} : vector<24x32xbf16>, vector<32x64xbf16>, vector<24x64xf32> -> vector<24x64xf32>
    %21 = arith.addf %15, %20 : vector<24x64xf32>
    %22 = vector.extract_strided_slice %10 {offsets = [48, 0], sizes = [24, 32], strides = [1, 1]} : vector<384x32xf32> to vector<24x32xf32>
    %23 = arith.truncf %22 : vector<24x32xf32> to vector<24x32xbf16>
    %c2 = arith.constant 2 : index
    %c0_16 = arith.constant 0 : index
    %c0_17 = arith.constant 0 : index
    %24 = vector.load %arg5[%c2, %c0_16, %c0_17] : memref<16x32x64xbf16, #tpu.memory_space<vmem>>, vector<1x32x64xbf16>
    %25 = vector.shape_cast %24 : vector<1x32x64xbf16> to vector<32x64xbf16>
    %cst_18 = arith.constant dense<0.000000e+00> : vector<24x64xf32>
    %26 = tpu.matmul %23, %25, %cst_18 {dimension_numbers = #tpu.dot_dimension_numbers<[1], [0], [0], [1], [0, 0, 1, 1], [], []>} : vector<24x32xbf16>, vector<32x64xbf16>, vector<24x64xf32> -> vector<24x64xf32>
    %27 = arith.addf %21, %26 : vector<24x64xf32>
    %28 = vector.extract_strided_slice %10 {offsets = [72, 0], sizes = [24, 32], strides = [1, 1]} : vector<384x32xf32> to vector<24x32xf32>
    %29 = arith.truncf %28 : vector<24x32xf32> to vector<24x32xbf16>
    %c3 = arith.constant 3 : index
    %c0_19 = arith.constant 0 : index
    %c0_20 = arith.constant 0 : index
    %30 = vector.load %arg5[%c3, %c0_19, %c0_20] : memref<16x32x64xbf16, #tpu.memory_space<vmem>>, vector<1x32x64xbf16>
    %31 = vector.shape_cast %30 : vector<1x32x64xbf16> to vector<32x64xbf16>
    %cst_21 = arith.constant dense<0.000000e+00> : vector<24x64xf32>
    %32 = tpu.matmul %29, %31, %cst_21 {dimension_numbers = #tpu.dot_dimension_numbers<[1], [0], [0], [1], [0, 0, 1, 1], [], []>} : vector<24x32xbf16>, vector<32x64xbf16>, vector<24x64xf32> -> vector<24x64xf32>
    %33 = arith.addf %27, %32 : vector<24x64xf32>
    %34 = vector.extract_strided_slice %10 {offsets = [96, 0], sizes = [24, 32], strides = [1, 1]} : vector<384x32xf32> to vector<24x32xf32>
    %35 = arith.truncf %34 : vector<24x32xf32> to vector<24x32xbf16>
    %c4 = arith.constant 4 : index
    %c0_22 = arith.constant 0 : index
    %c0_23 = arith.constant 0 : index
    %36 = vector.load %arg5[%c4, %c0_22, %c0_23] : memref<16x32x64xbf16, #tpu.memory_space<vmem>>, vector<1x32x64xbf16>
    %37 = vector.shape_cast %36 : vector<1x32x64xbf16> to vector<32x64xbf16>
    %cst_24 = arith.constant dense<0.000000e+00> : vector<24x64xf32>
    %38 = tpu.matmul %35, %37, %cst_24 {dimension_numbers = #tpu.dot_dimension_numbers<[1], [0], [0], [1], [0, 0, 1, 1], [], []>} : vector<24x32xbf16>, vector<32x64xbf16>, vector<24x64xf32> -> vector<24x64xf32>
    %39 = arith.addf %33, %38 : vector<24x64xf32>
    %40 = vector.extract_strided_slice %10 {offsets = [120, 0], sizes = [24, 32], strides = [1, 1]} : vector<384x32xf32> to vector<24x32xf32>
    %41 = arith.truncf %40 : vector<24x32xf32> to vector<24x32xbf16>
    %c5 = arith.constant 5 : index
    %c0_25 = arith.constant 0 : index
    %c0_26 = arith.constant 0 : index
    %42 = vector.load %arg5[%c5, %c0_25, %c0_26] : memref<16x32x64xbf16, #tpu.memory_space<vmem>>, vector<1x32x64xbf16>
    %43 = vector.shape_cast %42 : vector<1x32x64xbf16> to vector<32x64xbf16>
    %cst_27 = arith.constant dense<0.000000e+00> : vector<24x64xf32>
    %44 = tpu.matmul %41, %43, %cst_27 {dimension_numbers = #tpu.dot_dimension_numbers<[1], [0], [0], [1], [0, 0, 1, 1], [], []>} : vector<24x32xbf16>, vector<32x64xbf16>, vector<24x64xf32> -> vector<24x64xf32>
    %45 = arith.addf %39, %44 : vector<24x64xf32>
    %46 = vector.extract_strided_slice %10 {offsets = [144, 0], sizes = [24, 32], strides = [1, 1]} : vector<384x32xf32> to vector<24x32xf32>
    %47 = arith.truncf %46 : vector<24x32xf32> to vector<24x32xbf16>
    %c6 = arith.constant 6 : index
    %c0_28 = arith.constant 0 : index
    %c0_29 = arith.constant 0 : index
    %48 = vector.load %arg5[%c6, %c0_28, %c0_29] : memref<16x32x64xbf16, #tpu.memory_space<vmem>>, vector<1x32x64xbf16>
    %49 = vector.shape_cast %48 : vector<1x32x64xbf16> to vector<32x64xbf16>
    %cst_30 = arith.constant dense<0.000000e+00> : vector<24x64xf32>
    %50 = tpu.matmul %47, %49, %cst_30 {dimension_numbers = #tpu.dot_dimension_numbers<[1], [0], [0], [1], [0, 0, 1, 1], [], []>} : vector<24x32xbf16>, vector<32x64xbf16>, vector<24x64xf32> -> vector<24x64xf32>
    %51 = arith.addf %45, %50 : vector<24x64xf32>
    %52 = vector.extract_strided_slice %10 {offsets = [168, 0], sizes = [24, 32], strides = [1, 1]} : vector<384x32xf32> to vector<24x32xf32>
    %53 = arith.truncf %52 : vector<24x32xf32> to vector<24x32xbf16>
    %c7 = arith.constant 7 : index
    %c0_31 = arith.constant 0 : index
    %c0_32 = arith.constant 0 : index
    %54 = vector.load %arg5[%c7, %c0_31, %c0_32] : memref<16x32x64xbf16, #tpu.memory_space<vmem>>, vector<1x32x64xbf16>
    %55 = vector.shape_cast %54 : vector<1x32x64xbf16> to vector<32x64xbf16>
    %cst_33 = arith.constant dense<0.000000e+00> : vector<24x64xf32>
    %56 = tpu.matmul %53, %55, %cst_33 {dimension_numbers = #tpu.dot_dimension_numbers<[1], [0], [0], [1], [0, 0, 1, 1], [], []>} : vector<24x32xbf16>, vector<32x64xbf16>, vector<24x64xf32> -> vector<24x64xf32>
    %57 = arith.addf %51, %56 : vector<24x64xf32>
    %58 = vector.extract_strided_slice %10 {offsets = [192, 0], sizes = [24, 32], strides = [1, 1]} : vector<384x32xf32> to vector<24x32xf32>
    %59 = arith.truncf %58 : vector<24x32xf32> to vector<24x32xbf16>
    %c8 = arith.constant 8 : index
    %c0_34 = arith.constant 0 : index
    %c0_35 = arith.constant 0 : index
    %60 = vector.load %arg5[%c8, %c0_34, %c0_35] : memref<16x32x64xbf16, #tpu.memory_space<vmem>>, vector<1x32x64xbf16>
    %61 = vector.shape_cast %60 : vector<1x32x64xbf16> to vector<32x64xbf16>
    %cst_36 = arith.constant dense<0.000000e+00> : vector<24x64xf32>
    %62 = tpu.matmul %59, %61, %cst_36 {dimension_numbers = #tpu.dot_dimension_numbers<[1], [0], [0], [1], [0, 0, 1, 1], [], []>} : vector<24x32xbf16>, vector<32x64xbf16>, vector<24x64xf32> -> vector<24x64xf32>
    %63 = arith.addf %57, %62 : vector<24x64xf32>
    %64 = vector.extract_strided_slice %10 {offsets = [216, 0], sizes = [24, 32], strides = [1, 1]} : vector<384x32xf32> to vector<24x32xf32>
    %65 = arith.truncf %64 : vector<24x32xf32> to vector<24x32xbf16>
    %c9 = arith.constant 9 : index
    %c0_37 = arith.constant 0 : index
    %c0_38 = arith.constant 0 : index
    %66 = vector.load %arg5[%c9, %c0_37, %c0_38] : memref<16x32x64xbf16, #tpu.memory_space<vmem>>, vector<1x32x64xbf16>
    %67 = vector.shape_cast %66 : vector<1x32x64xbf16> to vector<32x64xbf16>
    %cst_39 = arith.constant dense<0.000000e+00> : vector<24x64xf32>
    %68 = tpu.matmul %65, %67, %cst_39 {dimension_numbers = #tpu.dot_dimension_numbers<[1], [0], [0], [1], [0, 0, 1, 1], [], []>} : vector<24x32xbf16>, vector<32x64xbf16>, vector<24x64xf32> -> vector<24x64xf32>
    %69 = arith.addf %63, %68 : vector<24x64xf32>
    %70 = vector.extract_strided_slice %10 {offsets = [240, 0], sizes = [24, 32], strides = [1, 1]} : vector<384x32xf32> to vector<24x32xf32>
    %71 = arith.truncf %70 : vector<24x32xf32> to vector<24x32xbf16>
    %c10 = arith.constant 10 : index
    %c0_40 = arith.constant 0 : index
    %c0_41 = arith.constant 0 : index
    %72 = vector.load %arg5[%c10, %c0_40, %c0_41] : memref<16x32x64xbf16, #tpu.memory_space<vmem>>, vector<1x32x64xbf16>
    %73 = vector.shape_cast %72 : vector<1x32x64xbf16> to vector<32x64xbf16>
    %cst_42 = arith.constant dense<0.000000e+00> : vector<24x64xf32>
    %74 = tpu.matmul %71, %73, %cst_42 {dimension_numbers = #tpu.dot_dimension_numbers<[1], [0], [0], [1], [0, 0, 1, 1], [], []>} : vector<24x32xbf16>, vector<32x64xbf16>, vector<24x64xf32> -> vector<24x64xf32>
    %75 = arith.addf %69, %74 : vector<24x64xf32>
    %76 = vector.extract_strided_slice %10 {offsets = [264, 0], sizes = [24, 32], strides = [1, 1]} : vector<384x32xf32> to vector<24x32xf32>
    %77 = arith.truncf %76 : vector<24x32xf32> to vector<24x32xbf16>
    %c11 = arith.constant 11 : index
    %c0_43 = arith.constant 0 : index
    %c0_44 = arith.constant 0 : index
    %78 = vector.load %arg5[%c11, %c0_43, %c0_44] : memref<16x32x64xbf16, #tpu.memory_space<vmem>>, vector<1x32x64xbf16>
    %79 = vector.shape_cast %78 : vector<1x32x64xbf16> to vector<32x64xbf16>
    %cst_45 = arith.constant dense<0.000000e+00> : vector<24x64xf32>
    %80 = tpu.matmul %77, %79, %cst_45 {dimension_numbers = #tpu.dot_dimension_numbers<[1], [0], [0], [1], [0, 0, 1, 1], [], []>} : vector<24x32xbf16>, vector<32x64xbf16>, vector<24x64xf32> -> vector<24x64xf32>
    %81 = arith.addf %75, %80 : vector<24x64xf32>
    %82 = vector.extract_strided_slice %10 {offsets = [288, 0], sizes = [24, 32], strides = [1, 1]} : vector<384x32xf32> to vector<24x32xf32>
    %83 = arith.truncf %82 : vector<24x32xf32> to vector<24x32xbf16>
    %c12 = arith.constant 12 : index
    %c0_46 = arith.constant 0 : index
    %c0_47 = arith.constant 0 : index
    %84 = vector.load %arg5[%c12, %c0_46, %c0_47] : memref<16x32x64xbf16, #tpu.memory_space<vmem>>, vector<1x32x64xbf16>
    %85 = vector.shape_cast %84 : vector<1x32x64xbf16> to vector<32x64xbf16>
    %cst_48 = arith.constant dense<0.000000e+00> : vector<24x64xf32>
    %86 = tpu.matmul %83, %85, %cst_48 {dimension_numbers = #tpu.dot_dimension_numbers<[1], [0], [0], [1], [0, 0, 1, 1], [], []>} : vector<24x32xbf16>, vector<32x64xbf16>, vector<24x64xf32> -> vector<24x64xf32>
    %87 = arith.addf %81, %86 : vector<24x64xf32>
    %88 = vector.extract_strided_slice %10 {offsets = [312, 0], sizes = [24, 32], strides = [1, 1]} : vector<384x32xf32> to vector<24x32xf32>
    %89 = arith.truncf %88 : vector<24x32xf32> to vector<24x32xbf16>
    %c13 = arith.constant 13 : index
    %c0_49 = arith.constant 0 : index
    %c0_50 = arith.constant 0 : index
    %90 = vector.load %arg5[%c13, %c0_49, %c0_50] : memref<16x32x64xbf16, #tpu.memory_space<vmem>>, vector<1x32x64xbf16>
    %91 = vector.shape_cast %90 : vector<1x32x64xbf16> to vector<32x64xbf16>
    %cst_51 = arith.constant dense<0.000000e+00> : vector<24x64xf32>
    %92 = tpu.matmul %89, %91, %cst_51 {dimension_numbers = #tpu.dot_dimension_numbers<[1], [0], [0], [1], [0, 0, 1, 1], [], []>} : vector<24x32xbf16>, vector<32x64xbf16>, vector<24x64xf32> -> vector<24x64xf32>
    %93 = arith.addf %87, %92 : vector<24x64xf32>
    %94 = vector.extract_strided_slice %10 {offsets = [336, 0], sizes = [24, 32], strides = [1, 1]} : vector<384x32xf32> to vector<24x32xf32>
    %95 = arith.truncf %94 : vector<24x32xf32> to vector<24x32xbf16>
    %c14 = arith.constant 14 : index
    %c0_52 = arith.constant 0 : index
    %c0_53 = arith.constant 0 : index
    %96 = vector.load %arg5[%c14, %c0_52, %c0_53] : memref<16x32x64xbf16, #tpu.memory_space<vmem>>, vector<1x32x64xbf16>
    %97 = vector.shape_cast %96 : vector<1x32x64xbf16> to vector<32x64xbf16>
    %cst_54 = arith.constant dense<0.000000e+00> : vector<24x64xf32>
    %98 = tpu.matmul %95, %97, %cst_54 {dimension_numbers = #tpu.dot_dimension_numbers<[1], [0], [0], [1], [0, 0, 1, 1], [], []>} : vector<24x32xbf16>, vector<32x64xbf16>, vector<24x64xf32> -> vector<24x64xf32>
    %99 = arith.addf %93, %98 : vector<24x64xf32>
    %100 = vector.extract_strided_slice %10 {offsets = [360, 0], sizes = [24, 32], strides = [1, 1]} : vector<384x32xf32> to vector<24x32xf32>
    %101 = arith.truncf %100 : vector<24x32xf32> to vector<24x32xbf16>
    %c15 = arith.constant 15 : index
    %c0_55 = arith.constant 0 : index
    %c0_56 = arith.constant 0 : index
    %102 = vector.load %arg5[%c15, %c0_55, %c0_56] : memref<16x32x64xbf16, #tpu.memory_space<vmem>>, vector<1x32x64xbf16>
    %103 = vector.shape_cast %102 : vector<1x32x64xbf16> to vector<32x64xbf16>
    %cst_57 = arith.constant dense<0.000000e+00> : vector<24x64xf32>
    %104 = tpu.matmul %101, %103, %cst_57 {dimension_numbers = #tpu.dot_dimension_numbers<[1], [0], [0], [1], [0, 0, 1, 1], [], []>} : vector<24x32xbf16>, vector<32x64xbf16>, vector<24x64xf32> -> vector<24x64xf32>
    %105 = arith.addf %99, %104 : vector<24x64xf32>
    %c0_58 = arith.constant 0 : index
    %c0_59 = arith.constant 0 : index
    %106 = vector.load %arg6[%c0_58, %c0_59] : memref<1x64xf32, #tpu.memory_space<vmem>>, vector<1x64xf32>
    %107 = vector.broadcast %106 : vector<1x64xf32> to vector<24x64xf32>
    %108 = arith.addf %105, %107 : vector<24x64xf32>
    %cst_60 = arith.constant 0.000000e+00 : f32
    %109 = vector.broadcast %cst_60 : f32 to vector<24x64xf32>
    %110 = arith.maximumf %108, %109 : vector<24x64xf32>
    %111 = arith.truncf %110 : vector<24x64xf32> to vector<24x64xbf16>
    %c0_61 = arith.constant 0 : index
    %c0_62 = arith.constant 0 : index
    %112 = vector.load %arg2[%c0_61, %c0_62] : memref<72x24xbf16, #tpu.memory_space<vmem>>, vector<72x24xbf16>
    %cst_63 = arith.constant dense<0.000000e+00> : vector<72x64xf32>
    %113 = tpu.matmul %112, %111, %cst_63 {dimension_numbers = #tpu.dot_dimension_numbers<[1], [0], [0], [1], [0, 0, 1, 1], [], []>} : vector<72x24xbf16>, vector<24x64xbf16>, vector<72x64xf32> -> vector<72x64xf32>
    %114 = vector.extract_strided_slice %113 {offsets = [0, 0], sizes = [8, 64], strides = [1, 1]} : vector<72x64xf32> to vector<8x64xf32>
    %115 = arith.truncf %114 : vector<8x64xf32> to vector<8x64xbf16>
    %c0_64 = arith.constant 0 : index
    %c0_65 = arith.constant 0 : index
    %c0_66 = arith.constant 0 : index
    %116 = vector.load %arg7[%c0_64, %c0_65, %c0_66] : memref<9x64x64xbf16, #tpu.memory_space<vmem>>, vector<1x64x64xbf16>
    %117 = vector.shape_cast %116 : vector<1x64x64xbf16> to vector<64x64xbf16>
    %cst_67 = arith.constant dense<0.000000e+00> : vector<8x64xf32>
    %118 = tpu.matmul %115, %117, %cst_67 {dimension_numbers = #tpu.dot_dimension_numbers<[1], [0], [0], [1], [0, 0, 1, 1], [], []>} : vector<8x64xbf16>, vector<64x64xbf16>, vector<8x64xf32> -> vector<8x64xf32>
    %119 = vector.extract_strided_slice %113 {offsets = [8, 0], sizes = [8, 64], strides = [1, 1]} : vector<72x64xf32> to vector<8x64xf32>
    %120 = arith.truncf %119 : vector<8x64xf32> to vector<8x64xbf16>
    %c1_68 = arith.constant 1 : index
    %c0_69 = arith.constant 0 : index
    %c0_70 = arith.constant 0 : index
    %121 = vector.load %arg7[%c1_68, %c0_69, %c0_70] : memref<9x64x64xbf16, #tpu.memory_space<vmem>>, vector<1x64x64xbf16>
    %122 = vector.shape_cast %121 : vector<1x64x64xbf16> to vector<64x64xbf16>
    %cst_71 = arith.constant dense<0.000000e+00> : vector<8x64xf32>
    %123 = tpu.matmul %120, %122, %cst_71 {dimension_numbers = #tpu.dot_dimension_numbers<[1], [0], [0], [1], [0, 0, 1, 1], [], []>} : vector<8x64xbf16>, vector<64x64xbf16>, vector<8x64xf32> -> vector<8x64xf32>
    %124 = arith.addf %118, %123 : vector<8x64xf32>
    %125 = vector.extract_strided_slice %113 {offsets = [16, 0], sizes = [8, 64], strides = [1, 1]} : vector<72x64xf32> to vector<8x64xf32>
    %126 = arith.truncf %125 : vector<8x64xf32> to vector<8x64xbf16>
    %c2_72 = arith.constant 2 : index
    %c0_73 = arith.constant 0 : index
    %c0_74 = arith.constant 0 : index
    %127 = vector.load %arg7[%c2_72, %c0_73, %c0_74] : memref<9x64x64xbf16, #tpu.memory_space<vmem>>, vector<1x64x64xbf16>
    %128 = vector.shape_cast %127 : vector<1x64x64xbf16> to vector<64x64xbf16>
    %cst_75 = arith.constant dense<0.000000e+00> : vector<8x64xf32>
    %129 = tpu.matmul %126, %128, %cst_75 {dimension_numbers = #tpu.dot_dimension_numbers<[1], [0], [0], [1], [0, 0, 1, 1], [], []>} : vector<8x64xbf16>, vector<64x64xbf16>, vector<8x64xf32> -> vector<8x64xf32>
    %130 = arith.addf %124, %129 : vector<8x64xf32>
    %131 = vector.extract_strided_slice %113 {offsets = [24, 0], sizes = [8, 64], strides = [1, 1]} : vector<72x64xf32> to vector<8x64xf32>
    %132 = arith.truncf %131 : vector<8x64xf32> to vector<8x64xbf16>
    %c3_76 = arith.constant 3 : index
    %c0_77 = arith.constant 0 : index
    %c0_78 = arith.constant 0 : index
    %133 = vector.load %arg7[%c3_76, %c0_77, %c0_78] : memref<9x64x64xbf16, #tpu.memory_space<vmem>>, vector<1x64x64xbf16>
    %134 = vector.shape_cast %133 : vector<1x64x64xbf16> to vector<64x64xbf16>
    %cst_79 = arith.constant dense<0.000000e+00> : vector<8x64xf32>
    %135 = tpu.matmul %132, %134, %cst_79 {dimension_numbers = #tpu.dot_dimension_numbers<[1], [0], [0], [1], [0, 0, 1, 1], [], []>} : vector<8x64xbf16>, vector<64x64xbf16>, vector<8x64xf32> -> vector<8x64xf32>
    %136 = arith.addf %130, %135 : vector<8x64xf32>
    %137 = vector.extract_strided_slice %113 {offsets = [32, 0], sizes = [8, 64], strides = [1, 1]} : vector<72x64xf32> to vector<8x64xf32>
    %138 = arith.truncf %137 : vector<8x64xf32> to vector<8x64xbf16>
    %c4_80 = arith.constant 4 : index
    %c0_81 = arith.constant 0 : index
    %c0_82 = arith.constant 0 : index
    %139 = vector.load %arg7[%c4_80, %c0_81, %c0_82] : memref<9x64x64xbf16, #tpu.memory_space<vmem>>, vector<1x64x64xbf16>
    %140 = vector.shape_cast %139 : vector<1x64x64xbf16> to vector<64x64xbf16>
    %cst_83 = arith.constant dense<0.000000e+00> : vector<8x64xf32>
    %141 = tpu.matmul %138, %140, %cst_83 {dimension_numbers = #tpu.dot_dimension_numbers<[1], [0], [0], [1], [0, 0, 1, 1], [], []>} : vector<8x64xbf16>, vector<64x64xbf16>, vector<8x64xf32> -> vector<8x64xf32>
    %142 = arith.addf %136, %141 : vector<8x64xf32>
    %143 = vector.extract_strided_slice %113 {offsets = [40, 0], sizes = [8, 64], strides = [1, 1]} : vector<72x64xf32> to vector<8x64xf32>
    %144 = arith.truncf %143 : vector<8x64xf32> to vector<8x64xbf16>
    %c5_84 = arith.constant 5 : index
    %c0_85 = arith.constant 0 : index
    %c0_86 = arith.constant 0 : index
    %145 = vector.load %arg7[%c5_84, %c0_85, %c0_86] : memref<9x64x64xbf16, #tpu.memory_space<vmem>>, vector<1x64x64xbf16>
    %146 = vector.shape_cast %145 : vector<1x64x64xbf16> to vector<64x64xbf16>
    %cst_87 = arith.constant dense<0.000000e+00> : vector<8x64xf32>
    %147 = tpu.matmul %144, %146, %cst_87 {dimension_numbers = #tpu.dot_dimension_numbers<[1], [0], [0], [1], [0, 0, 1, 1], [], []>} : vector<8x64xbf16>, vector<64x64xbf16>, vector<8x64xf32> -> vector<8x64xf32>
    %148 = arith.addf %142, %147 : vector<8x64xf32>
    %149 = vector.extract_strided_slice %113 {offsets = [48, 0], sizes = [8, 64], strides = [1, 1]} : vector<72x64xf32> to vector<8x64xf32>
    %150 = arith.truncf %149 : vector<8x64xf32> to vector<8x64xbf16>
    %c6_88 = arith.constant 6 : index
    %c0_89 = arith.constant 0 : index
    %c0_90 = arith.constant 0 : index
    %151 = vector.load %arg7[%c6_88, %c0_89, %c0_90] : memref<9x64x64xbf16, #tpu.memory_space<vmem>>, vector<1x64x64xbf16>
    %152 = vector.shape_cast %151 : vector<1x64x64xbf16> to vector<64x64xbf16>
    %cst_91 = arith.constant dense<0.000000e+00> : vector<8x64xf32>
    %153 = tpu.matmul %150, %152, %cst_91 {dimension_numbers = #tpu.dot_dimension_numbers<[1], [0], [0], [1], [0, 0, 1, 1], [], []>} : vector<8x64xbf16>, vector<64x64xbf16>, vector<8x64xf32> -> vector<8x64xf32>
    %154 = arith.addf %148, %153 : vector<8x64xf32>
    %155 = vector.extract_strided_slice %113 {offsets = [56, 0], sizes = [8, 64], strides = [1, 1]} : vector<72x64xf32> to vector<8x64xf32>
    %156 = arith.truncf %155 : vector<8x64xf32> to vector<8x64xbf16>
    %c7_92 = arith.constant 7 : index
    %c0_93 = arith.constant 0 : index
    %c0_94 = arith.constant 0 : index
    %157 = vector.load %arg7[%c7_92, %c0_93, %c0_94] : memref<9x64x64xbf16, #tpu.memory_space<vmem>>, vector<1x64x64xbf16>
    %158 = vector.shape_cast %157 : vector<1x64x64xbf16> to vector<64x64xbf16>
    %cst_95 = arith.constant dense<0.000000e+00> : vector<8x64xf32>
    %159 = tpu.matmul %156, %158, %cst_95 {dimension_numbers = #tpu.dot_dimension_numbers<[1], [0], [0], [1], [0, 0, 1, 1], [], []>} : vector<8x64xbf16>, vector<64x64xbf16>, vector<8x64xf32> -> vector<8x64xf32>
    %160 = arith.addf %154, %159 : vector<8x64xf32>
    %161 = vector.extract_strided_slice %113 {offsets = [64, 0], sizes = [8, 64], strides = [1, 1]} : vector<72x64xf32> to vector<8x64xf32>
    %162 = arith.truncf %161 : vector<8x64xf32> to vector<8x64xbf16>
    %c8_96 = arith.constant 8 : index
    %c0_97 = arith.constant 0 : index
    %c0_98 = arith.constant 0 : index
    %163 = vector.load %arg7[%c8_96, %c0_97, %c0_98] : memref<9x64x64xbf16, #tpu.memory_space<vmem>>, vector<1x64x64xbf16>
    %164 = vector.shape_cast %163 : vector<1x64x64xbf16> to vector<64x64xbf16>
    %cst_99 = arith.constant dense<0.000000e+00> : vector<8x64xf32>
    %165 = tpu.matmul %162, %164, %cst_99 {dimension_numbers = #tpu.dot_dimension_numbers<[1], [0], [0], [1], [0, 0, 1, 1], [], []>} : vector<8x64xbf16>, vector<64x64xbf16>, vector<8x64xf32> -> vector<8x64xf32>
    %166 = arith.addf %160, %165 : vector<8x64xf32>
    %c0_100 = arith.constant 0 : index
    %c0_101 = arith.constant 0 : index
    %167 = vector.load %arg8[%c0_100, %c0_101] : memref<1x64xf32, #tpu.memory_space<vmem>>, vector<1x64xf32>
    %168 = vector.broadcast %167 : vector<1x64xf32> to vector<8x64xf32>
    %169 = arith.addf %166, %168 : vector<8x64xf32>
    %cst_102 = arith.constant 0.000000e+00 : f32
    %170 = vector.broadcast %cst_102 : f32 to vector<8x64xf32>
    %171 = arith.maximumf %169, %170 : vector<8x64xf32>
    %172 = arith.truncf %171 : vector<8x64xf32> to vector<8x64xbf16>
    %c0_103 = arith.constant 0 : index
    %c0_104 = arith.constant 0 : index
    %173 = vector.load %arg9[%c0_103, %c0_104] : memref<64x1024xbf16, #tpu.memory_space<vmem>>, vector<64x1024xbf16>
    %cst_105 = arith.constant dense<0.000000e+00> : vector<8x1024xf32>
    %174 = tpu.matmul %172, %173, %cst_105 {dimension_numbers = #tpu.dot_dimension_numbers<[1], [0], [0], [1], [0, 0, 1, 1], [], []>} : vector<8x64xbf16>, vector<64x1024xbf16>, vector<8x1024xf32> -> vector<8x1024xf32>
    %c0_106 = arith.constant 0 : index
    %c0_107 = arith.constant 0 : index
    %175 = vector.load %arg10[%c0_106, %c0_107] : memref<1x1024xf32, #tpu.memory_space<vmem>>, vector<1x1024xf32>
    %176 = vector.broadcast %175 : vector<1x1024xf32> to vector<8x1024xf32>
    %177 = arith.addf %174, %176 : vector<8x1024xf32>
    %cst_108 = arith.constant 0.000000e+00 : f32
    %178 = vector.broadcast %cst_108 : f32 to vector<8x1024xf32>
    %179 = arith.maximumf %177, %178 : vector<8x1024xf32>
    %180 = vector.extract_strided_slice %179 {offsets = [0, 0], sizes = [8, 512], strides = [1, 1]} : vector<8x1024xf32> to vector<8x512xf32>
    %181 = arith.truncf %180 : vector<8x512xf32> to vector<8x512xbf16>
    %182 = vector.extract_strided_slice %179 {offsets = [0, 512], sizes = [8, 512], strides = [1, 1]} : vector<8x1024xf32> to vector<8x512xf32>
    %183 = arith.truncf %182 : vector<8x512xf32> to vector<8x512xbf16>
    %c0_109 = arith.constant 0 : index
    %c0_110 = arith.constant 0 : index
    %184 = vector.load %arg11[%c0_109, %c0_110] : memref<512x64xbf16, #tpu.memory_space<vmem>>, vector<512x64xbf16>
    %cst_111 = arith.constant dense<0.000000e+00> : vector<8x64xf32>
    %185 = tpu.matmul %181, %184, %cst_111 {dimension_numbers = #tpu.dot_dimension_numbers<[1], [0], [0], [1], [0, 0, 1, 1], [], []>} : vector<8x512xbf16>, vector<512x64xbf16>, vector<8x64xf32> -> vector<8x64xf32>
    %c0_112 = arith.constant 0 : index
    %c0_113 = arith.constant 0 : index
    %186 = vector.load %arg12[%c0_112, %c0_113] : memref<1x64xf32, #tpu.memory_space<vmem>>, vector<1x64xf32>
    %187 = vector.broadcast %186 : vector<1x64xf32> to vector<8x64xf32>
    %188 = arith.addf %185, %187 : vector<8x64xf32>
    %c0_114 = arith.constant 0 : index
    %c0_115 = arith.constant 0 : index
    %c0_116 = arith.constant 0 : index
    %189 = vector.load %arg13[%c0_114, %c0_115, %c0_116] : memref<6x512x64xbf16, #tpu.memory_space<vmem>>, vector<1x512x64xbf16>
    %190 = vector.shape_cast %189 : vector<1x512x64xbf16> to vector<512x64xbf16>
    %cst_117 = arith.constant dense<0.000000e+00> : vector<8x64xf32>
    %191 = tpu.matmul %183, %190, %cst_117 {dimension_numbers = #tpu.dot_dimension_numbers<[1], [0], [0], [1], [0, 0, 1, 1], [], []>} : vector<8x512xbf16>, vector<512x64xbf16>, vector<8x64xf32> -> vector<8x64xf32>
    %c0_118 = arith.constant 0 : index
    %c0_119 = arith.constant 0 : index
    %c0_120 = arith.constant 0 : index
    %192 = vector.load %arg14[%c0_118, %c0_119, %c0_120] : memref<6x1x64xf32, #tpu.memory_space<vmem>>, vector<1x1x64xf32>
    %193 = vector.shape_cast %192 : vector<1x1x64xf32> to vector<1x64xf32>
    %194 = vector.broadcast %193 : vector<1x64xf32> to vector<8x64xf32>
    %195 = arith.addf %191, %194 : vector<8x64xf32>
    %c1_121 = arith.constant 1 : index
    %c0_122 = arith.constant 0 : index
    %c0_123 = arith.constant 0 : index
    %196 = vector.load %arg13[%c1_121, %c0_122, %c0_123] : memref<6x512x64xbf16, #tpu.memory_space<vmem>>, vector<1x512x64xbf16>
    %197 = vector.shape_cast %196 : vector<1x512x64xbf16> to vector<512x64xbf16>
    %cst_124 = arith.constant dense<0.000000e+00> : vector<8x64xf32>
    %198 = tpu.matmul %183, %197, %cst_124 {dimension_numbers = #tpu.dot_dimension_numbers<[1], [0], [0], [1], [0, 0, 1, 1], [], []>} : vector<8x512xbf16>, vector<512x64xbf16>, vector<8x64xf32> -> vector<8x64xf32>
    %c1_125 = arith.constant 1 : index
    %c0_126 = arith.constant 0 : index
    %c0_127 = arith.constant 0 : index
    %199 = vector.load %arg14[%c1_125, %c0_126, %c0_127] : memref<6x1x64xf32, #tpu.memory_space<vmem>>, vector<1x1x64xf32>
    %200 = vector.shape_cast %199 : vector<1x1x64xf32> to vector<1x64xf32>
    %201 = vector.broadcast %200 : vector<1x64xf32> to vector<8x64xf32>
    %202 = arith.addf %198, %201 : vector<8x64xf32>
    %c2_128 = arith.constant 2 : index
    %c0_129 = arith.constant 0 : index
    %c0_130 = arith.constant 0 : index
    %203 = vector.load %arg13[%c2_128, %c0_129, %c0_130] : memref<6x512x64xbf16, #tpu.memory_space<vmem>>, vector<1x512x64xbf16>
    %204 = vector.shape_cast %203 : vector<1x512x64xbf16> to vector<512x64xbf16>
    %cst_131 = arith.constant dense<0.000000e+00> : vector<8x64xf32>
    %205 = tpu.matmul %183, %204, %cst_131 {dimension_numbers = #tpu.dot_dimension_numbers<[1], [0], [0], [1], [0, 0, 1, 1], [], []>} : vector<8x512xbf16>, vector<512x64xbf16>, vector<8x64xf32> -> vector<8x64xf32>
    %c2_132 = arith.constant 2 : index
    %c0_133 = arith.constant 0 : index
    %c0_134 = arith.constant 0 : index
    %206 = vector.load %arg14[%c2_132, %c0_133, %c0_134] : memref<6x1x64xf32, #tpu.memory_space<vmem>>, vector<1x1x64xf32>
    %207 = vector.shape_cast %206 : vector<1x1x64xf32> to vector<1x64xf32>
    %208 = vector.broadcast %207 : vector<1x64xf32> to vector<8x64xf32>
    %209 = arith.addf %205, %208 : vector<8x64xf32>
    %c3_135 = arith.constant 3 : index
    %c0_136 = arith.constant 0 : index
    %c0_137 = arith.constant 0 : index
    %210 = vector.load %arg13[%c3_135, %c0_136, %c0_137] : memref<6x512x64xbf16, #tpu.memory_space<vmem>>, vector<1x512x64xbf16>
    %211 = vector.shape_cast %210 : vector<1x512x64xbf16> to vector<512x64xbf16>
    %cst_138 = arith.constant dense<0.000000e+00> : vector<8x64xf32>
    %212 = tpu.matmul %183, %211, %cst_138 {dimension_numbers = #tpu.dot_dimension_numbers<[1], [0], [0], [1], [0, 0, 1, 1], [], []>} : vector<8x512xbf16>, vector<512x64xbf16>, vector<8x64xf32> -> vector<8x64xf32>
    %c3_139 = arith.constant 3 : index
    %c0_140 = arith.constant 0 : index
    %c0_141 = arith.constant 0 : index
    %213 = vector.load %arg14[%c3_139, %c0_140, %c0_141] : memref<6x1x64xf32, #tpu.memory_space<vmem>>, vector<1x1x64xf32>
    %214 = vector.shape_cast %213 : vector<1x1x64xf32> to vector<1x64xf32>
    %215 = vector.broadcast %214 : vector<1x64xf32> to vector<8x64xf32>
    %216 = arith.addf %212, %215 : vector<8x64xf32>
    %c4_142 = arith.constant 4 : index
    %c0_143 = arith.constant 0 : index
    %c0_144 = arith.constant 0 : index
    %217 = vector.load %arg13[%c4_142, %c0_143, %c0_144] : memref<6x512x64xbf16, #tpu.memory_space<vmem>>, vector<1x512x64xbf16>
    %218 = vector.shape_cast %217 : vector<1x512x64xbf16> to vector<512x64xbf16>
    %cst_145 = arith.constant dense<0.000000e+00> : vector<8x64xf32>
    %219 = tpu.matmul %183, %218, %cst_145 {dimension_numbers = #tpu.dot_dimension_numbers<[1], [0], [0], [1], [0, 0, 1, 1], [], []>} : vector<8x512xbf16>, vector<512x64xbf16>, vector<8x64xf32> -> vector<8x64xf32>
    %c4_146 = arith.constant 4 : index
    %c0_147 = arith.constant 0 : index
    %c0_148 = arith.constant 0 : index
    %220 = vector.load %arg14[%c4_146, %c0_147, %c0_148] : memref<6x1x64xf32, #tpu.memory_space<vmem>>, vector<1x1x64xf32>
    %221 = vector.shape_cast %220 : vector<1x1x64xf32> to vector<1x64xf32>
    %222 = vector.broadcast %221 : vector<1x64xf32> to vector<8x64xf32>
    %223 = arith.addf %219, %222 : vector<8x64xf32>
    %c5_149 = arith.constant 5 : index
    %c0_150 = arith.constant 0 : index
    %c0_151 = arith.constant 0 : index
    %224 = vector.load %arg13[%c5_149, %c0_150, %c0_151] : memref<6x512x64xbf16, #tpu.memory_space<vmem>>, vector<1x512x64xbf16>
    %225 = vector.shape_cast %224 : vector<1x512x64xbf16> to vector<512x64xbf16>
    %cst_152 = arith.constant dense<0.000000e+00> : vector<8x64xf32>
    %226 = tpu.matmul %183, %225, %cst_152 {dimension_numbers = #tpu.dot_dimension_numbers<[1], [0], [0], [1], [0, 0, 1, 1], [], []>} : vector<8x512xbf16>, vector<512x64xbf16>, vector<8x64xf32> -> vector<8x64xf32>
    %c5_153 = arith.constant 5 : index
    %c0_154 = arith.constant 0 : index
    %c0_155 = arith.constant 0 : index
    %227 = vector.load %arg14[%c5_153, %c0_154, %c0_155] : memref<6x1x64xf32, #tpu.memory_space<vmem>>, vector<1x1x64xf32>
    %228 = vector.shape_cast %227 : vector<1x1x64xf32> to vector<1x64xf32>
    %229 = vector.broadcast %228 : vector<1x64xf32> to vector<8x64xf32>
    %230 = arith.addf %226, %229 : vector<8x64xf32>
    %231 = arith.addf %195, %202 : vector<8x64xf32>
    %232 = arith.addf %231, %209 : vector<8x64xf32>
    %233 = arith.addf %232, %216 : vector<8x64xf32>
    %234 = arith.addf %233, %223 : vector<8x64xf32>
    %235 = arith.addf %234, %230 : vector<8x64xf32>
    %cst_156 = arith.constant 0.166666672 : f32
    %236 = vector.broadcast %cst_156 : f32 to vector<8x64xf32>
    %237 = arith.mulf %235, %236 : vector<8x64xf32>
    %238 = arith.addf %188, %195 : vector<8x64xf32>
    %239 = arith.subf %238, %237 : vector<8x64xf32>
    %240 = arith.addf %188, %202 : vector<8x64xf32>
    %241 = arith.subf %240, %237 : vector<8x64xf32>
    %242 = arith.addf %188, %209 : vector<8x64xf32>
    %243 = arith.subf %242, %237 : vector<8x64xf32>
    %244 = arith.addf %188, %216 : vector<8x64xf32>
    %245 = arith.subf %244, %237 : vector<8x64xf32>
    %246 = arith.addf %188, %223 : vector<8x64xf32>
    %247 = arith.subf %246, %237 : vector<8x64xf32>
    %248 = arith.addf %188, %230 : vector<8x64xf32>
    %249 = arith.subf %248, %237 : vector<8x64xf32>
    %250 = tpu.concatenate %239, %241, %243, %245, %247, %249 in 0 : vector<8x64xf32>, vector<8x64xf32>, vector<8x64xf32>, vector<8x64xf32>, vector<8x64xf32>, vector<8x64xf32> -> vector<48x64xf32>
    %cst_157 = arith.constant dense<0xFF800000> : vector<48xf32>
    %251 = vector.multi_reduction <maximumf>, %250, %cst_157 [1] : vector<48x64xf32> to vector<48xf32>
    %252 = vector.shape_cast %251 : vector<48xf32> to vector<48x1xf32>
    %253 = vector.broadcast %252 : vector<48x1xf32> to vector<48x64xf32>
    %254 = arith.subf %250, %253 : vector<48x64xf32>
    %255 = math.exp %254 : vector<48x64xf32>
    %cst_158 = arith.constant dense<0.000000e+00> : vector<48xf32>
    %256 = vector.multi_reduction <add>, %255, %cst_158 [1] : vector<48x64xf32> to vector<48xf32>
    %257 = vector.shape_cast %256 : vector<48xf32> to vector<48x1xf32>
    %258 = tpu.reciprocal %257 : vector<48x1xf32> -> vector<48x1xf32>
    %259 = vector.broadcast %258 : vector<48x1xf32> to vector<48x64xf32>
    %260 = arith.mulf %255, %259 : vector<48x64xf32>
    %c0_159 = arith.constant 0 : index
    %c0_160 = arith.constant 0 : index
    %261 = vector.load %arg15[%c0_159, %c0_160] : memref<48x64xf32, #tpu.memory_space<vmem>>, vector<48x64xf32>
    tpu.vector_store %arg15[%c0_159, %c0_160], %260 {strides = array<i32>} : memref<48x64xf32, #tpu.memory_space<vmem>>, vector<48x64xf32>,
    return
  }
}

</mosaic_0001>

<bundles_post_ra>
// kernel: rainbow_forward.1
= control target key start
LH: loop header
LB: loop body
LE: loop exit
PB: predicated region body
PF: predicated region fallthrough
CT: control target
= control target key end

     0   :  { %vm845_vm0 = vcmask 261120   ;;  %vm7928_vm1 = vmmov 0   ;;  %vm2093_vm2 = vcmask 1043456   ;;  %vm2077_vm3 = vcmask 195584   ;;  %s9472_s3 = inlined_call_operand.vmem [shape: bf16[256,32], index: 3, kind: input, shape index: {}]   ;;  %s9473_s0 = inlined_call_operand.vmem [shape: bf16[128,256], index: 0, kind: input, shape index: {}]   ;;  %s9474_s1 = inlined_call_operand.vmem [shape: bf16[384,128], index: 1, kind: input, shape index: {}]   ;;  %s9475_s4 = inlined_call_operand.vmem [shape: f32[1,32], index: 4, kind: input, shape index: {}]   ;;  %s9476_s5 = inlined_call_operand.vmem [shape: bf16[16,32,64], index: 5, kind: input, shape index: {}]   ;;  %s9477_s2 = inlined_call_operand.vmem [shape: bf16[72,24], index: 2, kind: input, shape index: {}]   ;;  %s9478_s7 = inlined_call_operand.vmem [shape: bf16[9,64,64], index: 7, kind: input, shape index: {}]   ;;  %s9479_s6 = inlined_call_operand.vmem [shape: f32[1,64], index: 6, kind: input, shape index: {}]   ;;  %s9480_s9 = inlined_call_operand.vmem [shape: bf16[64,1024], index: 9, kind: input, shape index: {}]   ;;  %s9481_s11 = inlined_call_operand.vmem [shape: bf16[512,64], index: 11, kind: input, shape index: {}]   ;;  %s9482_s8 = inlined_call_operand.vmem [shape: f32[1,64], index: 8, kind: input, shape index: {}]   ;;  %s9483_s13 = inlined_call_operand.vmem [shape: bf16[6,512,64], index: 13, kind: input, shape index: {}]   ;;  %s9484_s10 = inlined_call_operand.vmem [shape: f32[1,1024], index: 10, kind: input, shape index: {}]   ;;  %s9485_s12 = inlined_call_operand.vmem [shape: f32[1,64], index: 12, kind: input, shape index: {}]   ;;  %s9486_s14 = inlined_call_operand.vmem [shape: f32[6,1,64], index: 14, kind: input, shape index: {}]   ;;  %s9487_s15 = inlined_call_operand.vmem [shape: f32[48,64], index: 15, kind: output, shape index: {}]  }
   0x1   :  { %v7542_v0 = vld [vmem:[%s9472_s3 + $0x40] sm:$0xff]   ;;  %v7544_v2 = vld [vmem:[%s9472_s3 + $0x48] sm:$0xff]   ;;  %v7546_v4 = vld [vmem:[%s9472_s3 + $0x50] sm:$0xff]   ;;  %vm2212_vm4 = vcmask 523264  }
   0x2   :  { %v7543_v1 = vld [vmem:[%s9472_s3] sm:$0xff]   ;;  %6695 = vmatprep.subr.bf16.mxu0 %v7542_v0  ;;  %v7545_v3 = vld [vmem:[%s9472_s3 + $0x8] sm:$0xff]   ;;  %v7547_v5 = vld [vmem:[%s9472_s3 + $0x10] sm:$0xff]  }
   0x3   :  { %6696 = vmatpush3.bf16.msra.mxu0 %v7543_v1  ;;  %v7548_v6 = vld [vmem:[%s9472_s3 + $0x58] sm:$0xff]   ;;  %v7550_v8 = vld [vmem:[%s9472_s3 + $0x60] sm:$0xff]   ;;  %v7552_v10 = vld [vmem:[%s9472_s3 + $0x68] sm:$0xff]  }
   0x4   :  { %6697 = vmatprep.subr.bf16.mxu0 %v7544_v2  ;;  %v7549_v7 = vld [vmem:[%s9472_s3 + $0x18] sm:$0xff]   ;;  %v7551_v9 = vld [vmem:[%s9472_s3 + $0x20] sm:$0xff]   ;;  %v7553_v12 = vld [vmem:[%s9472_s3 + $0x28] sm:$0xff]  }
   0x5   :  { %v7560_v11 = vld [vmem:[%s9473_s0 + $0x4] ss:$8 sps:$4 sm:$0xff]   ;;  %v7554_v13 = vld [vmem:[%s9472_s3 + $0x70] sm:$0xff]   ;;  %v7556_v15 = vld [vmem:[%s9472_s3 + $0x78] sm:$0xff]  }
   0x6   :  { %314 = vmatprep.mubr.bf16.mxu0 %v7560_v11  ;;  %v7555_v14 = vld [vmem:[%s9472_s3 + $0x30] sm:$0xff]   ;;  %v7557_v16 = vld [vmem:[%s9472_s3 + $0x38] sm:$0xff]   ;;  %v7558_v17 = vld [vmem:[%s9473_s0] ss:$8 sps:$4 sm:$0xff]  }
   0x7   :  { %6698 = vmatpush3.bf16.msra.mxu0 %v7545_v3  ;;  %v7561_v18 = vld [vmem:[%s9473_s0 + $0x14] ss:$8 sps:$4 sm:$0xff]   ;;  %v7563_v19 = vld [vmem:[%s9473_s0 + $0x10] ss:$8 sps:$4 sm:$0xff]   ;;  %v7564_v20 = vld [vmem:[%s9473_s0 + $0x24] ss:$8 sps:$4 sm:$0xff]  }
   0x8   :  { %6699 = vmatprep.subr.bf16.mxu0 %v7546_v4  ;;  %v7566_v21 = vld [vmem:[%s9473_s0 + $0x20] ss:$8 sps:$4 sm:$0xff]   ;;  %v7567_v22 = vld [vmem:[%s9473_s0 + $0x34] ss:$8 sps:$4 sm:$0xff]   ;;  %v7569_v23 = vld [vmem:[%s9473_s0 + $0x30] ss:$8 sps:$4 sm:$0xff]  }
   0x9   :  { %v7570_v24 = vld [vmem:[%s9473_s0 + $0x44] ss:$8 sps:$4 sm:$0xff]   ;;  %v7572_v25 = vld [vmem:[%s9473_s0 + $0x40] ss:$8 sps:$4 sm:$0xff]   ;;  %v7573_v26 = vld [vmem:[%s9473_s0 + $0x54] ss:$8 sps:$4 sm:$0xff]  }
   0xa   :  { %v7575_v27 = vld [vmem:[%s9473_s0 + $0x50] ss:$8 sps:$4 sm:$0xff]   ;;  %v7576_v28 = vld [vmem:[%s9473_s0 + $0x64] ss:$8 sps:$4 sm:$0xff]   ;;  %v7578_v29 = vld [vmem:[%s9473_s0 + $0x60] ss:$8 sps:$4 sm:$0xff]  }
   0xb   :  { %6700 = vmatpush3.bf16.msra.mxu0 %v7547_v5  ;;  %v7579_v30 = vld [vmem:[%s9473_s0 + $0x74] ss:$8 sps:$4 sm:$0xff]   ;;  %v7581_v31 = vld [vmem:[%s9473_s0 + $0x70] ss:$8 sps:$4 sm:$0xff]   ;;  %v7582_v32 = vld [vmem:[%s9474_s1] sm:$0xff]  }
   0xc   :  { %6701 = vmatprep.subr.bf16.mxu0 %v7548_v6  ;;  %7231 = vmatprep.mubr.bf16.mxu1 %v7582_v32  ;;  %v8112_v34 = vld [vmem:[%s9475_s4] ss:$0 sm:$0xff] }
   0xf   :  { %6702 = vmatpush3.bf16.msra.mxu0 %v7549_v7 }
  0x10   :  { %6703 = vmatprep.subr.bf16.mxu0 %v7550_v8 }
  0x13   :  { %6704 = vmatpush3.bf16.msra.mxu0 %v7551_v9 }
  0x14   :  { %6705 = vmatprep.subr.bf16.mxu0 %v7552_v10 }
  0x17   :  { %6706 = vmatpush3.bf16.msra.mxu0 %v7553_v12 }
  0x18   :  { %6707 = vmatprep.subr.bf16.mxu0 %v7554_v13 }
  0x1b   :  { %6708 = vmatpush3.bf16.msra.mxu0 %v7555_v14 }
  0x1c   :  { %6709 = vmatprep.subr.bf16.mxu0 %v7556_v15 }
  0x1f   :  { %6710 = vmatpush3.bf16.msra.mxu0 %v7557_v16 }
  0x22   :  { %315 = vmatmul.mubr.bf16.vlgmr.msra.gmra.mrb[0].mxu0 %v7558_v17 }
  0x23   :  { %322 = vmatprep.mubr.bf16.mxu0 %v7561_v18  ;;  %v7607_v18 = vld [vmem:[%s9476_s5] sm:$0xff]  }
  0x24   :  { %7287 = vmatprep.subr.bf16.mxu0 %v7607_v18 }
  0x25   :  { %7288 = vmatpush3.bf16.msra.mxu0 %v7607_v18  ;;  %v7603_v18 = vld [vmem:[%s9474_s1 + $0xa8] sm:$0xff]  }
  0x2a   :  { %323 = vmatmul.mubr.bf16.gmra.mrb[4].mxu0 %v7563_v19 }
  0x2b   :  { %330 = vmatprep.mubr.bf16.mxu0 %v7564_v20  ;;  %v7608_v20 = vld [vmem:[%s9476_s5 + $0x8] sm:$0xff]  }
  0x2c   :  { %7289 = vmatprep.subr.bf16.mxu0 %v7608_v20 }
  0x2d   :  { %7290 = vmatpush3.bf16.msra.mxu0 %v7608_v20  ;;  %v7605_v20 = vld [vmem:[%s9474_s1 + $0xb8] sm:$0xff]  }
  0x32   :  { %331 = vmatmul.mubr.bf16.gmra.mrb[8].mxu0 %v7566_v21 }
  0x33   :  { %338 = vmatprep.mubr.bf16.mxu0 %v7567_v22 }
  0x3a   :  { %339 = vmatmul.mubr.bf16.gmra.mrb[12].mxu0 %v7569_v23 }
  0x3b   :  { %346 = vmatprep.mubr.bf16.mxu0 %v7570_v24 }
  0x42   :  { %347 = vmatmul.mubr.bf16.gmra.mrb[16].mxu0 %v7572_v25 }
  0x43   :  { %354 = vmatprep.mubr.bf16.mxu0 %v7573_v26 }
  0x4a   :  { %355 = vmatmul.mubr.bf16.gmra.mrb[20].mxu0 %v7575_v27 }
  0x4b   :  { %362 = vmatprep.mubr.bf16.mxu0 %v7576_v28 }
  0x52   :  { %363 = vmatmul.mubr.bf16.gmra.mrb[24].mxu0 %v7578_v29 }
  0x53   :  { %370 = vmatprep.mubr.bf16.mxu0 %v7579_v30 }
  0x5a   :  { %371 = vmatmul.mubr.bf16.gmra.mrb[28].mxu0 %v7581_v31 }
  0xf5   :  { %v6711_v33 = vpop.f32.mrb[0].mxu0 }
  0xf6   :  { %v6712_v35 = vpop.f32.mrb[1].mxu0 }
  0xf7   :  { %v6713_v36 = vadd.f32 %v6712_v35, %v6711_v33  ;;  %v6714_v37 = vpop.f32.mrb[2].mxu0 }
  0xf8   :  { %v6715_v38 = vpop.f32.mrb[3].mxu0 }
  0xf9   :  { %v317_v39 = vadd.f32 %v6713_v36, %v8112_v34  ;;  %v6716_v40 = vadd.f32 %v6715_v38, %v6714_v37 }
  0xfb   :  { %v320_v41 = vadd.f32 %v6716_v40, %v8112_v34  ;;  %v379_v42 = vmax.f32 %v317_v39, 0.0 }
  0xfd   :  { %v380_v43 = vmax.f32 %v320_v41, 0.0  ;;  %v6717_v44 = vpop.f32.mrb[4].mxu0 }
  0xfe   :  { %v6718_v45 = vpop.f32.mrb[5].mxu0 }
  0xff   :  { %v6719_v46 = vadd.f32 %v6718_v45, %v6717_v44  ;;  %v6720_v47 = vpop.f32.mrb[6].mxu0  ;;  %v395_v48 = vpack.c.bf16 %v380_v43, %v379_v42 }
 0x100   :  { %v6721_v49 = vpop.f32.mrb[7].mxu0 }
 0x101   :  { %v325_v50 = vadd.f32 %v6719_v46, %v8112_v34  ;;  %v6722_v51 = vadd.f32 %v6721_v49, %v6720_v47  ;;  %7215 = vmatprep.subr.bf16.mxu1 %v395_v48 }
 0x102   :  { %7216 = vmatpush3.bf16.msra.mxu1 %v395_v48 }
 0x103   :  { %v328_v52 = vadd.f32 %v6722_v51, %v8112_v34  ;;  %v381_v53 = vmax.f32 %v325_v50, 0.0 }
 0x105   :  { %v382_v54 = vmax.f32 %v328_v52, 0.0  ;;  %v6723_v55 = vpop.f32.mrb[8].mxu0 }
 0x106   :  { %v6724_v56 = vpop.f32.mrb[9].mxu0 }
 0x107   :  { %v6725_v57 = vadd.f32 %v6724_v56, %v6723_v55  ;;  %v6726_v58 = vpop.f32.mrb[10].mxu0  ;;  %v396_v59 = vpack.c.bf16 %v382_v54, %v381_v53 }
 0x108   :  { %v6727_v60 = vpop.f32.mrb[11].mxu0 }
 0x109   :  { %v333_v61 = vadd.f32 %v6725_v57, %v8112_v34  ;;  %v6728_v62 = vadd.f32 %v6727_v60, %v6726_v58  ;;  %7217 = vmatprep.subr.bf16.mxu1 %v396_v59 }
 0x10a   :  { %7218 = vmatpush3.bf16.msra.mxu1 %v396_v59 }
 0x10b   :  { %v336_v63 = vadd.f32 %v6728_v62, %v8112_v34  ;;  %v383_v0 = vmax.f32 %v333_v61, 0.0  ;;  %v7606_v61 = vld [vmem:[%s9476_s5 + $0x10] sm:$0xff]   ;;  %v7583_v62 = vld [vmem:[%s9474_s1 + $0x8] sm:$0xff]  }
 0x10d   :  { %v384_v1 = vmax.f32 %v336_v63, 0.0  ;;  %v6729_v2 = vpop.f32.mrb[12].mxu0  ;;  %v7584_v63 = vld [vmem:[%s9474_s1 + $0x10] sm:$0xff]  }
 0x10e   :  { %v6730_v3 = vpop.f32.mrb[13].mxu0 }
 0x10f   :  { %v6731_v4 = vadd.f32 %v6730_v3, %v6729_v2  ;;  %v6732_v5 = vpop.f32.mrb[14].mxu0  ;;  %v397_v6 = vpack.c.bf16 %v384_v1, %v383_v0  ;;  %v7585_v0 = vld [vmem:[%s9474_s1 + $0x18] sm:$0xff]   ;;  %v7586_v1 = vld [vmem:[%s9474_s1 + $0x20] sm:$0xff]   ;;  %v7587_v2 = vld [vmem:[%s9474_s1 + $0x28] sm:$0xff]  }
 0x110   :  { %v6733_v7 = vpop.f32.mrb[15].mxu0  ;;  %v7588_v3 = vld [vmem:[%s9474_s1 + $0x30] sm:$0xff]  }
 0x111   :  { %v341_v8 = vadd.f32 %v6731_v4, %v8112_v34  ;;  %v6734_v9 = vadd.f32 %v6733_v7, %v6732_v5  ;;  %7219 = vmatprep.subr.bf16.mxu1 %v397_v6  ;;  %v7589_v4 = vld [vmem:[%s9474_s1 + $0x38] sm:$0xff]   ;;  %v7590_v5 = vld [vmem:[%s9474_s1 + $0x40] sm:$0xff]   ;;  %v7592_v7 = vld [vmem:[%s9474_s1 + $0x50] sm:$0xff]  }
 0x112   :  { %7220 = vmatpush3.bf16.msra.mxu1 %v397_v6  ;;  %v7591_v6 = vld [vmem:[%s9474_s1 + $0x48] sm:$0xff]  }
 0x113   :  { %v344_v10 = vadd.f32 %v6734_v9, %v8112_v34  ;;  %v385_v11 = vmax.f32 %v341_v8, 0.0  ;;  %v7593_v8 = vld [vmem:[%s9474_s1 + $0x58] sm:$0xff]   ;;  %v7594_v9 = vld [vmem:[%s9474_s1 + $0x60] sm:$0xff]  }
 0x115   :  { %v386_v12 = vmax.f32 %v344_v10, 0.0  ;;  %v6735_v13 = vpop.f32.mrb[16].mxu0  ;;  %v7595_v10 = vld [vmem:[%s9474_s1 + $0x68] sm:$0xff]  }
 0x116   :  { %v6736_v14 = vpop.f32.mrb[17].mxu0 }
 0x117   :  { %v6737_v15 = vadd.f32 %v6736_v14, %v6735_v13  ;;  %v6738_v16 = vpop.f32.mrb[18].mxu0  ;;  %v398_v17 = vpack.c.bf16 %v386_v12, %v385_v11  ;;  %v7596_v11 = vld [vmem:[%s9474_s1 + $0x70] sm:$0xff]   ;;  %v7597_v12 = vld [vmem:[%s9474_s1 + $0x78] sm:$0xff]   ;;  %v7598_v13 = vld [vmem:[%s9474_s1 + $0x80] sm:$0xff]  }
 0x118   :  { %v6739_v19 = vpop.f32.mrb[19].mxu0  ;;  %v7599_v14 = vld [vmem:[%s9474_s1 + $0x88] sm:$0xff]  }
 0x119   :  { %v349_v21 = vadd.f32 %v6737_v15, %v8112_v34  ;;  %v6740_v22 = vadd.f32 %v6739_v19, %v6738_v16  ;;  %7221 = vmatprep.subr.bf16.mxu1 %v398_v17  ;;  %v7600_v15 = vld [vmem:[%s9474_s1 + $0x90] sm:$0xff]   ;;  %v7601_v16 = vld [vmem:[%s9474_s1 + $0x98] sm:$0xff]  }
 0x11a   :  { %7222 = vmatpush3.bf16.msra.mxu1 %v398_v17  ;;  %v7602_v17 = vld [vmem:[%s9474_s1 + $0xa0] sm:$0xff]   ;;  %v7604_v19 = vld [vmem:[%s9474_s1 + $0xb0] sm:$0xff]  }
 0x11b   :  { %v387_v23 = vmax.f32 %v349_v21, 0.0  ;;  %v352_v24 = vadd.f32 %v6740_v22, %v8112_v34  ;;  %v7610_v21 = vld [vmem:[%s9476_s5 + $0x20] sm:$0xff]   ;;  %v7615_v22 = vld [vmem:[%s9476_s5 + $0x50] sm:$0xff]  }
 0x11c   :  { %7295 = vmatprep.subr.bf16.mxu0 %v7610_v21 }
 0x11d   :  { %v388_v25 = vmax.f32 %v352_v24, 0.0  ;;  %v6741_v26 = vpop.f32.mrb[20].mxu0 }
 0x11e   :  { %v6742_v27 = vpop.f32.mrb[21].mxu0 }
 0x11f   :  { %v6743_v28 = vadd.f32 %v6742_v27, %v6741_v26  ;;  %v6744_v29 = vpop.f32.mrb[22].mxu0  ;;  %v399_v30 = vpack.c.bf16 %v388_v25, %v387_v23 }
 0x120   :  { %v6745_v31 = vpop.f32.mrb[23].mxu0 }
 0x121   :  { %v357_v32 = vadd.f32 %v6743_v28, %v8112_v34  ;;  %v6746_v33 = vadd.f32 %v6745_v31, %v6744_v29  ;;  %7223 = vmatprep.subr.bf16.mxu1 %v399_v30  ;;  %v7611_v29 = vld [vmem:[%s9476_s5 + $0x28] sm:$0xff]  }
 0x122   :  { %7224 = vmatpush3.bf16.msra.mxu1 %v399_v30 }
 0x123   :  { %v389_v35 = vmax.f32 %v357_v32, 0.0  ;;  %v360_v36 = vadd.f32 %v6746_v33, %v8112_v34  ;;  %v7612_v32 = vld [vmem:[%s9476_s5 + $0x30] sm:$0xff]  }
 0x125   :  { %v390_v37 = vmax.f32 %v360_v36, 0.0  ;;  %v6747_v38 = vpop.f32.mrb[24].mxu0 }
 0x126   :  { %v6748_v39 = vpop.f32.mrb[25].mxu0 }
 0x127   :  { %v6749_v40 = vadd.f32 %v6748_v39, %v6747_v38  ;;  %v6750_v41 = vpop.f32.mrb[26].mxu0  ;;  %v400_v42 = vpack.c.bf16 %v390_v37, %v389_v35  ;;  %v7617_v39 = vld [vmem:[%s9476_s5 + $0x58] sm:$0xff]  }
 0x128   :  { %v6751_v43 = vpop.f32.mrb[27].mxu0 }
 0x129   :  { %v365_v44 = vadd.f32 %v6749_v40, %v8112_v34  ;;  %v6752_v45 = vadd.f32 %v6751_v43, %v6750_v41  ;;  %7225 = vmatprep.subr.bf16.mxu1 %v400_v42  ;;  %v7619_v41 = vld [vmem:[%s9476_s5 + $0x70] sm:$0xff]  }
 0x12a   :  { %7226 = vmatpush3.bf16.msra.mxu1 %v400_v42 }
 0x12b   :  { %v391_v46 = vmax.f32 %v365_v44, 0.0  ;;  %v368_v47 = vadd.f32 %v6752_v45, %v8112_v34  ;;  %v7613_v45 = vld [vmem:[%s9476_s5 + $0x38] sm:$0xff]  }
 0x12d   :  { %v392_v48 = vmax.f32 %v368_v47, 0.0  ;;  %v6753_v49 = vpop.f32.mrb[28].mxu0 }
 0x12e   :  { %v6754_v50 = vpop.f32.mrb[29].mxu0 }
 0x12f   :  { %v6755_v51 = vadd.f32 %v6754_v50, %v6753_v49  ;;  %v6756_v52 = vpop.f32.mrb[30].mxu0  ;;  %v401_v53 = vpack.c.bf16 %v392_v48, %v391_v46  ;;  %v7614_v48 = vld [vmem:[%s9476_s5 + $0x40] sm:$0xff]  }
 0x130   :  { %v6757_v54 = vpop.f32.mrb[31].mxu0 }
 0x131   :  { %v373_v55 = vadd.f32 %v6755_v51, %v8112_v34  ;;  %v6758_v56 = vadd.f32 %v6757_v54, %v6756_v52  ;;  %7227 = vmatprep.subr.bf16.mxu1 %v401_v53 }
 0x132   :  { %7228 = vmatpush3.bf16.msra.mxu1 %v401_v53  ;;  %v7616_v53 = vld [vmem:[%s9476_s5 + $0x48] sm:$0xff]  }
 0x133   :  { %v376_v57 = vadd.f32 %v6758_v56, %v8112_v34  ;;  %v393_v58 = vmax.f32 %v373_v55, 0.0  ;;  %v7609_v34 = vld [vmem:[%s9476_s5 + $0x18] sm:$0xff]   ;;  %v7618_v56 = vld [vmem:[%s9476_s5 + $0x60] sm:$0xff]  }
 0x135   :  { %v394_v59 = vmax.f32 %v376_v57, 0.0 }
 0x137   :  { %v402_v60 = vpack.c.bf16 %v394_v59, %v393_v58 }
 0x139   :  { %7229 = vmatprep.subr.bf16.mxu1 %v402_v60 }
 0x13a   :  { %7230 = vmatpush3.bf16.msra.mxu1 %v402_v60 }
 0x13b   :  { %7279 = vmatprep.subr.bf16.mxu1 %v7606_v61 }
 0x13d   :  { %7232 = vmatmul.mubr.bf16.vlgmr.msra.gmra.mrb[0].mxu1 %v7583_v62  ;;  %v7620_v62 = vld [vmem:[%s9476_s5 + $0x68] sm:$0xff]  }
 0x13e   :  { %7235 = vmatprep.mubr.bf16.mxu1 %v7584_v63  ;;  %7280 = vmatpush3.bf16.msra.mxu1 %v7606_v61 }
 0x13f   :  { %7281 = vmatprep.subr.bf16.mxu1 %v7609_v34 }
 0x142   :  { %7282 = vmatpush3.bf16.msra.mxu1 %v7609_v34 }
 0x143   :  { %7319 = vmatprep.subr.bf16.mxu1 %v7615_v22 }
 0x145   :  { %7236 = vmatmul.mubr.bf16.gmra.mrb[4].mxu1 %v7585_v0 }
 0x146   :  { %7239 = vmatprep.mubr.bf16.mxu1 %v7586_v1  ;;  %v7621_v1 = vld [vmem:[%s9476_s5 + $0x78] sm:$0xff]  }
 0x14d   :  { %7240 = vmatmul.mubr.bf16.gmra.mrb[8].mxu1 %v7587_v2  ;;  %v7622_v2 = vld [vmem:[%s9476_s5 + $0x80] sm:$0xff]  }
 0x14e   :  { %7243 = vmatprep.mubr.bf16.mxu1 %v7588_v3 }
 0x155   :  { %7244 = vmatmul.mubr.bf16.gmra.mrb[12].mxu1 %v7589_v4  ;;  %v7624_v4 = vld [vmem:[%s9476_s5 + $0x90] sm:$0xff]  }
 0x156   :  { %7247 = vmatprep.mubr.bf16.mxu1 %v7590_v5 }
 0x15d   :  { %7248 = vmatmul.mubr.bf16.gmra.mrb[16].mxu1 %v7591_v6 }
 0x15e   :  { %7251 = vmatprep.mubr.bf16.mxu1 %v7592_v7 }
 0x165   :  { %7252 = vmatmul.mubr.bf16.gmra.mrb[20].mxu1 %v7593_v8  ;;  %v7623_v8 = vld [vmem:[%s9476_s5 + $0x88] sm:$0xff]  }
 0x166   :  { %7255 = vmatprep.mubr.bf16.mxu1 %v7594_v9 }
 0x16d   :  { %7256 = vmatmul.mubr.bf16.gmra.mrb[24].mxu1 %v7595_v10 }
 0x16e   :  { %7259 = vmatprep.mubr.bf16.mxu1 %v7596_v11 }
 0x175   :  { %7260 = vmatmul.mubr.bf16.gmra.mrb[28].mxu1 %v7597_v12  ;;  %v7625_v12 = vld [vmem:[%s9476_s5 + $0x98] sm:$0xff]  }
 0x176   :  { %7263 = vmatprep.mubr.bf16.mxu1 %v7598_v13  ;;  %v7626_v13 = vld [vmem:[%s9476_s5 + $0xa0] sm:$0xff]  }
 0x17d   :  { %7264 = vmatmul.mubr.bf16.gmra.mrb[32].mxu1 %v7599_v14 }
 0x17e   :  { %7267 = vmatprep.mubr.bf16.mxu1 %v7600_v15 }
 0x185   :  { %7268 = vmatmul.mubr.bf16.gmra.mrb[36].mxu1 %v7601_v16  ;;  %v7627_v16 = vld [vmem:[%s9476_s5 + $0xb0] sm:$0xff]  }
 0x186   :  { %7271 = vmatprep.mubr.bf16.mxu1 %v7602_v17 }
 0x18d   :  { %7272 = vmatmul.mubr.bf16.gmra.mrb[40].mxu1 %v7603_v18 }
 0x18e   :  { %7275 = vmatprep.mubr.bf16.mxu1 %v7604_v19 }
 0x195   :  { %7276 = vmatmul.mubr.bf16.gmra.mrb[44].mxu1 %v7605_v20 }
 0x210   :  { %v7233_v23 = vpop.f32.mrb[0].mxu1 }
 0x211   :  { %v629_v24 = vpop.f32.mrb[1].mxu1  ;;  %v821_v28 = vpack.c.bf16 %v7233_v23, %v7233_v23 }
 0x212   :  { %v7234_v25 = vpop.f32.mrb[2].mxu1 }
 0x213   :  { %v632_v26 = vpop.f32.mrb[3].mxu1 }
 0x214   :  { %v820_v27 = vpack.c.bf16 %v632_v26, %v629_v24  ;;  %v7630_v24 = vld [vmem:[%s9476_s5 + $0xc0] sm:$0xff]  }
 0x216   :  { %7291 = vmatprep.mubr.msk.bf16.mxu0 %vm845_vm0, %v820_v27 }
 0x217   :  { %7292 = vmatmul.mubr.msk.bf16.vlgmr.msra.gmra.mrb[32].mxu0 %vm845_vm0, %v821_v28 }
 0x218   :  { %v7237_v30 = vpop.f32.mrb[4].mxu1  ;;  %7296 = vmatpush3.bf16.msra.mxu0 %v7610_v21  ;;  %v7628_v21 = vld [vmem:[%s9476_s5 + $0xa8] sm:$0xff]  }
 0x219   :  { %v645_v31 = vpop.f32.mrb[5].mxu1  ;;  %7297 = vmatprep.subr.bf16.mxu0 %v7611_v29 }
 0x21a   :  { %v826_v33 = vpack.c.bf16 %v645_v31, %v7234_v25  ;;  %v7238_v35 = vpop.f32.mrb[6].mxu1 }
 0x21b   :  { %v966_v36 = vpack.c.bf16 %v7238_v35, %v7237_v30  ;;  %v648_v37 = vpop.f32.mrb[7].mxu1  ;;  %v7629_v30 = vld [vmem:[%s9476_s5 + $0xb8] sm:$0xff]  }
 0x21c   :  { %v827_v38 = vpack.c.bf16 %v648_v37, %v648_v37  ;;  %7283 = vmatprep.mubr.msk.bf16.mxu1 %vm845_vm0, %v826_v33  ;;  %7298 = vmatpush3.bf16.msra.mxu0 %v7611_v29  ;;  %v7631_v37 = vld [vmem:[%s9476_s5 + $0xc8] sm:$0xff]  }
 0x21d   :  { %7299 = vmatprep.mubr.msk.bf16.mxu0 %vm845_vm0, %v966_v36  ;;  %7303 = vmatprep.subr.bf16.mxu0 %v7612_v32 }
 0x21e   :  { %7284 = vmatmul.mubr.msk.bf16.vlgmr.msra.gmra.mrb[48].mxu1 %vm845_vm0, %v827_v38 }
 0x21f   :  { %7320 = vmatpush3.bf16.msra.mxu1 %v7615_v22 }
 0x220   :  { %v7241_v40 = vpop.f32.mrb[8].mxu1  ;;  %7321 = vmatprep.subr.bf16.mxu1 %v7617_v39 }
 0x221   :  { %v661_v42 = vpop.f32.mrb[9].mxu1 }
 0x222   :  { %v967_v43 = vpack.c.bf16 %v661_v42, %v661_v42  ;;  %v7242_v44 = vpop.f32.mrb[10].mxu1  ;;  %v7634_v42 = vld [vmem:[%s9476_s5 + $0xe0] sm:$0xff]  }
 0x223   :  { %v664_v46 = vpop.f32.mrb[11].mxu1  ;;  %7322 = vmatpush3.bf16.msra.mxu1 %v7617_v39  ;;  %v1043_v51 = vpack.c.bf16 %v7242_v44, %v7242_v44 }
 0x224   :  { %v1042_v47 = vpack.c.bf16 %v7241_v40, %v664_v46  ;;  %7300 = vmatmul.mubr.msk.bf16.vlgmr.msra.gmra.mrb[36].mxu0 %vm845_vm0, %v967_v43  ;;  %7335 = vmatprep.subr.bf16.mxu1 %v7619_v41 }
 0x225   :  { %7304 = vmatpush3.bf16.msra.mxu0 %v7612_v32  ;;  %v7632_v32 = vld [vmem:[%s9476_s5 + $0xd0] sm:$0xff]  }
 0x226   :  { %7307 = vmatprep.mubr.msk.bf16.mxu0 %vm845_vm0, %v1042_v47  ;;  %7305 = vmatprep.subr.bf16.mxu0 %v7613_v45 }
 0x228   :  { %v7245_v49 = vpop.f32.mrb[12].mxu1 }
 0x229   :  { %v677_v50 = vpop.f32.mrb[13].mxu1  ;;  %7306 = vmatpush3.bf16.msra.mxu0 %v7613_v45  ;;  %v1119_v59 = vpack.c.bf16 %v7245_v49, %v7245_v49  ;;  %v7635_v45 = vld [vmem:[%s9476_s5 + $0xf0] sm:$0xff]  }
 0x22a   :  { %v7246_v52 = vpop.f32.mrb[14].mxu1  ;;  %7311 = vmatprep.subr.bf16.mxu0 %v7614_v48 }
 0x22b   :  { %v680_v54 = vpop.f32.mrb[15].mxu1 }
 0x22c   :  { %v1118_v55 = vpack.c.bf16 %v680_v54, %v677_v50  ;;  %7308 = vmatmul.mubr.msk.bf16.vlgmr.msra.gmra.mrb[40].mxu0 %vm845_vm0, %v1043_v51  ;;  %v7636_v50 = vld [vmem:[%s9476_s5 + $0xe8] sm:$0xff]  }
 0x22d   :  { %7312 = vmatpush3.bf16.msra.mxu0 %v7614_v48 }
 0x22e   :  { %7315 = vmatprep.mubr.msk.bf16.mxu0 %vm845_vm0, %v1118_v55  ;;  %7313 = vmatprep.subr.bf16.mxu0 %v7616_v53 }
 0x230   :  { %v7249_v57 = vpop.f32.mrb[16].mxu1 }
 0x231   :  { %v693_v58 = vpop.f32.mrb[17].mxu1  ;;  %7314 = vmatpush3.bf16.msra.mxu0 %v7616_v53 }
 0x232   :  { %v1194_v60 = vpack.c.bf16 %v693_v58, %v7246_v52  ;;  %v7250_v61 = vpop.f32.mrb[18].mxu1  ;;  %7327 = vmatprep.subr.bf16.mxu0 %v7618_v56  ;;  %v7637_v58 = vld [vmem:[%s9476_s5 + $0xf8] sm:$0xff]  }
 0x233   :  { %v1270_v63 = vpack.c.bf16 %v7250_v61, %v7249_v57  ;;  %v696_v34 = vpop.f32.mrb[19].mxu1 }
 0x234   :  { %v1195_v0 = vpack.c.bf16 %v696_v34, %v696_v34  ;;  %7316 = vmatmul.mubr.msk.bf16.vlgmr.msra.gmra.mrb[44].mxu0 %vm845_vm0, %v1119_v59  ;;  %7323 = vmatprep.mubr.msk.bf16.mxu1 %vm845_vm0, %v1194_v60 }
 0x235   :  { %7328 = vmatpush3.bf16.msra.mxu0 %v7618_v56  ;;  %7331 = vmatprep.mubr.msk.bf16.mxu0 %vm845_vm0, %v1270_v63 }
 0x236   :  { %7324 = vmatmul.mubr.msk.bf16.vlgmr.msra.gmra.mrb[52].mxu1 %vm845_vm0, %v1195_v0  ;;  %7329 = vmatprep.subr.bf16.mxu0 %v7620_v62 }
 0x237   :  { %7336 = vmatpush3.bf16.msra.mxu1 %v7619_v41  ;;  %v7633_v41 = vld [vmem:[%s9476_s5 + $0xd8] sm:$0xff]  }
 0x238   :  { %v7253_v3 = vpop.f32.mrb[20].mxu1  ;;  %7337 = vmatprep.subr.bf16.mxu1 %v7621_v1 }
 0x239   :  { %v709_v5 = vpop.f32.mrb[21].mxu1  ;;  %7330 = vmatpush3.bf16.msra.mxu0 %v7620_v62 }
 0x23a   :  { %v1271_v6 = vpack.c.bf16 %v709_v5, %v709_v5  ;;  %v7254_v7 = vpop.f32.mrb[22].mxu1  ;;  %7343 = vmatprep.subr.bf16.mxu0 %v7622_v2 }
 0x23b   :  { %v712_v9 = vpop.f32.mrb[23].mxu1  ;;  %7338 = vmatpush3.bf16.msra.mxu1 %v7621_v1  ;;  %v1347_v11 = vpack.c.bf16 %v7254_v7, %v7254_v7  ;;  %v7927_v1 = vmov 0.0  }
 0x23c   :  { %v1346_v10 = vpack.c.bf16 %v7253_v3, %v712_v9  ;;  %7332 = vmatmul.mubr.msk.bf16.vlgmr.msra.gmra.mrb[48].mxu0 %vm845_vm0, %v1271_v6  ;;  %7351 = vmatprep.subr.bf16.mxu1 %v7624_v4 }
 0x23d   :  { %7344 = vmatpush3.bf16.msra.mxu0 %v7622_v2 }
 0x23e   :  { %7339 = vmatprep.mubr.msk.bf16.mxu1 %vm845_vm0, %v1346_v10  ;;  %7345 = vmatprep.subr.bf16.mxu0 %v7623_v8 }
 0x23f   :  { %7340 = vmatmul.mubr.msk.bf16.vlgmr.msra.gmra.mrb[56].mxu1 %vm845_vm0, %v1347_v11 }
 0x240   :  { %v7257_v14 = vpop.f32.mrb[24].mxu1  ;;  %7352 = vmatpush3.bf16.msra.mxu1 %v7624_v4 }
 0x241   :  { %v725_v15 = vpop.f32.mrb[25].mxu1  ;;  %7346 = vmatpush3.bf16.msra.mxu0 %v7623_v8  ;;  %7353 = vmatprep.subr.bf16.mxu1 %v7625_v12  ;;  %v1423_v20 = vpack.c.bf16 %v7257_v14, %v7257_v14  ;;  %v7644_v14 = vld [vmem:[%s9478_s7 + $0x20] sm:$0xff]  }
 0x242   :  { %v7258_v17 = vpop.f32.mrb[26].mxu1  ;;  %7359 = vmatprep.subr.bf16.mxu0 %v7626_v13 }
 0x243   :  { %v728_v18 = vpop.f32.mrb[27].mxu1 }
 0x244   :  { %v1422_v19 = vpack.c.bf16 %v728_v18, %v725_v15  ;;  %7354 = vmatpush3.bf16.msra.mxu1 %v7625_v12 }
 0x245   :  { %7367 = vmatprep.subr.bf16.mxu1 %v7627_v16 }
 0x246   :  { %7347 = vmatprep.mubr.msk.bf16.mxu0 %vm845_vm0, %v1422_v19  ;;  %v7645_v19 = vld [vmem:[%s9478_s7 + $0x28] sm:$0xff]  }
 0x247   :  { %7348 = vmatmul.mubr.msk.bf16.vlgmr.msra.gmra.mrb[52].mxu0 %vm845_vm0, %v1423_v20 }
 0x248   :  { %v7261_v22 = vpop.f32.mrb[28].mxu1  ;;  %7360 = vmatpush3.bf16.msra.mxu0 %v7626_v13 }
 0x249   :  { %v741_v23 = vpop.f32.mrb[29].mxu1  ;;  %7361 = vmatprep.subr.bf16.mxu0 %v7628_v21 }
 0x24a   :  { %v1498_v25 = vpack.c.bf16 %v741_v23, %v7258_v17  ;;  %v7262_v26 = vpop.f32.mrb[30].mxu1 }
 0x24b   :  { %v1574_v27 = vpack.c.bf16 %v7262_v26, %v7261_v22  ;;  %v744_v28 = vpop.f32.mrb[31].mxu1  ;;  %v7647_v22 = vld [vmem:[%s9478_s7 + $0x30] sm:$0xff]  }
 0x24c   :  { %v1499_v29 = vpack.c.bf16 %v744_v28, %v744_v28  ;;  %7355 = vmatprep.mubr.msk.bf16.mxu1 %vm845_vm0, %v1498_v25  ;;  %7362 = vmatpush3.bf16.msra.mxu0 %v7628_v21 }
 0x24d   :  { %7363 = vmatprep.mubr.msk.bf16.mxu0 %vm845_vm0, %v1574_v27  ;;  %7375 = vmatprep.subr.bf16.mxu0 %v7630_v24 }
 0x24e   :  { %7356 = vmatmul.mubr.msk.bf16.vlgmr.msra.gmra.mrb[60].mxu1 %vm845_vm0, %v1499_v29 }
 0x24f   :  { %7368 = vmatpush3.bf16.msra.mxu1 %v7627_v16 }
 0x250   :  { %v7265_v31 = vpop.f32.mrb[32].mxu1  ;;  %7369 = vmatprep.subr.bf16.mxu1 %v7629_v30 }
 0x251   :  { %v757_v33 = vpop.f32.mrb[33].mxu1 }
 0x252   :  { %v1575_v35 = vpack.c.bf16 %v757_v33, %v757_v33  ;;  %v7266_v36 = vpop.f32.mrb[34].mxu1 }
 0x253   :  { %v760_v38 = vpop.f32.mrb[35].mxu1  ;;  %7370 = vmatpush3.bf16.msra.mxu1 %v7629_v30  ;;  %v1651_v40 = vpack.c.bf16 %v7266_v36, %v7266_v36 }
 0x254   :  { %v1650_v39 = vpack.c.bf16 %v7265_v31, %v760_v38  ;;  %7364 = vmatmul.mubr.msk.bf16.vlgmr.msra.gmra.mrb[56].mxu0 %vm845_vm0, %v1575_v35  ;;  %7383 = vmatprep.subr.bf16.mxu1 %v7632_v32 }
 0x255   :  { %7376 = vmatpush3.bf16.msra.mxu0 %v7630_v24 }
 0x256   :  { %7371 = vmatprep.mubr.msk.bf16.mxu1 %vm845_vm0, %v1650_v39  ;;  %7377 = vmatprep.subr.bf16.mxu0 %v7631_v37 }
 0x257   :  { %7372 = vmatmul.mubr.msk.bf16.vlgmr.msra.gmra.mrb[64].mxu1 %vm845_vm0, %v1651_v40 }
 0x258   :  { %v7269_v43 = vpop.f32.mrb[36].mxu1  ;;  %7384 = vmatpush3.bf16.msra.mxu1 %v7632_v32 }
 0x259   :  { %v773_v44 = vpop.f32.mrb[37].mxu1  ;;  %7378 = vmatpush3.bf16.msra.mxu0 %v7631_v37  ;;  %7385 = vmatprep.subr.bf16.mxu1 %v7633_v41  ;;  %v1727_v49 = vpack.c.bf16 %v7269_v43, %v7269_v43 }
 0x25a   :  { %v7270_v46 = vpop.f32.mrb[38].mxu1  ;;  %7391 = vmatprep.subr.bf16.mxu0 %v7634_v42 }
 0x25b   :  { %v776_v47 = vpop.f32.mrb[39].mxu1 }
 0x25c   :  { %v1726_v48 = vpack.c.bf16 %v776_v47, %v773_v44  ;;  %7386 = vmatpush3.bf16.msra.mxu1 %v7633_v41 }
 0x25d   :  { %7399 = vmatprep.subr.bf16.mxu1 %v7635_v45 }
 0x25e   :  { %7379 = vmatprep.mubr.msk.bf16.mxu0 %vm845_vm0, %v1726_v48 }
 0x25f   :  { %7380 = vmatmul.mubr.msk.bf16.vlgmr.msra.gmra.mrb[60].mxu0 %vm845_vm0, %v1727_v49 }
 0x260   :  { %v7273_v51 = vpop.f32.mrb[40].mxu1  ;;  %7392 = vmatpush3.bf16.msra.mxu0 %v7634_v42 }
 0x261   :  { %v789_v52 = vpop.f32.mrb[41].mxu1  ;;  %7393 = vmatprep.subr.bf16.mxu0 %v7636_v50 }
 0x262   :  { %v1802_v53 = vpack.c.bf16 %v789_v52, %v7270_v46  ;;  %v7274_v54 = vpop.f32.mrb[42].mxu1 }
 0x263   :  { %v1878_v55 = vpack.c.bf16 %v7274_v54, %v7273_v51  ;;  %v792_v56 = vpop.f32.mrb[43].mxu1 }
 0x264   :  { %v1803_v57 = vpack.c.bf16 %v792_v56, %v792_v56  ;;  %7387 = vmatprep.mubr.msk.bf16.mxu1 %vm845_vm0, %v1802_v53  ;;  %7394 = vmatpush3.bf16.msra.mxu0 %v7636_v50 }
 0x265   :  { %7395 = vmatprep.mubr.msk.bf16.mxu0 %vm845_vm0, %v1878_v55  ;;  %7407 = vmatprep.subr.bf16.mxu0 %v7927_v1 }
 0x266   :  { %7388 = vmatmul.mubr.msk.bf16.vlgmr.msra.gmra.mrb[68].mxu1 %vm845_vm0, %v1803_v57 }
 0x267   :  { %7400 = vmatpush3.bf16.msra.mxu1 %v7635_v45 }
 0x268   :  { %v7277_v59 = vpop.f32.mrb[44].mxu1  ;;  %7401 = vmatprep.subr.bf16.mxu1 %v7637_v58 }
 0x269   :  { %v805_v60 = vpop.f32.mrb[45].mxu1 }
 0x26a   :  { %v1879_v61 = vpack.c.bf16 %v805_v60, %v805_v60  ;;  %v7278_v62 = vpop.f32.mrb[46].mxu1 }
 0x26b   :  { %v808_v63 = vpop.f32.mrb[47].mxu1  ;;  %7402 = vmatpush3.bf16.msra.mxu1 %v7637_v58  ;;  %v1955_v0 = vpack.c.bf16 %v7278_v62, %v7278_v62 }
 0x26c   :  { %v1954_v34 = vpack.c.bf16 %v7277_v59, %v808_v63  ;;  %7396 = vmatmul.mubr.msk.bf16.vlgmr.msra.gmra.mrb[64].mxu0 %vm845_vm0, %v1879_v61  ;;  %7431 = vmatprep.subr.bf16.mxu1 %v7927_v1 }
 0x26d   :  { %7411 = vmatprep.mubr.msk.bf16.mxu0 %vm7928_vm1, %v7927_v1 }
 0x26e   :  { %7403 = vmatprep.mubr.msk.bf16.mxu1 %vm845_vm0, %v1954_v34 }
 0x26f   :  { %7404 = vmatmul.mubr.msk.bf16.vlgmr.msra.gmra.mrb[72].mxu1 %vm845_vm0, %v1955_v0 }
 0x270   :  { %7439 = vmatprep.mubr.msk.bf16.mxu1 %vm7928_vm1, %v7927_v1  ;;  %7432 = vmatpush3.bf16.msra.mxu1 %v7644_v14 }
 0x271   :  { %7433 = vmatprep.subr.bf16.mxu1 %v7927_v1 }
 0x274   :  { %7434 = vmatpush3.bf16.msra.mxu1 %v7645_v19 }
 0x275   :  { %7435 = vmatprep.subr.bf16.mxu1 %v7927_v1 }
 0x278   :  { %7436 = vmatpush3.bf16.msra.mxu1 %v7647_v22 }
 0x279   :  { %7437 = vmatprep.subr.bf16.mxu1 %v7927_v1 }
 0x2ea   :  { %v7293_v2 = vpop.f32.mrb[32].mxu0 }
 0x2eb   :  { %v952_v3 = vpop.f32.mrb[33].mxu0 }
 0x2ec   :  { %v7294_v4 = vpop.f32.mrb[34].mxu0 }
 0x2ed   :  { %v955_v5 = vpop.f32.mrb[35].mxu0 }
 0x2f1   :  { %v7285_v6 = vpop.f32.mrb[48].mxu1 }
 0x2f2   :  { %v961_v7 = vadd.f32 %v7293_v2, %v7285_v6  ;;  %v886_v8 = vpop.f32.mrb[49].mxu1 }
 0x2f3   :  { %v953_v9 = vadd.f32 %v952_v3, %v886_v8  ;;  %v7286_v10 = vpop.f32.mrb[50].mxu1 }
 0x2f4   :  { %v889_v11 = vpop.f32.mrb[51].mxu1 }
 0x2f5   :  { %v956_v12 = vadd.f32 %v955_v5, %v889_v11 }
 0x2f7   :  { %v7301_v13 = vpop.f32.mrb[36].mxu0 }
 0x2f8   :  { %v1041_v15 = vadd.f32 %v7301_v13, %v961_v7  ;;  %v1025_v16 = vpop.f32.mrb[37].mxu0 }
 0x2f9   :  { %v1039_v17 = vadd.f32 %v1025_v16, %v953_v9  ;;  %v7302_v18 = vpop.f32.mrb[38].mxu0 }
 0x2fa   :  { %v1028_v20 = vpop.f32.mrb[39].mxu0 }
 0x2fb   :  { %v1040_v21 = vadd.f32 %v1028_v20, %v956_v12 }
 0x2ff   :  { %v7309_v23 = vpop.f32.mrb[40].mxu0 }
 0x300   :  { %v1117_v24 = vadd.f32 %v7309_v23, %v1041_v15  ;;  %v1101_v25 = vpop.f32.mrb[41].mxu0 }
 0x301   :  { %v1115_v26 = vadd.f32 %v1101_v25, %v1039_v17  ;;  %v7310_v27 = vpop.f32.mrb[42].mxu0 }
 0x302   :  { %v1104_v28 = vpop.f32.mrb[43].mxu0 }
 0x303   :  { %v1116_v29 = vadd.f32 %v1104_v28, %v1040_v21 }
 0x307   :  { %v7317_v30 = vpop.f32.mrb[44].mxu0 }
 0x308   :  { %v1193_v31 = vadd.f32 %v7317_v30, %v1117_v24  ;;  %v1177_v32 = vpop.f32.mrb[45].mxu0 }
 0x309   :  { %v1191_v33 = vadd.f32 %v1177_v32, %v1115_v26  ;;  %v7318_v35 = vpop.f32.mrb[46].mxu0  ;;  %v7325_v36 = vpop.f32.mrb[52].mxu1 }
 0x30a   :  { %v1269_v37 = vadd.f32 %v7325_v36, %v1193_v31  ;;  %v1180_v38 = vpop.f32.mrb[47].mxu0  ;;  %v1253_v39 = vpop.f32.mrb[53].mxu1 }
 0x30b   :  { %v1192_v40 = vadd.f32 %v1180_v38, %v1116_v29  ;;  %v1267_v41 = vadd.f32 %v1253_v39, %v1191_v33  ;;  %v7326_v42 = vpop.f32.mrb[54].mxu1 }
 0x30c   :  { %v1256_v43 = vpop.f32.mrb[55].mxu1 }
 0x30d   :  { %v1268_v44 = vadd.f32 %v1256_v43, %v1192_v40 }
 0x30f   :  { %v7333_v45 = vpop.f32.mrb[48].mxu0 }
 0x310   :  { %v1345_v46 = vadd.f32 %v7333_v45, %v1269_v37  ;;  %v1329_v47 = vpop.f32.mrb[49].mxu0  ;;  %v5982_v45 = vld [vmem:[%s9479_s6] ss:$0 sm:$0xff] }
 0x311   :  { %v1343_v48 = vadd.f32 %v1329_v47, %v1267_v41  ;;  %v7334_v49 = vpop.f32.mrb[50].mxu0 }
 0x312   :  { %v1332_v50 = vpop.f32.mrb[51].mxu0  ;;  %v7341_v51 = vpop.f32.mrb[56].mxu1 }
 0x313   :  { %v1344_v52 = vadd.f32 %v1332_v50, %v1268_v44  ;;  %v1421_v53 = vadd.f32 %v7341_v51, %v1345_v46  ;;  %v1405_v54 = vpop.f32.mrb[57].mxu1 }
 0x314   :  { %v1419_v55 = vadd.f32 %v1405_v54, %v1343_v48  ;;  %v7342_v56 = vpop.f32.mrb[58].mxu1 }
 0x315   :  { %v1408_v57 = vpop.f32.mrb[59].mxu1 }
 0x316   :  { %v1420_v58 = vadd.f32 %v1408_v57, %v1344_v52 }
 0x31a   :  { %v7349_v59 = vpop.f32.mrb[52].mxu0 }
 0x31b   :  { %v1497_v60 = vadd.f32 %v7349_v59, %v1421_v53  ;;  %v1481_v61 = vpop.f32.mrb[53].mxu0 }
 0x31c   :  { %v1495_v62 = vadd.f32 %v1481_v61, %v1419_v55  ;;  %v7350_v63 = vpop.f32.mrb[54].mxu0 }
 0x31d   :  { %v1484_v34 = vpop.f32.mrb[55].mxu0  ;;  %v7643_v63 = vld [vmem:[%s9478_s7 + $0x40] sm:$0xff]  }
 0x31e   :  { %v1496_v0 = vadd.f32 %v1484_v34, %v1420_v58  ;;  %v7646_v34 = vld [vmem:[%s9478_s7 + $0x48] sm:$0xff]  }
 0x321   :  { %v7357_v2 = vpop.f32.mrb[60].mxu1 }
 0x322   :  { %v1573_v3 = vadd.f32 %v7357_v2, %v1497_v60  ;;  %v1557_v4 = vpop.f32.mrb[61].mxu1  ;;  %v7640_v2 = vld [vmem:[%s9477_s2 + $0x10] sm:$0xff]  }
 0x323   :  { %v1571_v5 = vadd.f32 %v1557_v4, %v1495_v62  ;;  %v7358_v6 = vpop.f32.mrb[62].mxu1  ;;  %v7638_v62 = vld [vmem:[%s9477_s2] sm:$0xff]  }
 0x324   :  { %v1560_v7 = vpop.f32.mrb[63].mxu1  ;;  %v7642_v4 = vld [vmem:[%s9477_s2 + $0x20] ss:$0 sps:$4 sm:$0xff]   ;;  %v7649_v6 = vld [vmem:[%s9478_s7 + $0x50] sm:$0xff]  }
 0x325   :  { %v1572_v8 = vadd.f32 %v1560_v7, %v1496_v0  ;;  %v7639_v0 = vld [vmem:[%s9477_s2 + $0x8] sm:$0xff]   ;;  %v7653_v7 = vld [vmem:[%s9478_s7 + $0x58] sm:$0xff]  }
 0x327   :  { %v7365_v9 = vpop.f32.mrb[56].mxu0 }
 0x328   :  { %v1649_v10 = vadd.f32 %v7365_v9, %v1573_v3  ;;  %v1633_v11 = vpop.f32.mrb[57].mxu0  ;;  %v7641_v3 = vld [vmem:[%s9477_s2 + $0x18] sm:$0xff]  }
 0x329   :  { %v1647_v12 = vadd.f32 %v1633_v11, %v1571_v5  ;;  %v7366_v13 = vpop.f32.mrb[58].mxu0  ;;  %v7648_v5 = vld [vmem:[%s9478_s7 + $0x38] sm:$0xff]   ;;  %v7650_v11 = vld [vmem:[%s9478_s7] sm:$0xff]  }
 0x32a   :  { %v1636_v14 = vpop.f32.mrb[59].mxu0  ;;  %v7373_v15 = vpop.f32.mrb[64].mxu1  ;;  %7438 = vmatpush3.bf16.msra.mxu1 %v7648_v5 }
 0x32b   :  { %v1648_v16 = vadd.f32 %v1636_v14, %v1572_v8  ;;  %v1725_v17 = vadd.f32 %v7373_v15, %v1649_v10  ;;  %v1709_v18 = vpop.f32.mrb[65].mxu1  ;;  %7443 = vmatprep.subr.bf16.mxu1 %v7927_v1  ;;  %v7651_v14 = vld [vmem:[%s9478_s7 + $0x8] sm:$0xff]  }
 0x32c   :  { %v1723_v19 = vadd.f32 %v1709_v18, %v1647_v12  ;;  %v7374_v20 = vpop.f32.mrb[66].mxu1 }
 0x32d   :  { %v1712_v21 = vpop.f32.mrb[67].mxu1 }
 0x32e   :  { %v1724_v22 = vadd.f32 %v1712_v21, %v1648_v16  ;;  %v7656_v16 = vld [vmem:[%s9478_s7 + $0x80] sm:$0xff]  }
 0x332   :  { %v7381_v23 = vpop.f32.mrb[60].mxu0 }
 0x333   :  { %v1801_v24 = vadd.f32 %v7381_v23, %v1725_v17  ;;  %v1785_v25 = vpop.f32.mrb[61].mxu0  ;;  %v7654_v23 = vld [vmem:[%s9478_s7 + $0x18] sm:$0xff]  }
 0x334   :  { %v1799_v26 = vadd.f32 %v1785_v25, %v1723_v19  ;;  %v7382_v27 = vpop.f32.mrb[62].mxu0  ;;  %v7652_v19 = vld [vmem:[%s9478_s7 + $0x10] sm:$0xff]  }
 0x335   :  { %v1788_v28 = vpop.f32.mrb[63].mxu0  ;;  %v7655_v27 = vld [vmem:[%s9478_s7 + $0x60] sm:$0xff]  }
 0x336   :  { %v1800_v29 = vadd.f32 %v1788_v28, %v1724_v22  ;;  %v7658_v22 = vld [vmem:[%s9478_s7 + $0x88] sm:$0xff]  }
 0x339   :  { %v7389_v30 = vpop.f32.mrb[68].mxu1 }
 0x33a   :  { %v1877_v31 = vadd.f32 %v7389_v30, %v1801_v24  ;;  %v1861_v32 = vpop.f32.mrb[69].mxu1  ;;  %v7660_v24 = vld [vmem:[%s9478_s7 + $0x90] sm:$0xff]  }
 0x33b   :  { %v1875_v33 = vadd.f32 %v1861_v32, %v1799_v26  ;;  %v7390_v35 = vpop.f32.mrb[70].mxu1  ;;  %v7657_v32 = vld [vmem:[%s9478_s7 + $0x68] sm:$0xff]  }
 0x33c   :  { %v1864_v36 = vpop.f32.mrb[71].mxu1  ;;  %v7664_v35 = vld [vmem:[%s9478_s7 + $0xc0] sm:$0xff]  }
 0x33d   :  { %v1876_v37 = vadd.f32 %v1864_v36, %v1800_v29 }
 0x33f   :  { %v7397_v38 = vpop.f32.mrb[64].mxu0 }
 0x340   :  { %v1953_v39 = vadd.f32 %v7397_v38, %v1877_v31  ;;  %v1937_v40 = vpop.f32.mrb[65].mxu0  ;;  %v7662_v31 = vld [vmem:[%s9478_s7 + $0x98] sm:$0xff]   ;;  %v7659_v38 = vld [vmem:[%s9478_s7 + $0x70] sm:$0xff]  }
 0x341   :  { %v1951_v41 = vadd.f32 %v1937_v40, %v1875_v33  ;;  %v7398_v42 = vpop.f32.mrb[66].mxu0 }
 0x342   :  { %v1940_v43 = vpop.f32.mrb[67].mxu0  ;;  %v7405_v44 = vpop.f32.mrb[72].mxu1  ;;  %v7661_v42 = vld [vmem:[%s9478_s7 + $0x78] sm:$0xff]  }
 0x343   :  { %v1952_v46 = vadd.f32 %v1940_v43, %v1876_v37  ;;  %v2029_v47 = vadd.f32 %v7405_v44, %v1953_v39  ;;  %v2013_v48 = vpop.f32.mrb[73].mxu1  ;;  %v7668_v43 = vld [vmem:[%s9478_s7 + $0xd0] sm:$0xff]  }
 0x344   :  { %v2027_v49 = vadd.f32 %v2013_v48, %v1951_v41  ;;  %v7406_v50 = vpop.f32.mrb[74].mxu1  ;;  %v7666_v41 = vld [vmem:[%s9478_s7 + $0xc8] sm:$0xff]  }
 0x345   :  { %v2039_v51 = vadd.f32 %v5982_v45, %v2029_v47  ;;  %v2016_v52 = vpop.f32.mrb[75].mxu1  ;;  %v7670_v50 = vld [vmem:[%s9478_s7 + $0xd8] sm:$0xff]  }
 0x346   :  { %v2037_v53 = vadd.f32 %v5982_v45, %v2027_v49  ;;  %v2028_v54 = vadd.f32 %v2016_v52, %v1952_v46  ;;  %v7663_v46 = vld [vmem:[%s9478_s7 + $0xa0] sm:$0xff]  }
 0x347   :  { %v2042_v56 = vmax.f32 %v2039_v51, 0.0  ;;  %v7665_v51 = vld [vmem:[%s9478_s7 + $0xa8] sm:$0xff]  }
 0x348   :  { %v2038_v55 = vadd.f32 %v5982_v45, %v2028_v54  ;;  %v2040_v57 = vmax.f32 %v2037_v53, 0.0  ;;  %v7672_v53 = vld [vmem:[%s9478_s7 + $0x100] sm:$0xff]   ;;  %v7667_v54 = vld [vmem:[%s9478_s7 + $0xb0] sm:$0xff]  }
 0x349   :  { %v2044_v60 = vpack.c.bf16 %v2042_v56, %v2042_v56  ;;  %v7669_v56 = vld [vmem:[%s9478_s7 + $0xb8] sm:$0xff]  }
 0x34a   :  { %v2041_v58 = vmax.f32 %v2038_v55, 0.0  ;;  %v7674_v55 = vld [vmem:[%s9478_s7 + $0x108] sm:$0xff]  }
 0x34b   :  { %v2095_v61 = vsel %vm2093_vm2, %v2044_v60, 0  ;;  %v7678_v60 = vld [vmem:[%s9478_s7 + $0x118] sm:$0xff]  }
 0x34c   :  { %v2043_v59 = vpack.c.bf16 %v2041_v58, %v2040_v57  ;;  %v7676_v57 = vld [vmem:[%s9478_s7 + $0x110] sm:$0xff]   ;;  %v7671_v58 = vld [vmem:[%s9478_s7 + $0xe0] sm:$0xff]  }
 0x34e   :  { %7408 = vmatpush3.bf16.msra.mxu0 %v2043_v59 }
 0x34f   :  { %7409 = vmatprep.subr.bf16.mxu0 %v7927_v1 }
 0x352   :  { %7410 = vmatpush3.bf16.msra.mxu0 %v2095_v61  ;;  %v7673_v61 = vld [vmem:[%s9478_s7 + $0xe8] sm:$0xff]  }
 0x353   :  { %7455 = vmatprep.subr.bf16.mxu0 %v7927_v1 }
 0x355   :  { %7412 = vmatmul.mubr.msk.bf16.vlgmr.msra.gmra.mrb[68].mxu0 %vm2077_vm3, %v7638_v62 }
 0x356   :  { %7415 = vmatprep.mubr.msk.bf16.mxu0 %vm7928_vm1, %v7927_v1  ;;  %7456 = vmatpush3.bf16.msra.mxu0 %v7643_v63  ;;  %v7675_v63 = vld [vmem:[%s9478_s7 + $0xf0] sm:$0xff]  }
 0x357   :  { %7457 = vmatprep.subr.bf16.mxu0 %v7927_v1 }
 0x35a   :  { %7458 = vmatpush3.bf16.msra.mxu0 %v7646_v34  ;;  %v7677_v34 = vld [vmem:[%s9478_s7 + $0xf8] sm:$0xff]  }
 0x35b   :  { %7459 = vmatprep.subr.bf16.mxu0 %v7927_v1 }
 0x35d   :  { %7416 = vmatmul.mubr.msk.bf16.gmra.mrb[72].mxu0 %vm2077_vm3, %v7639_v0 }
 0x35e   :  { %7419 = vmatprep.mubr.msk.bf16.mxu0 %vm7928_vm1, %v7927_v1  ;;  %7460 = vmatpush3.bf16.msra.mxu0 %v7649_v6  ;;  %v2884_v6 = vld [vmem:[%s9480_s9 + $0x28] sm:$0xff] }
 0x35f   :  { %7461 = vmatprep.subr.bf16.mxu0 %v7927_v1 }
 0x362   :  { %7462 = vmatpush3.bf16.msra.mxu0 %v7653_v7  ;;  %v2887_v7 = vld [vmem:[%s9480_s9 + $0x40] sm:$0xff] }
 0x363   :  { %7479 = vmatprep.subr.bf16.mxu0 %v7927_v1 }
 0x365   :  { %7420 = vmatmul.mubr.msk.bf16.gmra.mrb[76].mxu0 %vm2077_vm3, %v7640_v2  ;;  %v2879_v2 = vld [vmem:[%s9480_s9] sm:$0xff] }
 0x366   :  { %7423 = vmatprep.mubr.msk.bf16.mxu0 %vm7928_vm1, %v7927_v1 }
 0x36d   :  { %7424 = vmatmul.mubr.msk.bf16.gmra.mrb[80].mxu0 %vm2077_vm3, %v7641_v3  ;;  %v2883_v3 = vld [vmem:[%s9480_s9 + $0x20] sm:$0xff] }
 0x36e   :  { %7427 = vmatprep.mubr.msk.bf16.mxu0 %vm7928_vm1, %v7927_v1  ;;  %v6103_v5 = vcombine.low %v2879_v2, %v2883_v3 }
 0x375   :  { %7428 = vmatmul.mubr.msk.bf16.gmra.mrb[84].mxu0 %vm2077_vm3, %v7642_v4  ;;  %v2880_v4 = vld [vmem:[%s9480_s9 + $0x8] sm:$0xff] }
 0x376   :  { %7463 = vmatprep.mubr.msk.bf16.mxu0 %vm7928_vm1, %v7927_v1 }
 0x428   :  { %v2131_v8 = vpop.f32.mrb[68].mxu0 }
 0x429   :  { %v7413_v9 = vpop.f32.mrb[69].mxu0  ;;  %v2169_v29 = vpack.c.bf16 %v2131_v8, %v2131_v8  ;;  %v2891_v8 = vld [vmem:[%s9480_s9 + $0x60] sm:$0xff] }
 0x42a   :  { %v2134_v10 = vpop.f32.mrb[70].mxu0  ;;  %v6105_v9 = vcombine.low %v2880_v4, %v2884_v6 }
 0x42b   :  { %v2178_v12 = vpack.c.bf16 %v2134_v10, %v2134_v10  ;;  %v7414_v13 = vpop.f32.mrb[71].mxu0  ;;  %v6106_v10 = vcombine.high %v2880_v4, %v2884_v6 }
 0x42c   :  { %v2892_v13 = vld [vmem:[%s9480_s9 + $0x68] sm:$0xff] }
 0x42d   :  { %7440 = vmatmul.mubr.msk.bf16.vlgmr.msra.gmra.mrb[76].mxu1 %vm2212_vm4, %v2178_v12  ;;  %v2888_v12 = vld [vmem:[%s9480_s9 + $0x48] sm:$0xff] }
 0x42e   :  { %7444 = vmatpush3.bf16.msra.mxu1 %v7650_v11  ;;  %7451 = vmatprep.mubr.msk.bf16.mxu1 %vm7928_vm1, %v7927_v1  ;;  %v6112_v11 = vcombine.high %v2887_v7, %v2891_v8 }
 0x42f   :  { %7445 = vmatprep.subr.bf16.mxu1 %v7927_v1 }
 0x430   :  { %v2139_v15 = vpop.f32.mrb[72].mxu0 }
 0x431   :  { %v2323_v17 = vpack.c.bf16 %v2139_v15, %v2139_v15  ;;  %v7417_v18 = vpop.f32.mrb[73].mxu0  ;;  %v6111_v15 = vcombine.low %v2887_v7, %v2891_v8 }
 0x432   :  { %7446 = vmatpush3.bf16.msra.mxu1 %v7651_v14  ;;  %v8416_v20 = vpop.f32.mrb[74].mxu0  ;;  %v6114_v14 = vcombine.high %v2888_v12, %v2892_v13  ;;  %v2899_v18 = vld [vmem:[%s9480_s9 + $0xa0] sm:$0xff] }
 0x433   :  { %7447 = vmatprep.subr.bf16.mxu1 %v7927_v1  ;;  %v7418_v21 = vpop.f32.mrb[75].mxu0  ;;  %7464 = vmatmul.mubr.msk.bf16.vlgmr.msra.gmra.mrb[88].mxu0 %vm2212_vm4, %v2323_v17  ;;  %v2401_v48 = vpack.c.bf16 %v8416_v20, %v8416_v20  ;;  %v2895_v17 = vld [vmem:[%s9480_s9 + $0x80] sm:$0xff] }
 0x434   :  { %7480 = vmatpush3.bf16.msra.mxu0 %v7656_v16  ;;  %7487 = vmatprep.mubr.msk.bf16.mxu0 %vm7928_vm1, %v7927_v1  ;;  %v6113_v16 = vcombine.low %v2888_v12, %v2892_v13  ;;  %v6120_v20 = vcombine.high %v2895_v17, %v2899_v18  ;;  %v2900_v21 = vld [vmem:[%s9480_s9 + $0xa8] sm:$0xff] }
 0x435   :  { %7481 = vmatprep.subr.bf16.mxu0 %v7927_v1 }
 0x436   :  { %7448 = vmatpush3.bf16.msra.mxu1 %v7652_v19  ;;  %v2896_v19 = vld [vmem:[%s9480_s9 + $0x88] sm:$0xff] }
 0x437   :  { %7449 = vmatprep.subr.bf16.mxu1 %v7927_v1 }
 0x438   :  { %7482 = vmatpush3.bf16.msra.mxu0 %v7658_v22  ;;  %v2147_v25 = vpop.f32.mrb[76].mxu0  ;;  %v6119_v22 = vcombine.low %v2895_v17, %v2899_v18 }
 0x439   :  { %7483 = vmatprep.subr.bf16.mxu0 %v7927_v1  ;;  %v7421_v26 = vpop.f32.mrb[77].mxu0  ;;  %v2479_v33 = vpack.c.bf16 %v2147_v25, %v2147_v25  ;;  %v2903_v25 = vld [vmem:[%s9480_s9 + $0xc0] sm:$0xff] }
 0x43a   :  { %7450 = vmatpush3.bf16.msra.mxu1 %v7654_v23  ;;  %v8437_v28 = vpop.f32.mrb[78].mxu0  ;;  %v6121_v23 = vcombine.low %v2896_v19, %v2900_v21  ;;  %v2907_v26 = vld [vmem:[%s9480_s9 + $0xe0] sm:$0xff] }
 0x43b   :  { %7467 = vmatprep.subr.bf16.mxu1 %v7927_v1  ;;  %v7422_v30 = vpop.f32.mrb[79].mxu0  ;;  %v2557_v59 = vpack.c.bf16 %v8437_v28, %v8437_v28  ;;  %v2904_v28 = vld [vmem:[%s9480_s9 + $0xc8] sm:$0xff] }
 0x43c   :  { %7484 = vmatpush3.bf16.msra.mxu0 %v7660_v24  ;;  %v6122_v24 = vcombine.high %v2896_v19, %v2900_v21  ;;  %v6127_v30 = vcombine.low %v2903_v25, %v2907_v26  ;;  %v6102_v19 = vld [vmem:[%s9482_s8] ss:$0 sm:$0xff] }
 0x43d   :  { %7452 = vmatmul.mubr.msk.bf16.vlgmr.msra.gmra.mrb[80].mxu1 %vm2212_vm4, %v2169_v29  ;;  %7485 = vmatprep.subr.bf16.mxu0 %v7927_v1  ;;  %v2908_v29 = vld [vmem:[%s9480_s9 + $0xe8] sm:$0xff] }
 0x43e   :  { %7468 = vmatpush3.bf16.msra.mxu1 %v7655_v27  ;;  %7475 = vmatprep.mubr.msk.bf16.mxu1 %vm7928_vm1, %v7927_v1  ;;  %v6128_v27 = vcombine.high %v2903_v25, %v2907_v26  ;;  %v2893_v25 = vld [vmem:[%s9480_s9 + $0x70] sm:$0xff]  ;;  %v2890_v26 = vld [vmem:[%s9480_s9 + $0x58] sm:$0xff] }
 0x43f   :  { %7469 = vmatprep.subr.bf16.mxu1 %v7927_v1 }
 0x440   :  { %7486 = vmatpush3.bf16.msra.mxu0 %v7662_v31  ;;  %v2155_v36 = vpop.f32.mrb[80].mxu0  ;;  %v6129_v31 = vcombine.low %v2904_v28, %v2908_v29 }
 0x441   :  { %7503 = vmatprep.subr.bf16.mxu0 %v7927_v1  ;;  %v7425_v37 = vpop.f32.mrb[81].mxu0  ;;  %v2635_v52 = vpack.c.bf16 %v2155_v36, %v2155_v36  ;;  %v8606_v36 = vld [vmem:[%s9480_s9 + $0x18] sm:$0xff] }
 0x442   :  { %7470 = vmatpush3.bf16.msra.mxu1 %v7657_v32  ;;  %v8458_v39 = vpop.f32.mrb[82].mxu0  ;;  %v6130_v32 = vcombine.high %v2904_v28, %v2908_v29 }
 0x443   :  { %7471 = vmatprep.subr.bf16.mxu1 %v7927_v1  ;;  %7488 = vmatmul.mubr.msk.bf16.vlgmr.msra.gmra.mrb[92].mxu0 %vm2212_vm4, %v2479_v33  ;;  %v7426_v40 = vpop.f32.mrb[83].mxu0  ;;  %v2713_v0 = vpack.c.bf16 %v8458_v39, %v8458_v39  ;;  %v8596_v33 = vld [vmem:[%s9480_s9 + $0x10] sm:$0xff] }
 0x444   :  { %7504 = vmatpush3.bf16.msra.mxu0 %v7664_v35  ;;  %7511 = vmatprep.mubr.msk.bf16.mxu0 %vm7928_vm1, %v7927_v1  ;;  %v8601_v35 = vld [vmem:[%s9480_s9 + $0x30] sm:$0xff] }
 0x445   :  { %7505 = vmatprep.subr.bf16.mxu0 %v7927_v1  ;;  %v6108_v37 = vcombine.high %v8596_v33, %v8601_v35  ;;  %v6107_v39 = vcombine.low %v8596_v33, %v8601_v35  ;;  %v2906_v33 = vld [vmem:[%s9480_s9 + $0xd8] sm:$0xff] }
 0x446   :  { %7472 = vmatpush3.bf16.msra.mxu1 %v7659_v38  ;;  %v8613_v38 = vld [vmem:[%s9480_s9 + $0x38] sm:$0xff] }
 0x447   :  { %7473 = vmatprep.subr.bf16.mxu1 %v7927_v1  ;;  %v6109_v40 = vcombine.low %v8606_v36, %v8613_v38  ;;  %v2910_v35 = vld [vmem:[%s9480_s9 + $0xf8] sm:$0xff] }
 0x448   :  { %7506 = vmatpush3.bf16.msra.mxu0 %v7666_v41  ;;  %v2163_v44 = vpop.f32.mrb[84].mxu0  ;;  %v6110_v41 = vcombine.high %v8606_v36, %v8613_v38 }
 0x449   :  { %7507 = vmatprep.subr.bf16.mxu0 %v7927_v1  ;;  %v7429_v45 = vpop.f32.mrb[85].mxu0  ;;  %v2791_v62 = vpack.c.bf16 %v2163_v44, %v2163_v44 }
 0x44a   :  { %7474 = vmatpush3.bf16.msra.mxu1 %v7661_v42  ;;  %v2166_v47 = vpop.f32.mrb[86].mxu0  ;;  %v7929_v42 = vmov 0  }
 0x44b   :  { %7491 = vmatprep.subr.bf16.mxu1 %v7927_v1  ;;  %v7430_v49 = vpop.f32.mrb[87].mxu0 }
 0x44c   :  { %7508 = vmatpush3.bf16.msra.mxu0 %v7668_v43 }
 0x44d   :  { %7476 = vmatmul.mubr.msk.bf16.vlgmr.msra.gmra.mrb[84].mxu1 %vm2212_vm4, %v2401_v48  ;;  %7509 = vmatprep.subr.bf16.mxu0 %v7927_v1 }
 0x44e   :  { %7492 = vmatpush3.bf16.msra.mxu1 %v7663_v46  ;;  %7499 = vmatprep.mubr.msk.bf16.mxu1 %vm7928_vm1, %v7927_v1 }
 0x44f   :  { %7493 = vmatprep.subr.bf16.mxu1 %v7927_v1 }
 0x450   :  { %7510 = vmatpush3.bf16.msra.mxu0 %v7670_v50 }
 0x451   :  { %7527 = vmatprep.subr.bf16.mxu0 %v7927_v1 }
 0x452   :  { %7494 = vmatpush3.bf16.msra.mxu1 %v7665_v51 }
 0x453   :  { %7495 = vmatprep.subr.bf16.mxu1 %v7927_v1  ;;  %7512 = vmatmul.mubr.msk.bf16.vlgmr.msra.gmra.mrb[96].mxu0 %vm2212_vm4, %v2635_v52 }
 0x454   :  { %7528 = vmatpush3.bf16.msra.mxu0 %v7672_v53  ;;  %7535 = vmatprep.mubr.msk.bf16.mxu0 %vm7928_vm1, %v7927_v1 }
 0x455   :  { %7529 = vmatprep.subr.bf16.mxu0 %v7927_v1 }
 0x456   :  { %7496 = vmatpush3.bf16.msra.mxu1 %v7667_v54 }
 0x457   :  { %7497 = vmatprep.subr.bf16.mxu1 %v7927_v1 }
 0x458   :  { %7530 = vmatpush3.bf16.msra.mxu0 %v7674_v55 }
 0x459   :  { %7531 = vmatprep.subr.bf16.mxu0 %v7927_v1 }
 0x45a   :  { %7498 = vmatpush3.bf16.msra.mxu1 %v7669_v56 }
 0x45b   :  { %7515 = vmatprep.subr.bf16.mxu1 %v7927_v1 }
 0x45c   :  { %7532 = vmatpush3.bf16.msra.mxu0 %v7676_v57 }
 0x45d   :  { %7500 = vmatmul.mubr.msk.bf16.vlgmr.msra.gmra.mrb[88].mxu1 %vm2212_vm4, %v2557_v59  ;;  %7533 = vmatprep.subr.bf16.mxu0 %v7927_v1 }
 0x45e   :  { %7516 = vmatpush3.bf16.msra.mxu1 %v7671_v58  ;;  %7523 = vmatprep.mubr.msk.bf16.mxu1 %vm7928_vm1, %v7927_v1 }
 0x45f   :  { %7517 = vmatprep.subr.bf16.mxu1 %v7927_v1 }
 0x460   :  { %7534 = vmatpush3.bf16.msra.mxu0 %v7678_v60 }
 0x461   :  { %3157 = vmatprep.subr.bf16.mxu0 %v6106_v10 }
 0x462   :  { %7518 = vmatpush3.bf16.msra.mxu1 %v7673_v61 }
 0x463   :  { %7519 = vmatprep.subr.bf16.mxu1 %v7927_v1  ;;  %7536 = vmatmul.mubr.msk.bf16.vlgmr.msra.gmra.mrb[100].mxu0 %vm2212_vm4, %v2791_v62 }
 0x464   :  { %3158 = vmatpush1.bf16.msra.mxu0 %v6105_v9  ;;  %3189 = vmatprep.mubr.bf16.mxu0 %v7929_v42 }
 0x465   :  { %3159 = vmatprep.subr.bf16.mxu0 %v6114_v14 }
 0x466   :  { %7520 = vmatpush3.bf16.msra.mxu1 %v7675_v63 }
 0x467   :  { %7521 = vmatprep.subr.bf16.mxu1 %v7927_v1  ;;  %v6104_v1 = vcombine.high %v2879_v2, %v2883_v3 }
 0x468   :  { %3160 = vmatpush1.bf16.msra.mxu0 %v6113_v16 }
 0x469   :  { %3161 = vmatprep.subr.bf16.mxu0 %v6122_v24  ;;  %v2889_v24 = vld [vmem:[%s9480_s9 + $0x50] sm:$0xff] }
 0x46a   :  { %7522 = vmatpush3.bf16.msra.mxu1 %v7677_v34 }
 0x46b   :  { %3116 = vmatprep.subr.bf16.mxu1 %v6104_v1 }
 0x46c   :  { %3162 = vmatpush1.bf16.msra.mxu0 %v6121_v23 }
 0x46d   :  { %7524 = vmatmul.mubr.msk.bf16.vlgmr.msra.gmra.mrb[92].mxu1 %vm2212_vm4, %v2713_v0  ;;  %3163 = vmatprep.subr.bf16.mxu0 %v6130_v32  ;;  %v2897_v32 = vld [vmem:[%s9480_s9 + $0x90] sm:$0xff] }
 0x46e   :  { %3117 = vmatpush1.bf16.msra.mxu1 %v6103_v5  ;;  %3148 = vmatprep.mubr.bf16.mxu1 %v7929_v42 }
 0x46f   :  { %3118 = vmatprep.subr.bf16.mxu1 %v6112_v11 }
 0x470   :  { %3164 = vmatpush1.bf16.msra.mxu0 %v6129_v31 }
 0x471   :  { %3239 = vmatprep.subr.bf16.mxu0 %v6110_v41  ;;  %v2898_v41 = vld [vmem:[%s9480_s9 + $0x98] sm:$0xff] }
 0x472   :  { %3119 = vmatpush1.bf16.msra.mxu1 %v6111_v15 }
 0x473   :  { %3120 = vmatprep.subr.bf16.mxu1 %v6120_v20 }
 0x476   :  { %3121 = vmatpush1.bf16.msra.mxu1 %v6119_v22 }
 0x477   :  { %3122 = vmatprep.subr.bf16.mxu1 %v6128_v27  ;;  %v2894_v27 = vld [vmem:[%s9480_s9 + $0x78] sm:$0xff] }
 0x478   :  { %v6118_v31 = vcombine.high %v2890_v26, %v2894_v27 }
 0x47a   :  { %3123 = vmatpush1.bf16.msra.mxu1 %v6127_v30  ;;  %v6116_v30 = vcombine.high %v2889_v24, %v2893_v25 }
 0x47b   :  { %3198 = vmatprep.subr.bf16.mxu1 %v6108_v37  ;;  %v2901_v37 = vld [vmem:[%s9480_s9 + $0xb0] sm:$0xff] }
 0x47c   :  { %v6123_v36 = vcombine.low %v2897_v32, %v2901_v37 }
 0x500   :  { %v2250_v43 = vpop.f32.mrb[76].mxu1 }
 0x501   :  { %v7441_v44 = vpop.f32.mrb[77].mxu1 }
 0x502   :  { %v2253_v45 = vpop.f32.mrb[78].mxu1  ;;  %v6115_v44 = vcombine.low %v2889_v24, %v2893_v25 }
 0x503   :  { %v7442_v46 = vpop.f32.mrb[79].mxu1  ;;  %v6117_v45 = vcombine.low %v2890_v26, %v2894_v27 }
 0x504   :  { %v6124_v46 = vcombine.high %v2897_v32, %v2901_v37 }
 0x506   :  { %v2394_v47 = vpop.f32.mrb[88].mxu0 }
 0x507   :  { %v7465_v48 = vpop.f32.mrb[89].mxu0 }
 0x508   :  { %v2397_v49 = vpop.f32.mrb[90].mxu0  ;;  %v2905_v48 = vld [vmem:[%s9480_s9 + $0xd0] sm:$0xff] }
 0x509   :  { %v7466_v50 = vpop.f32.mrb[91].mxu0  ;;  %v2909_v49 = vld [vmem:[%s9480_s9 + $0xf0] sm:$0xff] }
 0x50a   :  { %v6131_v50 = vcombine.low %v2905_v48, %v2909_v49 }
 0x510   :  { %v2317_v51 = vpop.f32.mrb[80].mxu1 }
 0x511   :  { %v2318_v52 = vadd.f32 %v2317_v51, %v2250_v43  ;;  %v7453_v53 = vpop.f32.mrb[81].mxu1  ;;  %v2902_v43 = vld [vmem:[%s9480_s9 + $0xb8] sm:$0xff]  ;;  %v6133_v51 = vcombine.low %v2906_v33, %v2910_v35 }
 0x512   :  { %v2320_v54 = vpop.f32.mrb[82].mxu1  ;;  %v6125_v38 = vcombine.low %v2898_v41, %v2902_v43  ;;  %v7681_v53 = vld [vmem:[%s9481_s11] sm:$0xff]  }
 0x513   :  { %v2400_v55 = vadd.f32 %v2394_v47, %v2318_v52  ;;  %v7454_v56 = vpop.f32.mrb[83].mxu1  ;;  %v6126_v47 = vcombine.high %v2898_v41, %v2902_v43  ;;  %v7679_v52 = vld [vmem:[%s9481_s11 + $0x40] sm:$0xff]  }
 0x514   :  { %v7682_v54 = vld [vmem:[%s9481_s11 + $0x80] sm:$0xff]   ;;  %v7684_v56 = vld [vmem:[%s9481_s11 + $0xc8] sm:$0xff]  }
 0x516   :  { %v2550_v57 = vpop.f32.mrb[92].mxu0 }
 0x517   :  { %v7489_v58 = vpop.f32.mrb[93].mxu0 }
 0x518   :  { %v2553_v59 = vpop.f32.mrb[94].mxu0  ;;  %v7686_v58 = vld [vmem:[%s9481_s11 + $0x88] sm:$0xff]  }
 0x519   :  { %v7490_v60 = vpop.f32.mrb[95].mxu0  ;;  %v7687_v59 = vld [vmem:[%s9481_s11 + $0x50] sm:$0xff]  }
 0x51a   :  { %v7688_v60 = vld [vmem:[%s9481_s11 + $0xd0] sm:$0xff]  }
 0x520   :  { %v2472_v61 = vpop.f32.mrb[84].mxu1 }
 0x521   :  { %v2478_v62 = vadd.f32 %v2472_v61, %v2400_v55  ;;  %v7477_v63 = vpop.f32.mrb[85].mxu1  ;;  %v7683_v55 = vld [vmem:[%s9481_s11 + $0x48] sm:$0xff]   ;;  %v7689_v61 = vld [vmem:[%s9481_s11 + $0x10] sm:$0xff]  }
 0x522   :  { %v2475_v34 = vpop.f32.mrb[86].mxu1  ;;  %v7691_v63 = vld [vmem:[%s9481_s11 + $0x58] sm:$0xff]  }
 0x523   :  { %v2556_v0 = vadd.f32 %v2550_v57, %v2478_v62  ;;  %v7478_v2 = vpop.f32.mrb[87].mxu1  ;;  %v7685_v57 = vld [vmem:[%s9481_s11 + $0x8] sm:$0xff]   ;;  %v7690_v62 = vld [vmem:[%s9481_s11 + $0x90] sm:$0xff]   ;;  %v7692_v34 = vld [vmem:[%s9481_s11 + $0xd8] sm:$0xff]  }
 0x524   :  { %v7694_v2 = vld [vmem:[%s9481_s11 + $0x98] sm:$0xff]  }
 0x526   :  { %v2706_v3 = vpop.f32.mrb[96].mxu0 }
 0x527   :  { %v7513_v4 = vpop.f32.mrb[97].mxu0 }
 0x528   :  { %v2709_v5 = vpop.f32.mrb[98].mxu0  ;;  %v7696_v4 = vld [vmem:[%s9481_s11 + $0xe0] sm:$0xff]  }
 0x529   :  { %v7514_v1 = vpop.f32.mrb[99].mxu0  ;;  %v7697_v5 = vld [vmem:[%s9481_s11 + $0x20] sm:$0xff]  }
 0x52a   :  { %v7698_v1 = vld [vmem:[%s9481_s11 + $0xa0] sm:$0xff]  }
 0x530   :  { %v2628_v6 = vpop.f32.mrb[88].mxu1 }
 0x531   :  { %v2634_v7 = vadd.f32 %v2628_v6, %v2556_v0  ;;  %v7501_v8 = vpop.f32.mrb[89].mxu1  ;;  %v7693_v0 = vld [vmem:[%s9481_s11 + $0x18] sm:$0xff]   ;;  %v7699_v6 = vld [vmem:[%s9481_s11 + $0x68] sm:$0xff]  }
 0x532   :  { %v2631_v9 = vpop.f32.mrb[90].mxu1  ;;  %v7701_v8 = vld [vmem:[%s9481_s11 + $0x28] sm:$0xff]  }
 0x533   :  { %v2712_v10 = vadd.f32 %v2706_v3, %v2634_v7  ;;  %v7502_v11 = vpop.f32.mrb[91].mxu1  ;;  %v7695_v3 = vld [vmem:[%s9481_s11 + $0x60] sm:$0xff]   ;;  %v7700_v7 = vld [vmem:[%s9481_s11 + $0xe8] sm:$0xff]  }
 0x534   :  { %v7702_v9 = vld [vmem:[%s9481_s11 + $0xa8] sm:$0xff]   ;;  %v7704_v11 = vld [vmem:[%s9481_s11 + $0xf0] sm:$0xff]  }
 0x536   :  { %v2862_v12 = vpop.f32.mrb[100].mxu0 }
 0x537   :  { %v7537_v13 = vpop.f32.mrb[101].mxu0 }
 0x538   :  { %v2865_v14 = vpop.f32.mrb[102].mxu0  ;;  %v7706_v13 = vld [vmem:[%s9481_s11 + $0xb0] sm:$0xff]  }
 0x539   :  { %v7538_v15 = vpop.f32.mrb[103].mxu0  ;;  %v7707_v14 = vld [vmem:[%s9481_s11 + $0x78] sm:$0xff]  }
 0x53a   :  { %v7708_v15 = vld [vmem:[%s9481_s11 + $0xf8] sm:$0xff]  }
 0x540   :  { %v2784_v16 = vpop.f32.mrb[92].mxu1 }
 0x541   :  { %v2790_v17 = vadd.f32 %v2784_v16, %v2712_v10  ;;  %v7525_v18 = vpop.f32.mrb[93].mxu1  ;;  %v7703_v10 = vld [vmem:[%s9481_s11 + $0x70] sm:$0xff]   ;;  %v7709_v16 = vld [vmem:[%s9481_s11 + $0x38] sm:$0xff]  }
 0x542   :  { %v2787_v20 = vpop.f32.mrb[94].mxu1  ;;  %v7711_v18 = vld [vmem:[%s9483_s13 + $0x40] sm:$0xff]  }
 0x543   :  { %v2868_v21 = vadd.f32 %v2862_v12, %v2790_v17  ;;  %v7526_v22 = vpop.f32.mrb[95].mxu1  ;;  %v7705_v12 = vld [vmem:[%s9481_s11 + $0x30] sm:$0xff]   ;;  %v7710_v17 = vld [vmem:[%s9481_s11 + $0xb8] sm:$0xff]   ;;  %v2913_v20 = vlaneseq }
 0x544   :  { %v8781_v22 = vld [vmem:[%s9484_s10] sm:$0xff] }
 0x545   :  { %v2876_v23 = vadd.f32 %v6102_v19, %v2868_v21  ;;  %v7712_v19 = vld [vmem:[%s9483_s13 + $0xc0] sm:$0xff]   ;;  %v8776_v21 = vshrl.u32 %v2913_v20, 7 }
 0x546   :  { %v7730_v20 = vld [vmem:[%s9483_s13 + $0xa0] sm:$0xff]  }
 0x547   :  { %v2877_v28 = vmax.f32 %v2876_v23, 0.0  ;;  %v2915_v23 = vsub.s32 0, %v8776_v21  ;;  %v2923_v24 = vsub.s32 2, %v8776_v21  ;;  %v2919_v25 = vsub.s32 1, %v8776_v21 }
 0x548   :  { %v2927_v26 = vsub.s32 3, %v8776_v21 }
 0x549   :  { %v2878_v29 = vpack.c.bf16 %v2877_v28, %v2877_v28  ;;  %v2916_v27 = vrot.slane %v8781_v22, %v2915_v23  ;;  %v2924_v28 = vrot.slane %v8781_v22, %v2923_v24  ;;  %v2931_v23 = vsub.s32 4, %v8776_v21 }
 0x54b   :  { %6135 = vmatmul.mubr.msk.bf16.vlgmr.msra.gmra.mrb[96].mxu1 %vm2212_vm4, %v2878_v29  ;;  %6136 = vmatmul.mubr.msk.bf16.vlgmr.msra.gmra.mrb[104].mxu0 %vm2212_vm4, %v2878_v29 }
 0x54c   :  { %3199 = vmatpush1.bf16.msra.mxu1 %v6107_v39  ;;  %3240 = vmatpush1.bf16.msra.mxu0 %v6109_v40  ;;  %v6132_v39 = vcombine.high %v2905_v48, %v2909_v49  ;;  %v6134_v40 = vcombine.high %v2906_v33, %v2910_v35 }
 0x54d   :  { %3200 = vmatprep.subr.bf16.mxu1 %v6116_v30  ;;  %3241 = vmatprep.subr.bf16.mxu0 %v6118_v31  ;;  %v2928_v30 = vrot.slane %v8781_v22, %v2927_v26  ;;  %v7731_v26 = vld [vmem:[%s9483_s13 + $0x68] sm:$0xff]  }
 0x54e   :  { %3230 = vmatprep.mubr.bf16.mxu1 %v7929_v42  ;;  %3271 = vmatprep.mubr.bf16.mxu0 %v7929_v42  ;;  %v7680_v42 = vld [vmem:[%s9481_s11 + $0xc0] sm:$0xff]  }
 0x550   :  { %3201 = vmatpush1.bf16.msra.mxu1 %v6115_v44  ;;  %3242 = vmatpush1.bf16.msra.mxu0 %v6117_v45 }
 0x551   :  { %3202 = vmatprep.subr.bf16.mxu1 %v6124_v46  ;;  %3243 = vmatprep.subr.bf16.mxu0 %v6126_v47 }
 0x554   :  { %3203 = vmatpush1.bf16.msra.mxu1 %v6123_v36  ;;  %3244 = vmatpush1.bf16.msra.mxu0 %v6125_v38 }
 0x555   :  { %3204 = vmatprep.subr.bf16.mxu1 %v6132_v39  ;;  %3245 = vmatprep.subr.bf16.mxu0 %v6134_v40  ;;  %v7713_v40 = vld [vmem:[%s9483_s13] sm:$0xff]  }
 0x558   :  { %3205 = vmatpush1.bf16.msra.mxu1 %v6131_v50  ;;  %3246 = vmatpush1.bf16.msra.mxu0 %v6133_v51  ;;  %v7714_v50 = vld [vmem:[%s9483_s13 + $0x80] sm:$0xff]  }
 0x559   :  { %6907 = vmatprep.subr.bf16.mxu1 %v7679_v52  ;;  %6929 = vmatprep.subr.bf16.mxu0 %v7680_v42  ;;  %v7715_v42 = vld [vmem:[%s9483_s13 + $0x48] sm:$0xff]  }
 0x55b   :  { %6137 = vmatmul.mubr.msk.bf16.vlgmr.msra.gmra.mrb[100].mxu1 %vm2212_vm4, %v2878_v29  ;;  %6138 = vmatmul.mubr.msk.bf16.vlgmr.msra.gmra.mrb[108].mxu0 %vm2212_vm4, %v2878_v29  ;;  %v2920_v29 = vrot.slane %v8781_v22, %v2919_v25 }
 0x55c   :  { %6908 = vmatpush3.bf16.msra.mxu1 %v7681_v53  ;;  %6930 = vmatpush3.bf16.msra.mxu0 %v7682_v54 }
 0x55d   :  { %6909 = vmatprep.subr.bf16.mxu1 %v7683_v55  ;;  %6931 = vmatprep.subr.bf16.mxu0 %v7684_v56  ;;  %v7716_v55 = vld [vmem:[%s9483_s13 + $0xc8] sm:$0xff]  }
 0x55e   :  { %v7717_v56 = vld [vmem:[%s9483_s13 + $0x8] sm:$0xff]  }
 0x560   :  { %6910 = vmatpush3.bf16.msra.mxu1 %v7685_v57  ;;  %6932 = vmatpush3.bf16.msra.mxu0 %v7686_v58  ;;  %v7718_v57 = vld [vmem:[%s9483_s13 + $0x88] sm:$0xff]   ;;  %v2935_v58 = vsub.s32 5, %v8776_v21 }
 0x561   :  { %6911 = vmatprep.subr.bf16.mxu1 %v7687_v59  ;;  %6933 = vmatprep.subr.bf16.mxu0 %v7688_v60  ;;  %v2943_v59 = vsub.s32 7, %v8776_v21  ;;  %v7719_v60 = vld [vmem:[%s9483_s13 + $0x50] sm:$0xff]  }
 0x564   :  { %6912 = vmatpush3.bf16.msra.mxu1 %v7689_v61  ;;  %6934 = vmatpush3.bf16.msra.mxu0 %v7690_v62  ;;  %v7720_v61 = vld [vmem:[%s9483_s13 + $0xd0] sm:$0xff]  }
 0x565   :  { %6913 = vmatprep.subr.bf16.mxu1 %v7691_v63  ;;  %6935 = vmatprep.subr.bf16.mxu0 %v7692_v34  ;;  %v7721_v62 = vld [vmem:[%s9483_s13 + $0x10] sm:$0xff]   ;;  %v2936_v34 = vrot.slane %v8781_v22, %v2935_v58  ;;  %v7755_v58 = vld [vmem:[%s9483_s13 + $0x158] sm:$0xff]  }
 0x566   :  { %v7722_v63 = vld [vmem:[%s9483_s13 + $0x90] sm:$0xff]  }
 0x568   :  { %6914 = vmatpush3.bf16.msra.mxu1 %v7693_v0  ;;  %6936 = vmatpush3.bf16.msra.mxu0 %v7694_v2  ;;  %v2944_v0 = vrot.slane %v8781_v22, %v2943_v59  ;;  %v7723_v2 = vld [vmem:[%s9483_s13 + $0x58] sm:$0xff]  }
 0x569   :  { %6915 = vmatprep.subr.bf16.mxu1 %v7695_v3  ;;  %6937 = vmatprep.subr.bf16.mxu0 %v7696_v4  ;;  %v7724_v3 = vld [vmem:[%s9483_s13 + $0xd8] sm:$0xff]  }
 0x56a   :  { %v7756_v59 = vld [vmem:[%s9483_s13 + $0x1d8] sm:$0xff]  }
 0x56c   :  { %6916 = vmatpush3.bf16.msra.mxu1 %v7697_v5  ;;  %6938 = vmatpush3.bf16.msra.mxu0 %v7698_v1  ;;  %v7725_v1 = vld [vmem:[%s9483_s13 + $0x18] sm:$0xff]  }
 0x56d   :  { %6917 = vmatprep.subr.bf16.mxu1 %v7699_v6  ;;  %6939 = vmatprep.subr.bf16.mxu0 %v7700_v7  ;;  %v7726_v6 = vld [vmem:[%s9483_s13 + $0x98] sm:$0xff]  }
 0x570   :  { %6918 = vmatpush3.bf16.msra.mxu1 %v7701_v8  ;;  %6940 = vmatpush3.bf16.msra.mxu0 %v7702_v9 }
 0x571   :  { %6919 = vmatprep.subr.bf16.mxu1 %v7703_v10  ;;  %6941 = vmatprep.subr.bf16.mxu0 %v7704_v11 }
 0x574   :  { %6920 = vmatpush3.bf16.msra.mxu1 %v7705_v12  ;;  %6942 = vmatpush3.bf16.msra.mxu0 %v7706_v13 }
 0x575   :  { %6921 = vmatprep.subr.bf16.mxu1 %v7707_v14  ;;  %6943 = vmatprep.subr.bf16.mxu0 %v7708_v15  ;;  %v7727_v15 = vld [vmem:[%s9483_s13 + $0x60] sm:$0xff]  }
 0x578   :  { %6922 = vmatpush3.bf16.msra.mxu1 %v7709_v16  ;;  %6944 = vmatpush3.bf16.msra.mxu0 %v7710_v17  ;;  %v7728_v16 = vld [vmem:[%s9483_s13 + $0xe0] sm:$0xff]  }
 0x579   :  { %6951 = vmatprep.subr.bf16.mxu1 %v7711_v18  ;;  %6973 = vmatprep.subr.bf16.mxu0 %v7712_v19  ;;  %v7729_v19 = vld [vmem:[%s9483_s13 + $0x20] sm:$0xff]  }
 0x61e   :  { %v3150_v31 = vpop.f32.mrb[96].mxu1  ;;  %v3191_v32 = vpop.f32.mrb[104].mxu0 }
 0x61f   :  { %v3151_v37 = vadd.f32 %v3150_v31, %v2916_v27  ;;  %v3192_v41 = vadd.f32 %v3191_v32, %v2924_v28  ;;  %v3152_v43 = vpop.f32.mrb[97].mxu1  ;;  %v3193_v44 = vpop.f32.mrb[105].mxu0  ;;  %v2939_v27 = vsub.s32 6, %v8776_v21  ;;  %v7732_v28 = vld [vmem:[%s9483_s13 + $0xe8] sm:$0xff]   ;;  %v7735_v21 = vld [vmem:[%s9483_s13 + $0x70] sm:$0xff]   ;;  %v2932_v31 = vrot.slane %v8781_v22, %v2931_v23 }
 0x620   :  { %v3153_v45 = vadd.f32 %v3152_v43, %v2920_v29  ;;  %v3194_v46 = vadd.f32 %v3193_v44, %v2928_v30  ;;  %v3154_v47 = vpop.f32.mrb[98].mxu1  ;;  %v3195_v48 = vpop.f32.mrb[106].mxu0  ;;  %v7733_v29 = vld [vmem:[%s9483_s13 + $0x28] sm:$0xff]   ;;  %v7738_v43 = vld [vmem:[%s9483_s13 + $0xb0] sm:$0xff]  }
 0x621   :  { %v3280_v49 = vmax.f32 %v3151_v37, 0.0  ;;  %v3282_v33 = vmax.f32 %v3192_v41, 0.0  ;;  %v3155_v35 = vpop.f32.mrb[99].mxu1  ;;  %v3196_v36 = vpop.f32.mrb[107].mxu0  ;;  %v7734_v30 = vld [vmem:[%s9483_s13 + $0xa8] sm:$0xff]   ;;  %v2940_v32 = vrot.slane %v8781_v22, %v2939_v27  ;;  %v7736_v37 = vld [vmem:[%s9483_s13 + $0xf0] sm:$0xff]  }
 0x622   :  { %v3281_v38 = vmax.f32 %v3153_v45, 0.0  ;;  %v3283_v39 = vmax.f32 %v3194_v46, 0.0  ;;  %v7737_v41 = vld [vmem:[%s9483_s13 + $0x30] sm:$0xff]   ;;  %v7739_v22 = vld [vmem:[%s9483_s13 + $0x78] sm:$0xff]  }
 0x623   :  { %v3288_v53 = vpack.c.bf16 %v3280_v49, %v3280_v49  ;;  %v3290_v54 = vpack.c.bf16 %v3282_v33, %v3282_v33  ;;  %v7740_v46 = vld [vmem:[%s9483_s13 + $0xf8] sm:$0xff]   ;;  %v7743_v49 = vld [vmem:[%s9483_s13 + $0x140] sm:$0xff]   ;;  %v7783_v23 = vld [vmem:[%s9483_s13 + $0x250] sm:$0xff]  }
 0x624   :  { %v3289_v51 = vpack.c.bf16 %v3281_v38, %v3281_v38  ;;  %v3291_v52 = vpack.c.bf16 %v3283_v39, %v3283_v39  ;;  %v7741_v47 = vld [vmem:[%s9483_s13 + $0x38] sm:$0xff]   ;;  %v7744_v33 = vld [vmem:[%s9483_s13 + $0x1c0] sm:$0xff]   ;;  %v7785_v27 = vld [vmem:[%s9483_s13 + $0x210] sm:$0xff]  }
 0x625   :  { %v7742_v48 = vld [vmem:[%s9483_s13 + $0xb8] sm:$0xff]   ;;  %v7745_v38 = vld [vmem:[%s9483_s13 + $0x100] sm:$0xff]  }
 0x626   :  { %3591 = vmatprep.mubr.bf16.mxu1 %v3289_v51  ;;  %3631 = vmatprep.mubr.bf16.mxu0 %v3291_v52  ;;  %v7746_v39 = vld [vmem:[%s9483_s13 + $0x180] sm:$0xff]   ;;  %v7747_v51 = vld [vmem:[%s9483_s13 + $0x148] sm:$0xff]  }
 0x627   :  { %3592 = vmatmul.mubr.bf16.vlgmr.msra.gmra.mrb[104].mxu1 %v3288_v53  ;;  %3632 = vmatmul.mubr.bf16.vlgmr.msra.gmra.mrb[112].mxu0 %v3290_v54  ;;  %v7748_v52 = vld [vmem:[%s9483_s13 + $0x1c8] sm:$0xff]   ;;  %v7751_v54 = vld [vmem:[%s9483_s13 + $0x150] sm:$0xff]  }
 0x628   :  { %6952 = vmatpush3.bf16.msra.mxu1 %v7713_v40  ;;  %6974 = vmatpush3.bf16.msra.mxu0 %v7714_v50  ;;  %v7750_v53 = vld [vmem:[%s9483_s13 + $0x188] sm:$0xff]  }
 0x629   :  { %6953 = vmatprep.subr.bf16.mxu1 %v7715_v42  ;;  %6975 = vmatprep.subr.bf16.mxu0 %v7716_v55  ;;  %v7749_v42 = vld [vmem:[%s9483_s13 + $0x108] sm:$0xff]   ;;  %v7752_v55 = vld [vmem:[%s9483_s13 + $0x1d0] sm:$0xff]  }
 0x62c   :  { %6954 = vmatpush3.bf16.msra.mxu1 %v7717_v56  ;;  %6976 = vmatpush3.bf16.msra.mxu0 %v7718_v57  ;;  %v7753_v56 = vld [vmem:[%s9483_s13 + $0x110] sm:$0xff]  }
 0x62d   :  { %6955 = vmatprep.subr.bf16.mxu1 %v7719_v60  ;;  %6977 = vmatprep.subr.bf16.mxu0 %v7720_v61  ;;  %v7754_v57 = vld [vmem:[%s9483_s13 + $0x190] sm:$0xff]   ;;  %v7757_v60 = vld [vmem:[%s9483_s13 + $0x118] sm:$0xff]  }
 0x62e   :  { %v3232_v4 = vpop.f32.mrb[100].mxu1  ;;  %v3273_v5 = vpop.f32.mrb[108].mxu0  ;;  %v7758_v61 = vld [vmem:[%s9483_s13 + $0x198] sm:$0xff]  }
 0x62f   :  { %v3234_v7 = vpop.f32.mrb[101].mxu1  ;;  %v3275_v8 = vpop.f32.mrb[109].mxu0  ;;  %v3233_v44 = vadd.f32 %v3232_v4, %v2932_v31  ;;  %v3274_v45 = vadd.f32 %v3273_v5, %v2940_v32  ;;  %v7765_v4 = vld [vmem:[%s9483_s13 + $0x128] sm:$0xff]   ;;  %v7790_v31 = vld [vmem:[%s9483_s13 + $0x298] sm:$0xff]   ;;  %v7791_v32 = vld [vmem:[%s9483_s13 + $0x260] sm:$0xff]  }
 0x630   :  { %v3235_v9 = vadd.f32 %v3234_v7, %v2936_v34  ;;  %v3276_v10 = vadd.f32 %v3275_v8, %v2944_v0  ;;  %v3236_v11 = vpop.f32.mrb[102].mxu1  ;;  %v3277_v12 = vpop.f32.mrb[110].mxu0  ;;  %6956 = vmatpush3.bf16.msra.mxu1 %v7721_v62  ;;  %6978 = vmatpush3.bf16.msra.mxu0 %v7722_v63  ;;  %v7759_v62 = vld [vmem:[%s9483_s13 + $0x160] sm:$0xff]   ;;  %v7766_v5 = vld [vmem:[%s9483_s13 + $0x1a8] sm:$0xff]   ;;  %v7769_v7 = vld [vmem:[%s9483_s13 + $0x130] sm:$0xff]  }
 0x631   :  { %v3237_v13 = vpop.f32.mrb[103].mxu1  ;;  %v3278_v14 = vpop.f32.mrb[111].mxu0  ;;  %6957 = vmatprep.subr.bf16.mxu1 %v7723_v2  ;;  %6979 = vmatprep.subr.bf16.mxu0 %v7724_v3  ;;  %v3284_v35 = vmax.f32 %v3233_v44, 0.0  ;;  %v3286_v36 = vmax.f32 %v3274_v45, 0.0  ;;  %v7760_v63 = vld [vmem:[%s9483_s13 + $0x1e0] sm:$0xff]   ;;  %v7763_v2 = vld [vmem:[%s9483_s13 + $0x168] sm:$0xff]  }
 0x632   :  { %v3285_v17 = vmax.f32 %v3235_v9, 0.0  ;;  %v3287_v18 = vmax.f32 %v3276_v10, 0.0  ;;  %v7761_v34 = vld [vmem:[%s9483_s13 + $0x120] sm:$0xff]   ;;  %v7764_v3 = vld [vmem:[%s9483_s13 + $0x1e8] sm:$0xff]   ;;  %v7770_v8 = vld [vmem:[%s9483_s13 + $0x1b0] sm:$0xff]  }
 0x633   :  { %v8907_v40 = vpack.c.bf16 %v3284_v35, %v3284_v35  ;;  %v8909_v50 = vpack.c.bf16 %v3286_v36, %v3286_v36  ;;  %v7762_v0 = vld [vmem:[%s9483_s13 + $0x1a0] sm:$0xff]   ;;  %v7771_v9 = vld [vmem:[%s9483_s13 + $0x178] sm:$0xff]   ;;  %v7796_v44 = vld [vmem:[%s9483_s13 + $0x2e8] sm:$0xff]  }
 0x634   :  { %v8850_v24 = vpack.c.bf16 %v3285_v17, %v3285_v17  ;;  %v8852_v25 = vpack.c.bf16 %v3287_v18, %v3287_v18  ;;  %6958 = vmatpush3.bf16.msra.mxu1 %v7725_v1  ;;  %6980 = vmatpush3.bf16.msra.mxu0 %v7726_v6  ;;  %v7767_v1 = vld [vmem:[%s9483_s13 + $0x170] sm:$0xff]   ;;  %v7772_v10 = vld [vmem:[%s9483_s13 + $0x1f8] sm:$0xff]   ;;  %v7775_v13 = vld [vmem:[%s9483_s13 + $0x240] sm:$0xff]  }
 0x635   :  { %6959 = vmatprep.subr.bf16.mxu1 %v7727_v15  ;;  %6981 = vmatprep.subr.bf16.mxu0 %v7728_v16  ;;  %v7768_v6 = vld [vmem:[%s9483_s13 + $0x1f0] sm:$0xff]   ;;  %v7773_v11 = vld [vmem:[%s9483_s13 + $0x138] sm:$0xff]   ;;  %v7776_v14 = vld [vmem:[%s9483_s13 + $0x2c0] sm:$0xff]  }
 0x636   :  { %3934 = vmatprep.mubr.bf16.mxu1 %v8850_v24  ;;  %3974 = vmatprep.mubr.bf16.mxu0 %v8852_v25  ;;  %v7774_v12 = vld [vmem:[%s9483_s13 + $0x1b8] sm:$0xff]   ;;  %v7777_v15 = vld [vmem:[%s9483_s13 + $0x200] sm:$0xff]   ;;  %v7779_v17 = vld [vmem:[%s9483_s13 + $0x248] sm:$0xff]  }
 0x637   :  { %v7778_v16 = vld [vmem:[%s9483_s13 + $0x280] sm:$0xff]   ;;  %v7780_v18 = vld [vmem:[%s9483_s13 + $0x2c8] sm:$0xff]   ;;  %v7803_v35 = vld [vmem:[%s9483_s13 + $0x278] sm:$0xff]  }
 0x638   :  { %6960 = vmatpush3.bf16.msra.mxu1 %v7729_v19  ;;  %6982 = vmatpush3.bf16.msra.mxu0 %v7730_v20  ;;  %v7781_v19 = vld [vmem:[%s9483_s13 + $0x208] sm:$0xff]   ;;  %v7804_v36 = vld [vmem:[%s9483_s13 + $0x2f8] sm:$0xff]  }
 0x639   :  { %6961 = vmatprep.subr.bf16.mxu1 %v7731_v26  ;;  %6983 = vmatprep.subr.bf16.mxu0 %v7732_v28  ;;  %v7782_v20 = vld [vmem:[%s9483_s13 + $0x288] sm:$0xff]   ;;  %v7784_v26 = vld [vmem:[%s9483_s13 + $0x2d0] sm:$0xff]  }
 0x63a   :  { %v7786_v28 = vld [vmem:[%s9483_s13 + $0x290] sm:$0xff]   ;;  %v7797_v45 = vld [vmem:[%s9483_s13 + $0x228] sm:$0xff]  }
 0x63c   :  { %6962 = vmatpush3.bf16.msra.mxu1 %v7733_v29  ;;  %6984 = vmatpush3.bf16.msra.mxu0 %v7734_v30  ;;  %v7787_v29 = vld [vmem:[%s9483_s13 + $0x258] sm:$0xff]  }
 0x63d   :  { %6963 = vmatprep.subr.bf16.mxu1 %v7735_v21  ;;  %6985 = vmatprep.subr.bf16.mxu0 %v7736_v37  ;;  %v7788_v30 = vld [vmem:[%s9483_s13 + $0x2d8] sm:$0xff]   ;;  %v7792_v37 = vld [vmem:[%s9483_s13 + $0x2e0] sm:$0xff]  }
 0x63e   :  { %v7789_v21 = vld [vmem:[%s9483_s13 + $0x218] sm:$0xff]  }
 0x640   :  { %6964 = vmatpush3.bf16.msra.mxu1 %v7737_v41  ;;  %6986 = vmatpush3.bf16.msra.mxu0 %v7738_v43  ;;  %v7793_v41 = vld [vmem:[%s9483_s13 + $0x220] sm:$0xff]  }
 0x641   :  { %6965 = vmatprep.subr.bf16.mxu1 %v7739_v22  ;;  %6987 = vmatprep.subr.bf16.mxu0 %v7740_v46  ;;  %v7794_v43 = vld [vmem:[%s9483_s13 + $0x2a0] sm:$0xff]   ;;  %v7795_v22 = vld [vmem:[%s9483_s13 + $0x268] sm:$0xff]  }
 0x642   :  { %v7798_v46 = vld [vmem:[%s9483_s13 + $0x2a8] sm:$0xff]  }
 0x644   :  { %6966 = vmatpush3.bf16.msra.mxu1 %v7741_v47  ;;  %6988 = vmatpush3.bf16.msra.mxu0 %v7742_v48  ;;  %v7799_v47 = vld [vmem:[%s9483_s13 + $0x270] sm:$0xff]  }
 0x645   :  { %6995 = vmatprep.subr.bf16.mxu1 %v7743_v49  ;;  %7017 = vmatprep.subr.bf16.mxu0 %v7744_v33  ;;  %v7800_v48 = vld [vmem:[%s9483_s13 + $0x2f0] sm:$0xff]  }
 0x646   :  { %v7801_v49 = vld [vmem:[%s9483_s13 + $0x230] sm:$0xff]  }
 0x647   :  { %3935 = vmatmul.mubr.bf16.vlgmr.msra.gmra.mrb[108].mxu1 %v8907_v40  ;;  %3975 = vmatmul.mubr.bf16.vlgmr.msra.gmra.mrb[116].mxu0 %v8909_v50  ;;  %v7802_v33 = vld [vmem:[%s9483_s13 + $0x2b0] sm:$0xff]  }
 0x648   :  { %6996 = vmatpush3.bf16.msra.mxu1 %v7745_v38  ;;  %4279 = vmatprep.mubr.bf16.mxu1 %v8850_v24  ;;  %v7805_v38 = vld [vmem:[%s9483_s13 + $0x238] sm:$0xff]  }
 0x649   :  { %7018 = vmatpush3.bf16.msra.mxu0 %v7746_v39  ;;  %4319 = vmatprep.mubr.bf16.mxu0 %v8852_v25  ;;  %v7806_v39 = vld [vmem:[%s9483_s13 + $0x2b8] sm:$0xff]  }
 0x64a   :  { %6997 = vmatprep.subr.bf16.mxu1 %v7747_v51  ;;  %7019 = vmatprep.subr.bf16.mxu0 %v7748_v52  ;;  %v7807_v51 = vld [vmem:[%s9483_s13 + $0x340] sm:$0xff]  }
 0x64b   :  { %v7808_v52 = vld [vmem:[%s9483_s13 + $0x3c0] sm:$0xff]  }
 0x64c   :  { %6998 = vmatpush3.bf16.msra.mxu1 %v7749_v42  ;;  %v7809_v42 = vld [vmem:[%s9483_s13 + $0x300] sm:$0xff]  }
 0x64d   :  { %7020 = vmatpush3.bf16.msra.mxu0 %v7750_v53  ;;  %6999 = vmatprep.subr.bf16.mxu1 %v7751_v54  ;;  %v7810_v53 = vld [vmem:[%s9483_s13 + $0x380] sm:$0xff]   ;;  %v7811_v54 = vld [vmem:[%s9483_s13 + $0x348] sm:$0xff]  }
 0x64e   :  { %7021 = vmatprep.subr.bf16.mxu0 %v7752_v55  ;;  %v7812_v55 = vld [vmem:[%s9483_s13 + $0x3c8] sm:$0xff]  }
 0x650   :  { %7000 = vmatpush3.bf16.msra.mxu1 %v7753_v56  ;;  %v7813_v56 = vld [vmem:[%s9483_s13 + $0x308] sm:$0xff]  }
 0x651   :  { %7022 = vmatpush3.bf16.msra.mxu0 %v7754_v57  ;;  %7001 = vmatprep.subr.bf16.mxu1 %v7755_v58  ;;  %v7814_v57 = vld [vmem:[%s9483_s13 + $0x388] sm:$0xff]   ;;  %v7815_v58 = vld [vmem:[%s9483_s13 + $0x350] sm:$0xff]  }
 0x652   :  { %7023 = vmatprep.subr.bf16.mxu0 %v7756_v59  ;;  %v7816_v59 = vld [vmem:[%s9483_s13 + $0x3d0] sm:$0xff]  }
 0x654   :  { %7002 = vmatpush3.bf16.msra.mxu1 %v7757_v60  ;;  %v7817_v60 = vld [vmem:[%s9483_s13 + $0x310] sm:$0xff]  }
 0x655   :  { %7024 = vmatpush3.bf16.msra.mxu0 %v7758_v61  ;;  %7003 = vmatprep.subr.bf16.mxu1 %v7759_v62  ;;  %v7818_v61 = vld [vmem:[%s9483_s13 + $0x390] sm:$0xff]   ;;  %v7819_v62 = vld [vmem:[%s9483_s13 + $0x358] sm:$0xff]  }
 0x656   :  { %7025 = vmatprep.subr.bf16.mxu0 %v7760_v63  ;;  %v7820_v63 = vld [vmem:[%s9483_s13 + $0x3d8] sm:$0xff]  }
 0x658   :  { %7004 = vmatpush3.bf16.msra.mxu1 %v7761_v34  ;;  %v7821_v34 = vld [vmem:[%s9483_s13 + $0x318] sm:$0xff]  }
 0x659   :  { %7026 = vmatpush3.bf16.msra.mxu0 %v7762_v0  ;;  %7005 = vmatprep.subr.bf16.mxu1 %v7763_v2  ;;  %v7822_v0 = vld [vmem:[%s9483_s13 + $0x398] sm:$0xff]   ;;  %v7823_v2 = vld [vmem:[%s9483_s13 + $0x360] sm:$0xff]  }
 0x65a   :  { %7027 = vmatprep.subr.bf16.mxu0 %v7764_v3  ;;  %v7824_v3 = vld [vmem:[%s9483_s13 + $0x3e0] sm:$0xff]  }
 0x65c   :  { %7006 = vmatpush3.bf16.msra.mxu1 %v7765_v4  ;;  %v7825_v4 = vld [vmem:[%s9483_s13 + $0x320] sm:$0xff]  }
 0x65d   :  { %7028 = vmatpush3.bf16.msra.mxu0 %v7766_v5  ;;  %7007 = vmatprep.subr.bf16.mxu1 %v7767_v1  ;;  %v7826_v5 = vld [vmem:[%s9483_s13 + $0x3a0] sm:$0xff]   ;;  %v7827_v1 = vld [vmem:[%s9483_s13 + $0x368] sm:$0xff]  }
 0x65e   :  { %7029 = vmatprep.subr.bf16.mxu0 %v7768_v6  ;;  %v7828_v6 = vld [vmem:[%s9483_s13 + $0x3e8] sm:$0xff]  }
 0x660   :  { %7008 = vmatpush3.bf16.msra.mxu1 %v7769_v7  ;;  %v7829_v7 = vld [vmem:[%s9483_s13 + $0x328] sm:$0xff]  }
 0x661   :  { %7030 = vmatpush3.bf16.msra.mxu0 %v7770_v8  ;;  %7009 = vmatprep.subr.bf16.mxu1 %v7771_v9  ;;  %v7830_v8 = vld [vmem:[%s9483_s13 + $0x3a8] sm:$0xff]   ;;  %v7831_v9 = vld [vmem:[%s9483_s13 + $0x370] sm:$0xff]  }
 0x662   :  { %7031 = vmatprep.subr.bf16.mxu0 %v7772_v10  ;;  %v7832_v10 = vld [vmem:[%s9483_s13 + $0x3f0] sm:$0xff]  }
 0x664   :  { %7010 = vmatpush3.bf16.msra.mxu1 %v7773_v11  ;;  %v7833_v11 = vld [vmem:[%s9483_s13 + $0x330] sm:$0xff]  }
 0x665   :  { %7032 = vmatpush3.bf16.msra.mxu0 %v7774_v12  ;;  %7039 = vmatprep.subr.bf16.mxu1 %v7775_v13  ;;  %v7834_v12 = vld [vmem:[%s9483_s13 + $0x3b0] sm:$0xff]   ;;  %v7835_v13 = vld [vmem:[%s9483_s13 + $0x378] sm:$0xff]  }
 0x666   :  { %7061 = vmatprep.subr.bf16.mxu0 %v7776_v14  ;;  %v7836_v14 = vld [vmem:[%s9483_s13 + $0x3f8] sm:$0xff]  }
 0x667   :  { %4280 = vmatmul.mubr.bf16.vlgmr.msra.gmra.mrb[112].mxu1 %v8907_v40 }
 0x668   :  { %4320 = vmatmul.mubr.bf16.vlgmr.msra.gmra.mrb[120].mxu0 %v8909_v50  ;;  %7040 = vmatpush3.bf16.msra.mxu1 %v7777_v15  ;;  %v7837_v15 = vld [vmem:[%s9483_s13 + $0x338] sm:$0xff]  }
 0x669   :  { %4624 = vmatprep.mubr.bf16.mxu1 %v8850_v24  ;;  %7062 = vmatpush3.bf16.msra.mxu0 %v7778_v16  ;;  %v7838_v16 = vld [vmem:[%s9483_s13 + $0x3b8] sm:$0xff]  }
 0x66a   :  { %4664 = vmatprep.mubr.bf16.mxu0 %v8852_v25  ;;  %7041 = vmatprep.subr.bf16.mxu1 %v7779_v17  ;;  %v7839_v17 = vld [vmem:[%s9483_s13 + $0x440] sm:$0xff]  }
 0x66b   :  { %7063 = vmatprep.subr.bf16.mxu0 %v7780_v18  ;;  %v7840_v18 = vld [vmem:[%s9483_s13 + $0x4c0] sm:$0xff]  }
 0x66c   :  { %7042 = vmatpush3.bf16.msra.mxu1 %v7781_v19  ;;  %v7841_v19 = vld [vmem:[%s9483_s13 + $0x400] sm:$0xff]  }
 0x66d   :  { %7064 = vmatpush3.bf16.msra.mxu0 %v7782_v20  ;;  %7043 = vmatprep.subr.bf16.mxu1 %v7783_v23  ;;  %v7842_v20 = vld [vmem:[%s9483_s13 + $0x480] sm:$0xff]   ;;  %v7843_v23 = vld [vmem:[%s9483_s13 + $0x448] sm:$0xff]  }
 0x66e   :  { %7065 = vmatprep.subr.bf16.mxu0 %v7784_v26  ;;  %v7844_v26 = vld [vmem:[%s9483_s13 + $0x4c8] sm:$0xff]  }
 0x670   :  { %7044 = vmatpush3.bf16.msra.mxu1 %v7785_v27  ;;  %v7845_v27 = vld [vmem:[%s9483_s13 + $0x408] sm:$0xff]  }
 0x671   :  { %7066 = vmatpush3.bf16.msra.mxu0 %v7786_v28  ;;  %7045 = vmatprep.subr.bf16.mxu1 %v7787_v29  ;;  %v7846_v28 = vld [vmem:[%s9483_s13 + $0x488] sm:$0xff]   ;;  %v7847_v29 = vld [vmem:[%s9483_s13 + $0x450] sm:$0xff]  }
 0x672   :  { %7067 = vmatprep.subr.bf16.mxu0 %v7788_v30  ;;  %v7848_v30 = vld [vmem:[%s9483_s13 + $0x4d0] sm:$0xff]  }
 0x674   :  { %7046 = vmatpush3.bf16.msra.mxu1 %v7789_v21  ;;  %v7849_v21 = vld [vmem:[%s9483_s13 + $0x410] sm:$0xff]  }
 0x675   :  { %7068 = vmatpush3.bf16.msra.mxu0 %v7790_v31  ;;  %7047 = vmatprep.subr.bf16.mxu1 %v7791_v32  ;;  %v7850_v31 = vld [vmem:[%s9483_s13 + $0x490] sm:$0xff]   ;;  %v7851_v32 = vld [vmem:[%s9483_s13 + $0x458] sm:$0xff]  }
 0x676   :  { %7069 = vmatprep.subr.bf16.mxu0 %v7792_v37  ;;  %v7852_v37 = vld [vmem:[%s9483_s13 + $0x4d8] sm:$0xff]  }
 0x678   :  { %7048 = vmatpush3.bf16.msra.mxu1 %v7793_v41  ;;  %v7853_v41 = vld [vmem:[%s9483_s13 + $0x418] sm:$0xff]  }
 0x679   :  { %7070 = vmatpush3.bf16.msra.mxu0 %v7794_v43  ;;  %7049 = vmatprep.subr.bf16.mxu1 %v7795_v22  ;;  %v7854_v43 = vld [vmem:[%s9483_s13 + $0x498] sm:$0xff]   ;;  %v7855_v22 = vld [vmem:[%s9483_s13 + $0x460] sm:$0xff]  }
 0x67a   :  { %7071 = vmatprep.subr.bf16.mxu0 %v7796_v44  ;;  %v7856_v44 = vld [vmem:[%s9483_s13 + $0x4e0] sm:$0xff]  }
 0x67c   :  { %7050 = vmatpush3.bf16.msra.mxu1 %v7797_v45  ;;  %v7857_v45 = vld [vmem:[%s9483_s13 + $0x420] sm:$0xff]  }
 0x67d   :  { %7072 = vmatpush3.bf16.msra.mxu0 %v7798_v46  ;;  %7051 = vmatprep.subr.bf16.mxu1 %v7799_v47  ;;  %v7858_v46 = vld [vmem:[%s9483_s13 + $0x4a0] sm:$0xff]   ;;  %v7859_v47 = vld [vmem:[%s9483_s13 + $0x468] sm:$0xff]  }
 0x67e   :  { %7073 = vmatprep.subr.bf16.mxu0 %v7800_v48  ;;  %v7860_v48 = vld [vmem:[%s9483_s13 + $0x4e8] sm:$0xff]  }
 0x680   :  { %7052 = vmatpush3.bf16.msra.mxu1 %v7801_v49  ;;  %v7861_v49 = vld [vmem:[%s9483_s13 + $0x428] sm:$0xff]  }
 0x681   :  { %7074 = vmatpush3.bf16.msra.mxu0 %v7802_v33  ;;  %7053 = vmatprep.subr.bf16.mxu1 %v7803_v35  ;;  %v7862_v33 = vld [vmem:[%s9483_s13 + $0x4a8] sm:$0xff]   ;;  %v7863_v35 = vld [vmem:[%s9483_s13 + $0x470] sm:$0xff]  }
 0x682   :  { %7075 = vmatprep.subr.bf16.mxu0 %v7804_v36  ;;  %v7864_v36 = vld [vmem:[%s9483_s13 + $0x4f0] sm:$0xff]  }
 0x684   :  { %7054 = vmatpush3.bf16.msra.mxu1 %v7805_v38  ;;  %v7865_v38 = vld [vmem:[%s9483_s13 + $0x430] sm:$0xff]  }
 0x685   :  { %7076 = vmatpush3.bf16.msra.mxu0 %v7806_v39  ;;  %7083 = vmatprep.subr.bf16.mxu1 %v7807_v51  ;;  %v7866_v39 = vld [vmem:[%s9483_s13 + $0x4b0] sm:$0xff]   ;;  %v7867_v51 = vld [vmem:[%s9483_s13 + $0x478] sm:$0xff]  }
 0x686   :  { %7105 = vmatprep.subr.bf16.mxu0 %v7808_v52  ;;  %v7868_v52 = vld [vmem:[%s9483_s13 + $0x4f8] sm:$0xff]  }
 0x687   :  { %4625 = vmatmul.mubr.bf16.vlgmr.msra.gmra.mrb[116].mxu1 %v8907_v40 }
 0x688   :  { %4665 = vmatmul.mubr.bf16.vlgmr.msra.gmra.mrb[124].mxu0 %v8909_v50  ;;  %7084 = vmatpush3.bf16.msra.mxu1 %v7809_v42  ;;  %v7869_v42 = vld [vmem:[%s9483_s13 + $0x438] sm:$0xff]  }
 0x689   :  { %4969 = vmatprep.mubr.bf16.mxu1 %v8850_v24  ;;  %7106 = vmatpush3.bf16.msra.mxu0 %v7810_v53  ;;  %v7870_v53 = vld [vmem:[%s9483_s13 + $0x4b8] sm:$0xff]  }
 0x68a   :  { %5009 = vmatprep.mubr.bf16.mxu0 %v8852_v25  ;;  %7085 = vmatprep.subr.bf16.mxu1 %v7811_v54  ;;  %v7871_v54 = vld [vmem:[%s9483_s13 + $0x540] sm:$0xff]  }
 0x68b   :  { %7107 = vmatprep.subr.bf16.mxu0 %v7812_v55  ;;  %v7872_v55 = vld [vmem:[%s9483_s13 + $0x5c0] sm:$0xff]  }
 0x68c   :  { %7086 = vmatpush3.bf16.msra.mxu1 %v7813_v56  ;;  %v7873_v56 = vld [vmem:[%s9483_s13 + $0x500] sm:$0xff]  }
 0x68d   :  { %7108 = vmatpush3.bf16.msra.mxu0 %v7814_v57  ;;  %7087 = vmatprep.subr.bf16.mxu1 %v7815_v58  ;;  %v7874_v57 = vld [vmem:[%s9483_s13 + $0x580] sm:$0xff]   ;;  %v7875_v58 = vld [vmem:[%s9483_s13 + $0x548] sm:$0xff]  }
 0x68e   :  { %7109 = vmatprep.subr.bf16.mxu0 %v7816_v59  ;;  %v7876_v59 = vld [vmem:[%s9483_s13 + $0x5c8] sm:$0xff]  }
 0x690   :  { %7088 = vmatpush3.bf16.msra.mxu1 %v7817_v60  ;;  %v7877_v60 = vld [vmem:[%s9483_s13 + $0x508] sm:$0xff]  }
 0x691   :  { %7110 = vmatpush3.bf16.msra.mxu0 %v7818_v61  ;;  %7089 = vmatprep.subr.bf16.mxu1 %v7819_v62  ;;  %v7878_v61 = vld [vmem:[%s9483_s13 + $0x588] sm:$0xff]   ;;  %v7879_v62 = vld [vmem:[%s9483_s13 + $0x550] sm:$0xff]  }
 0x692   :  { %7111 = vmatprep.subr.bf16.mxu0 %v7820_v63  ;;  %v7880_v63 = vld [vmem:[%s9483_s13 + $0x5d0] sm:$0xff]  }
 0x694   :  { %7090 = vmatpush3.bf16.msra.mxu1 %v7821_v34  ;;  %v7882_v34 = vld [vmem:[%s9483_s13 + $0x590] sm:$0xff]  }
 0x695   :  { %7112 = vmatpush3.bf16.msra.mxu0 %v7822_v0  ;;  %7091 = vmatprep.subr.bf16.mxu1 %v7823_v2  ;;  %v7884_v0 = vld [vmem:[%s9483_s13 + $0x5d8] sm:$0xff]  }
 0x696   :  { %7113 = vmatprep.subr.bf16.mxu0 %v7824_v3  ;;  %v7885_v2 = vld [vmem:[%s9483_s13 + $0x518] sm:$0xff]  }
 0x697   :  { %v7886_v3 = vld [vmem:[%s9483_s13 + $0x598] sm:$0xff]  }
 0x698   :  { %7092 = vmatpush3.bf16.msra.mxu1 %v7825_v4  ;;  %v7887_v4 = vld [vmem:[%s9483_s13 + $0x560] sm:$0xff]  }
 0x699   :  { %7114 = vmatpush3.bf16.msra.mxu0 %v7826_v5  ;;  %7093 = vmatprep.subr.bf16.mxu1 %v7827_v1  ;;  %v7888_v5 = vld [vmem:[%s9483_s13 + $0x5e0] sm:$0xff]  }
 0x69a   :  { %7115 = vmatprep.subr.bf16.mxu0 %v7828_v6  ;;  %v7889_v1 = vld [vmem:[%s9483_s13 + $0x520] sm:$0xff]  }
 0x69b   :  { %v7890_v6 = vld [vmem:[%s9483_s13 + $0x5a0] sm:$0xff]  }
 0x69c   :  { %7094 = vmatpush3.bf16.msra.mxu1 %v7829_v7  ;;  %v7891_v7 = vld [vmem:[%s9483_s13 + $0x568] sm:$0xff]  }
 0x69d   :  { %7116 = vmatpush3.bf16.msra.mxu0 %v7830_v8  ;;  %7095 = vmatprep.subr.bf16.mxu1 %v7831_v9  ;;  %v7892_v8 = vld [vmem:[%s9483_s13 + $0x5e8] sm:$0xff]  }
 0x69e   :  { %7117 = vmatprep.subr.bf16.mxu0 %v7832_v10  ;;  %v7893_v9 = vld [vmem:[%s9483_s13 + $0x528] sm:$0xff]  }
 0x69f   :  { %v7894_v10 = vld [vmem:[%s9483_s13 + $0x5a8] sm:$0xff]  }
 0x6a0   :  { %7096 = vmatpush3.bf16.msra.mxu1 %v7833_v11  ;;  %v7895_v11 = vld [vmem:[%s9483_s13 + $0x570] sm:$0xff]  }
 0x6a1   :  { %7118 = vmatpush3.bf16.msra.mxu0 %v7834_v12  ;;  %7097 = vmatprep.subr.bf16.mxu1 %v7835_v13  ;;  %v7896_v12 = vld [vmem:[%s9483_s13 + $0x5f0] sm:$0xff]  }
 0x6a2   :  { %7119 = vmatprep.subr.bf16.mxu0 %v7836_v14  ;;  %v7897_v13 = vld [vmem:[%s9483_s13 + $0x530] sm:$0xff]  }
 0x6a3   :  { %v7898_v14 = vld [vmem:[%s9483_s13 + $0x5b0] sm:$0xff]  }
 0x6a4   :  { %7098 = vmatpush3.bf16.msra.mxu1 %v7837_v15  ;;  %v7899_v15 = vld [vmem:[%s9483_s13 + $0x578] sm:$0xff]  }
 0x6a5   :  { %7120 = vmatpush3.bf16.msra.mxu0 %v7838_v16  ;;  %7127 = vmatprep.subr.bf16.mxu1 %v7839_v17  ;;  %v7900_v16 = vld [vmem:[%s9483_s13 + $0x5f8] sm:$0xff]  }
 0x6a6   :  { %7149 = vmatprep.subr.bf16.mxu0 %v7840_v18  ;;  %v7901_v17 = vld [vmem:[%s9483_s13 + $0x538] sm:$0xff]  }
 0x6a7   :  { %4970 = vmatmul.mubr.bf16.vlgmr.msra.gmra.mrb[120].mxu1 %v8907_v40  ;;  %v7902_v18 = vld [vmem:[%s9483_s13 + $0x5b8] sm:$0xff]  }
 0x6a8   :  { %5010 = vmatmul.mubr.bf16.vlgmr.msra.gmra.mrb[128].mxu0 %v8909_v50  ;;  %7128 = vmatpush3.bf16.msra.mxu1 %v7841_v19 }
 0x6a9   :  { %5314 = vmatprep.mubr.bf16.mxu1 %v8850_v24  ;;  %7150 = vmatpush3.bf16.msra.mxu0 %v7842_v20 }
 0x6aa   :  { %5354 = vmatprep.mubr.bf16.mxu0 %v8852_v25  ;;  %7129 = vmatprep.subr.bf16.mxu1 %v7843_v23  ;;  %v6139_v23 = vld [vmem:[%s9485_s12] ss:$0 sm:$0xff] }
 0x6ab   :  { %7151 = vmatprep.subr.bf16.mxu0 %v7844_v26 }
 0x6ac   :  { %7130 = vmatpush3.bf16.msra.mxu1 %v7845_v27 }
 0x6ad   :  { %7152 = vmatpush3.bf16.msra.mxu0 %v7846_v28  ;;  %7131 = vmatprep.subr.bf16.mxu1 %v7847_v29 }
 0x6ae   :  { %7153 = vmatprep.subr.bf16.mxu0 %v7848_v30 }
 0x6b0   :  { %7132 = vmatpush3.bf16.msra.mxu1 %v7849_v21 }
 0x6b1   :  { %7154 = vmatpush3.bf16.msra.mxu0 %v7850_v31  ;;  %7133 = vmatprep.subr.bf16.mxu1 %v7851_v32 }
 0x6b2   :  { %7155 = vmatprep.subr.bf16.mxu0 %v7852_v37 }
 0x6b4   :  { %7134 = vmatpush3.bf16.msra.mxu1 %v7853_v41 }
 0x6b5   :  { %7156 = vmatpush3.bf16.msra.mxu0 %v7854_v43  ;;  %7135 = vmatprep.subr.bf16.mxu1 %v7855_v22 }
 0x6b6   :  { %7157 = vmatprep.subr.bf16.mxu0 %v7856_v44 }
 0x6b8   :  { %7136 = vmatpush3.bf16.msra.mxu1 %v7857_v45 }
 0x6b9   :  { %7158 = vmatpush3.bf16.msra.mxu0 %v7858_v46  ;;  %7137 = vmatprep.subr.bf16.mxu1 %v7859_v47 }
 0x6ba   :  { %7159 = vmatprep.subr.bf16.mxu0 %v7860_v48 }
 0x6bc   :  { %7138 = vmatpush3.bf16.msra.mxu1 %v7861_v49 }
 0x6bd   :  { %7160 = vmatpush3.bf16.msra.mxu0 %v7862_v33  ;;  %7139 = vmatprep.subr.bf16.mxu1 %v7863_v35 }
 0x6be   :  { %7161 = vmatprep.subr.bf16.mxu0 %v7864_v36 }
 0x6c0   :  { %7140 = vmatpush3.bf16.msra.mxu1 %v7865_v38 }
 0x6c1   :  { %7162 = vmatpush3.bf16.msra.mxu0 %v7866_v39  ;;  %7141 = vmatprep.subr.bf16.mxu1 %v7867_v51 }
 0x6c2   :  { %7163 = vmatprep.subr.bf16.mxu0 %v7868_v52  ;;  %v6270_v52 = vld [vmem:[%s9486_s14 + $0x1] ss:$0 sm:$0xff] }
 0x6c4   :  { %7142 = vmatpush3.bf16.msra.mxu1 %v7869_v42 }
 0x6c5   :  { %7164 = vmatpush3.bf16.msra.mxu0 %v7870_v53  ;;  %7171 = vmatprep.subr.bf16.mxu1 %v7871_v54 }
 0x6c6   :  { %7193 = vmatprep.subr.bf16.mxu0 %v7872_v55 }
 0x6c7   :  { %5315 = vmatmul.mubr.bf16.vlgmr.msra.gmra.mrb[124].mxu1 %v8907_v40 }
 0x6c8   :  { %5355 = vmatmul.mubr.bf16.vlgmr.msra.gmra.mrb[132].mxu0 %v8909_v50  ;;  %7172 = vmatpush3.bf16.msra.mxu1 %v7873_v56 }
 0x6c9   :  { %5659 = vmatprep.mubr.bf16.mxu1 %v8850_v24  ;;  %7194 = vmatpush3.bf16.msra.mxu0 %v7874_v57  ;;  %v7881_v24 = vld [vmem:[%s9483_s13 + $0x510] sm:$0xff]  }
 0x6ca   :  { %5699 = vmatprep.mubr.bf16.mxu0 %v8852_v25  ;;  %7173 = vmatprep.subr.bf16.mxu1 %v7875_v58  ;;  %v7883_v25 = vld [vmem:[%s9483_s13 + $0x558] sm:$0xff]  }
 0x6cb   :  { %7195 = vmatprep.subr.bf16.mxu0 %v7876_v59 }
 0x6cc   :  { %7174 = vmatpush3.bf16.msra.mxu1 %v7877_v60 }
 0x6cd   :  { %7196 = vmatpush3.bf16.msra.mxu0 %v7878_v61  ;;  %7175 = vmatprep.subr.bf16.mxu1 %v7879_v62 }
 0x6ce   :  { %7197 = vmatprep.subr.bf16.mxu0 %v7880_v63 }
 0x6d0   :  { %7176 = vmatpush3.bf16.msra.mxu1 %v7881_v24 }
 0x6d1   :  { %7198 = vmatpush3.bf16.msra.mxu0 %v7882_v34  ;;  %7177 = vmatprep.subr.bf16.mxu1 %v7883_v25  ;;  %v6368_v25 = vld [vmem:[%s9486_s14 + $0x2] ss:$0 sm:$0xff] }
 0x6d2   :  { %7199 = vmatprep.subr.bf16.mxu0 %v7884_v0 }
 0x6d4   :  { %7178 = vmatpush3.bf16.msra.mxu1 %v7885_v2 }
 0x6d5   :  { %7200 = vmatpush3.bf16.msra.mxu0 %v7886_v3  ;;  %7179 = vmatprep.subr.bf16.mxu1 %v7887_v4 }
 0x6d6   :  { %7201 = vmatprep.subr.bf16.mxu0 %v7888_v5 }
 0x6d8   :  { %7180 = vmatpush3.bf16.msra.mxu1 %v7889_v1 }
 0x6d9   :  { %7202 = vmatpush3.bf16.msra.mxu0 %v7890_v6  ;;  %7181 = vmatprep.subr.bf16.mxu1 %v7891_v7 }
 0x6da   :  { %7203 = vmatprep.subr.bf16.mxu0 %v7892_v8 }
 0x6dc   :  { %7182 = vmatpush3.bf16.msra.mxu1 %v7893_v9 }
 0x6dd   :  { %7204 = vmatpush3.bf16.msra.mxu0 %v7894_v10  ;;  %7183 = vmatprep.subr.bf16.mxu1 %v7895_v11 }
 0x6de   :  { %7205 = vmatprep.subr.bf16.mxu0 %v7896_v12 }
 0x6e0   :  { %7184 = vmatpush3.bf16.msra.mxu1 %v7897_v13 }
 0x6e1   :  { %7206 = vmatpush3.bf16.msra.mxu0 %v7898_v14  ;;  %7185 = vmatprep.subr.bf16.mxu1 %v7899_v15  ;;  %v6466_v14 = vld [vmem:[%s9486_s14 + $0x3] ss:$0 sm:$0xff] }
 0x6e2   :  { %7207 = vmatprep.subr.bf16.mxu0 %v7900_v16 }
 0x6e4   :  { %7186 = vmatpush3.bf16.msra.mxu1 %v7901_v17 }
 0x6e5   :  { %7208 = vmatpush3.bf16.msra.mxu0 %v7902_v18 }
 0x6e7   :  { %5660 = vmatmul.mubr.bf16.vlgmr.msra.gmra.mrb[128].mxu1 %v8907_v40 }
 0x6e8   :  { %5700 = vmatmul.mubr.bf16.vlgmr.msra.gmra.mrb[136].mxu0 %v8909_v50  ;;  %v6172_v50 = vld [vmem:[%s9486_s14] ss:$0 sm:$0xff] }
 0x6fa   :  { %v6923_v19 = vpop.f32.mrb[104].mxu1  ;;  %v6945_v20 = vpop.f32.mrb[112].mxu0 }
 0x6fb   :  { %v6924_v26 = vpop.f32.mrb[105].mxu1  ;;  %v6946_v27 = vpop.f32.mrb[113].mxu0 }
 0x6fc   :  { %v6925_v28 = vadd.f32 %v6924_v26, %v6923_v19  ;;  %v6947_v29 = vadd.f32 %v6946_v27, %v6945_v20  ;;  %v6926_v30 = vpop.f32.mrb[106].mxu1  ;;  %v6948_v21 = vpop.f32.mrb[114].mxu0 }
 0x6fd   :  { %v6927_v31 = vpop.f32.mrb[107].mxu1  ;;  %v6949_v32 = vpop.f32.mrb[115].mxu0 }
 0x6fe   :  { %v3594_v37 = vadd.f32 %v6925_v28, %v6139_v23  ;;  %v6564_v32 = vld [vmem:[%s9486_s14 + $0x4] ss:$0 sm:$0xff] }
 0x700   :  { %v9404_v41 = vadd.f32 %v6947_v29, %v3594_v37 }
 0x71a   :  { %v6967_v40 = vpop.f32.mrb[108].mxu1  ;;  %v6989_v43 = vpop.f32.mrb[116].mxu0 }
 0x71b   :  { %v6968_v22 = vpop.f32.mrb[109].mxu1  ;;  %v6990_v44 = vpop.f32.mrb[117].mxu0 }
 0x71c   :  { %v6969_v45 = vadd.f32 %v6968_v22, %v6967_v40  ;;  %v6991_v46 = vadd.f32 %v6990_v44, %v6989_v43  ;;  %v6970_v47 = vpop.f32.mrb[110].mxu1  ;;  %v6992_v48 = vpop.f32.mrb[118].mxu0 }
 0x71d   :  { %v6971_v49 = vpop.f32.mrb[111].mxu1  ;;  %v6993_v33 = vpop.f32.mrb[119].mxu0 }
 0x71e   :  { %v3937_v35 = vadd.f32 %v6969_v45, %v6172_v50 }
 0x720   :  { %v3977_v36 = vadd.f32 %v6991_v46, %v3937_v35 }
 0x722   :  { %v9410_v38 = vadd.f32 %v3977_v36, %v9404_v41 }
 0x73a   :  { %v7011_v39 = vpop.f32.mrb[112].mxu1 }
 0x73b   :  { %v7033_v51 = vpop.f32.mrb[120].mxu0  ;;  %v7012_v42 = vpop.f32.mrb[113].mxu1 }
 0x73c   :  { %v7013_v53 = vadd.f32 %v7012_v42, %v7011_v39  ;;  %v7034_v54 = vpop.f32.mrb[121].mxu0  ;;  %v7014_v55 = vpop.f32.mrb[114].mxu1  ;;  %v6662_v39 = vld [vmem:[%s9486_s14 + $0x5] ss:$0 sm:$0xff] }
 0x73d   :  { %v7035_v56 = vadd.f32 %v7034_v54, %v7033_v51  ;;  %v7036_v57 = vpop.f32.mrb[122].mxu0  ;;  %v7015_v58 = vpop.f32.mrb[115].mxu1 }
 0x73e   :  { %v4282_v59 = vadd.f32 %v7013_v53, %v6270_v52  ;;  %v7037_v60 = vpop.f32.mrb[123].mxu0 }
 0x740   :  { %v4322_v61 = vadd.f32 %v7035_v56, %v4282_v59 }
 0x742   :  { %v5707_v62 = vadd.f32 %v4322_v61, %v3977_v36  ;;  %v9416_v63 = vadd.f32 %v4322_v61, %v9404_v41 }
 0x75a   :  { %v7055_v24 = vpop.f32.mrb[116].mxu1 }
 0x75b   :  { %v7077_v34 = vpop.f32.mrb[124].mxu0  ;;  %v7056_v0 = vpop.f32.mrb[117].mxu1 }
 0x75c   :  { %v7057_v2 = vadd.f32 %v7056_v0, %v7055_v24  ;;  %v7078_v3 = vpop.f32.mrb[125].mxu0  ;;  %v7058_v4 = vpop.f32.mrb[118].mxu1 }
 0x75d   :  { %v7079_v5 = vadd.f32 %v7078_v3, %v7077_v34  ;;  %v7080_v1 = vpop.f32.mrb[126].mxu0  ;;  %v7059_v6 = vpop.f32.mrb[119].mxu1 }
 0x75e   :  { %v4627_v7 = vadd.f32 %v7057_v2, %v6368_v25  ;;  %v7081_v8 = vpop.f32.mrb[127].mxu0 }
 0x760   :  { %v4667_v9 = vadd.f32 %v7079_v5, %v4627_v7 }
 0x762   :  { %v5708_v10 = vadd.f32 %v5707_v62, %v4667_v9  ;;  %v5717_v11 = vadd.f32 %v4667_v9, %v9404_v41 }
 0x77a   :  { %v7099_v12 = vpop.f32.mrb[120].mxu1 }
 0x77b   :  { %v7121_v13 = vpop.f32.mrb[128].mxu0  ;;  %v7100_v15 = vpop.f32.mrb[121].mxu1 }
 0x77c   :  { %v7101_v16 = vadd.f32 %v7100_v15, %v7099_v12  ;;  %v7122_v17 = vpop.f32.mrb[129].mxu0  ;;  %v7102_v18 = vpop.f32.mrb[122].mxu1 }
 0x77d   :  { %v7123_v19 = vadd.f32 %v7122_v17, %v7121_v13  ;;  %v7124_v20 = vpop.f32.mrb[130].mxu0  ;;  %v7103_v23 = vpop.f32.mrb[123].mxu1 }
 0x77e   :  { %v4972_v26 = vadd.f32 %v7101_v16, %v6466_v14  ;;  %v7125_v27 = vpop.f32.mrb[131].mxu0 }
 0x780   :  { %v5012_v28 = vadd.f32 %v7123_v19, %v4972_v26 }
 0x782   :  { %v5709_v29 = vadd.f32 %v5708_v10, %v5012_v28  ;;  %v5719_v30 = vadd.f32 %v5012_v28, %v9404_v41 }
 0x79a   :  { %v7143_v21 = vpop.f32.mrb[124].mxu1 }
 0x79b   :  { %v7165_v31 = vpop.f32.mrb[132].mxu0  ;;  %v7144_v37 = vpop.f32.mrb[125].mxu1 }
 0x79c   :  { %v7145_v40 = vadd.f32 %v7144_v37, %v7143_v21  ;;  %v7166_v43 = vpop.f32.mrb[133].mxu0  ;;  %v7146_v50 = vpop.f32.mrb[126].mxu1 }
 0x79d   :  { %v7167_v22 = vadd.f32 %v7166_v43, %v7165_v31  ;;  %v7168_v44 = vpop.f32.mrb[134].mxu0  ;;  %v7147_v45 = vpop.f32.mrb[127].mxu1 }
 0x79e   :  { %v5317_v46 = vadd.f32 %v7145_v40, %v6564_v32  ;;  %v7169_v47 = vpop.f32.mrb[135].mxu0 }
 0x7a0   :  { %v5357_v48 = vadd.f32 %v7167_v22, %v5317_v46 }
 0x7a2   :  { %v5710_v49 = vadd.f32 %v5709_v29, %v5357_v48  ;;  %v5721_v33 = vadd.f32 %v5357_v48, %v9404_v41 }
 0x7ba   :  { %v7187_v35 = vpop.f32.mrb[128].mxu1 }
 0x7bb   :  { %v7209_v36 = vpop.f32.mrb[136].mxu0  ;;  %v7188_v51 = vpop.f32.mrb[129].mxu1 }
 0x7bc   :  { %v7189_v52 = vadd.f32 %v7188_v51, %v7187_v35  ;;  %v7210_v42 = vpop.f32.mrb[137].mxu0  ;;  %v7190_v53 = vpop.f32.mrb[130].mxu1 }
 0x7bd   :  { %v7211_v54 = vadd.f32 %v7210_v42, %v7209_v36  ;;  %v7212_v55 = vpop.f32.mrb[138].mxu0  ;;  %v7191_v56 = vpop.f32.mrb[131].mxu1 }
 0x7be   :  { %v5662_v57 = vadd.f32 %v7189_v52, %v6662_v39  ;;  %v7213_v58 = vpop.f32.mrb[139].mxu0 }
 0x7c0   :  { %v5702_v59 = vadd.f32 %v7211_v54, %v5662_v57 }
 0x7c2   :  { %v5711_v60 = vadd.f32 %v5710_v49, %v5702_v59  ;;  %v5723_v61 = vadd.f32 %v5702_v59, %v9404_v41 }
 0x7c4   :  { %v5712_v62 = vmul.f32 0.16666667, %v5711_v60 }
 0x7c6   :  { %v5718_v24 = vsub.f32 %v5717_v11, %v5712_v62  ;;  %v5714_v34 = vsub.f32 %v9410_v38, %v5712_v62  ;;  %v5720_v25 = vsub.f32 %v5719_v30, %v5712_v62  ;;  %v5716_v0 = vsub.f32 %v9416_v63, %v5712_v62 }
 0x7c7   :  { %v5724_v2 = vsub.f32 %v5723_v61, %v5712_v62  ;;  %v5722_v3 = vsub.f32 %v5721_v33, %v5712_v62 }
 0x7c8   :  { %v5731_v4 = vsel %vm2212_vm4, %v5718_v24, -inf  ;;  %v5725_v5 = vsel %vm2212_vm4, %v5714_v34, -inf  ;;  %v5734_v1 = vsel %vm2212_vm4, %v5720_v25, -inf  ;;  %v5728_v6 = vsel %vm2212_vm4, %v5716_v0, -inf }
 0x7c9   :  { %5732 = vmax.xlane.f32.xlu1 %v5731_v4  ;;  %5726 = vmax.xlane.f32.xlu0 %v5725_v5  ;;  %v5740_v41 = vsel %vm2212_vm4, %v5724_v2, -inf  ;;  %v5737_v38 = vsel %vm2212_vm4, %v5722_v3, -inf }
 0x7cd   :  { %5735 = vmax.xlane.f32.xlu1 %v5734_v1  ;;  %5729 = vmax.xlane.f32.xlu0 %v5728_v6 }
 0x7d1   :  { %5741 = vmax.xlane.f32.xlu1 %v5740_v41  ;;  %5738 = vmax.xlane.f32.xlu0 %v5737_v38 }
 0x856   :  { %v5733_v63 = vpop.xlane.xlu1 %5732  ;;  %v5727_v7 = vpop.xlane.xlu0 %5726 }
 0x857   :  { %v5745_v8 = vsub.f32 %v5718_v24, %v5733_v63  ;;  %v5743_v9 = vsub.f32 %v5714_v34, %v5727_v7 }
 0x859   :  { %v5749_v10 = vmul.f32 1.442695, %v5743_v9  ;;  %v5753_v11 = vmul.f32 1.442695, %v5745_v8 }
 0x85a   :  { %v5736_v12 = vpop.xlane.xlu1 %5735  ;;  %v5730_v13 = vpop.xlane.xlu0 %5729 }
 0x85b   :  { %v5746_v14 = vsub.f32 %v5720_v25, %v5736_v12  ;;  %v5744_v15 = vsub.f32 %v5716_v0, %v5730_v13  ;;  %7903 = vpow2.f32 %v5749_v10 }
 0x85c   :  { %7905 = vpow2.f32 %v5753_v11 }
 0x85d   :  { %v5751_v16 = vmul.f32 1.442695, %v5744_v15  ;;  %v5755_v17 = vmul.f32 1.442695, %v5746_v14 }
 0x85e   :  { %v5742_v18 = vpop.xlane.xlu1 %5741  ;;  %v5739_v19 = vpop.xlane.xlu0 %5738 }
 0x85f   :  { %v5748_v20 = vsub.f32 %v5724_v2, %v5742_v18  ;;  %v5747_v23 = vsub.f32 %v5722_v3, %v5739_v19  ;;  %7907 = vpow2.f32 %v5751_v16 }
 0x860   :  { %7909 = vpow2.f32 %v5755_v17 }
 0x861   :  { %v5757_v26 = vmul.f32 1.442695, %v5747_v23  ;;  %v5759_v27 = vmul.f32 1.442695, %v5748_v20 }
 0x863   :  { %7911 = vpow2.f32 %v5757_v26 }
 0x864   :  { %7913 = vpow2.f32 %v5759_v27 }
 0x865   :  { %v7904_v28 = vpop.eup %7903 }
 0x866   :  { %v5761_v29 = vsel %vm2212_vm4, %v7904_v28, 0.0  ;;  %v7906_v30 = vpop.eup %7905 }
 0x867   :  { %5762 = vadd.xlane.f32.xlu0 %v5761_v29  ;;  %v5767_v31 = vsel %vm2212_vm4, %v7906_v30, 0.0 }
 0x869   :  { %v7908_v21 = vpop.eup %7907 }
 0x86a   :  { %v5764_v32 = vsel %vm2212_vm4, %v7908_v21, 0.0  ;;  %v7910_v37 = vpop.eup %7909 }
 0x86b   :  { %5768 = vadd.xlane.f32.xlu0 %v5767_v31  ;;  %5765 = vadd.xlane.f32.xlu1 %v5764_v32  ;;  %v5770_v43 = vsel %vm2212_vm4, %v7910_v37, 0.0 }
 0x86d   :  { %v7912_v40 = vpop.eup %7911 }
 0x86e   :  { %v5773_v50 = vsel %vm2212_vm4, %v7912_v40, 0.0  ;;  %v7914_v22 = vpop.eup %7913 }
 0x86f   :  { %5771 = vadd.xlane.f32.xlu1 %v5770_v43  ;;  %5774 = vadd.xlane.f32.xlu0 %v5773_v50  ;;  %v5776_v44 = vsel %vm2212_vm4, %v7914_v22, 0.0 }
 0x873   :  { %5777 = vadd.xlane.f32.xlu1 %v5776_v44 }
 0x8f4   :  { %v5763_v45 = vpop.xlane.xlu0 %5762 }
 0x8f5   :  { %7915 = vrcp.f32 %v5763_v45 }
 0x8f8   :  { %v5766_v46 = vpop.xlane.xlu1 %5765  ;;  %v5769_v47 = vpop.xlane.xlu0 %5768 }
 0x8f9   :  { %7917 = vrcp.f32 %v5766_v46 }
 0x8fa   :  { %7919 = vrcp.f32 %v5769_v47 }
 0x8fc   :  { %v5772_v48 = vpop.xlane.xlu1 %5771  ;;  %v5775_v49 = vpop.xlane.xlu0 %5774 }
 0x8fd   :  { %7921 = vrcp.f32 %v5772_v48 }
 0x8fe   :  { %7923 = vrcp.f32 %v5775_v49 }
 0x8ff   :  { %v7916_v33 = vpop.eup %7915 }
 0x900   :  { %v5785_v35 = vmul.f32 %v7916_v33, %v7904_v28  ;;  %v5778_v36 = vpop.xlane.xlu1 %5777 }
 0x901   :  { %7925 = vrcp.f32 %v5778_v36 }
 0x902   :  { %5791 = vst.msk [vmem:[%s9487_s15] sm:$0xff] %vm2212_vm4, %v5785_v35 }
 0x903   :  { %v7918_v39 = vpop.eup %7917 }
 0x904   :  { %v7920_v51 = vpop.eup %7919  ;;  %v5786_v52 = vmul.f32 %v7918_v39, %v7908_v21 }
 0x905   :  { %v5787_v42 = vmul.f32 %v7920_v51, %v7906_v30 }
 0x906   :  { %5792 = vst.msk [vmem:[%s9487_s15 + $0x8] sm:$0xff] %vm2212_vm4, %v5786_v52 }
 0x907   :  { %v7922_v53 = vpop.eup %7921  ;;  %5793 = vst.msk [vmem:[%s9487_s15 + $0x10] sm:$0xff] %vm2212_vm4, %v5787_v42 }
 0x908   :  { %v7924_v54 = vpop.eup %7923  ;;  %v5788_v55 = vmul.f32 %v7922_v53, %v7910_v37 }
 0x909   :  { %v5789_v56 = vmul.f32 %v7924_v54, %v7912_v40 }
 0x90a   :  { %5794 = vst.msk [vmem:[%s9487_s15 + $0x18] sm:$0xff] %vm2212_vm4, %v5788_v55 }
 0x90b   :  { %v7926_v57 = vpop.eup %7925  ;;  %5795 = vst.msk [vmem:[%s9487_s15 + $0x20] sm:$0xff] %vm2212_vm4, %v5789_v56 }
 0x90c   :  { %v5790_v58 = vmul.f32 %v7926_v57, %v7914_v22 }
 0x90e   :  { %5796 = vst.msk [vmem:[%s9487_s15 + $0x28] sm:$0xff] %vm2212_vm4, %v5790_v58 }

</bundles_post_ra>
